<compile_context>
chip_gen: v5e
topology: v5e:2x2
jax: 0.10.0
libtpu: 0.0.40
codegen_flags: <defaults>
</compile_context>

<pallas_src>
import functools

import jax
import jax.numpy as jnp
from jax.experimental import pallas as pl
from jax.experimental.pallas import tpu as pltpu

BN_EPS = 1e-3


# ----------------------------------------------------------------------------
# Fused Block35 kernel (one grid step == one batch element)
# ----------------------------------------------------------------------------
def block35_kernel(x_ref, w1_ref, s1_ref, b1_ref,
                   w3ab_ref, s3ab_ref, b3ab_ref,
                   w3c_ref, s3c_ref, b3c_ref,
                   wf0_ref, wf1_ref, wf2_ref, bfin_ref,
                   o_ref,
                   pad_a, pad_b,
                   *, scale, H, W):
    HW = H * W
    cdt = w1_ref.dtype                        # matmul operand dtype (f32 or bf16)

    x2d = x_ref[...]                          # (HW, 256) f32 -- also the residual
    xm = x2d.astype(cdt)

    # ---- merged branch-entry 1x1 convs (b0 | b1_0 | b2_0): one 256->96 matmul + BN + ReLU
    y = jnp.dot(xm, w1_ref[...], preferred_element_type=jnp.float32)
    y = jnp.maximum(y * s1_ref[...] + b1_ref[...], 0.0)           # (HW, 96) f32

    def conv3x3_bn_relu(pad_ref, inp_2d, w_ref, s_ref, b_ref):
        """'same' 3x3 conv via on-chip zero padding + 9 MXU taps, then folded BN + ReLU."""
        Cin = pad_ref.shape[-1]
        Cout = w_ref.shape[-1]
        # zero the padded scratch, then write the interior (halo stays zero)
        pad_ref[...] = jnp.zeros((H + 2, W + 2, Cin), jnp.float32)
        pad_ref[1:H + 1, 1:W + 1, :] = inp_2d.reshape(H, W, Cin)
        acc = jnp.zeros((HW, Cout), jnp.float32)
        for dh in range(3):                   # static unroll -> 9 matmuls, K = Cin (64/96)
            for dw in range(3):
                patch = pad_ref[dh:dh + H, dw:dw + W, :].reshape(HW, Cin)
                acc = acc + jnp.dot(patch.astype(cdt), w_ref[dh, dw],
                                    preferred_element_type=jnp.float32)
        return jnp.maximum(acc * s_ref[...] + b_ref[...], 0.0)

    # ---- branch1's 3x3 and branch2's first 3x3 fused: 96 -> 64 (zero-expanded K)
    #      v[:,  0:32] == x1 (branch1 output), v[:, 32:64] == branch2 intermediate
    v = conv3x3_bn_relu(pad_a, y, w3ab_ref, s3ab_ref, b3ab_ref)    # (HW, 64)
    # ---- branch2's second 3x3: 64 -> 32 (only input channels 32:64 carry weight)
    x2 = conv3x3_bn_relu(pad_b, v, w3c_ref, s3c_ref, b3c_ref)      # (HW, 32)

    # ---- final 1x1 on cat(x0, x1, x2) as 3 accumulated matmuls (zero-expanded wf),
    #      + bias, * scale, + residual, ReLU -> single lane-dense (HW, 256) store
    acc = jnp.dot(y.astype(cdt), wf0_ref[...], preferred_element_type=jnp.float32)
    acc = acc + jnp.dot(v.astype(cdt), wf1_ref[...], preferred_element_type=jnp.float32)
    acc = acc + jnp.dot(x2.astype(cdt), wf2_ref[...], preferred_element_type=jnp.float32)
    out = (acc + bfin_ref[...]) * scale + x2d
    o_ref[...] = jnp.maximum(out, 0.0).astype(o_ref.dtype)


# ----------------------------------------------------------------------------
# pallas_call wrapper
# ----------------------------------------------------------------------------
@functools.partial(jax.jit, static_argnames=("scale",))
def block35_forward(x_nchw, packed, scale=1.0):
    (w1, s1, b1, w3ab, s3ab, b3ab, w3c, s3c, b3c, wf0, wf1, wf2, bfin) = packed

    x = jnp.transpose(x_nchw, (0, 2, 3, 1)).astype(jnp.float32)    # NCHW -> NHWC
    N, H, W, C = x.shape
    HW = H * W
    x3 = x.reshape(N, HW, C)

    flops = 2 * N * HW * (C * 96 + 9 * 96 * 64 + 9 * 64 * 32 + (96 + 64 + 32) * C)
    wbytes = sum(int(a.size) * a.dtype.itemsize for a in packed)
    bytes_accessed = 2 * N * HW * C * 4 + wbytes

    out = pl.pallas_call(
        functools.partial(block35_kernel, scale=scale, H=H, W=W),
        out_shape=jax.ShapeDtypeStruct((N, HW, C), jnp.float32),
        grid=(N,),
        in_specs=[
            pl.BlockSpec((None, HW, C), lambda n: (n, 0, 0)),       # x (one image)
            pl.BlockSpec(w1.shape, lambda n: (0, 0)),               # merged 1x1 weight
            pl.BlockSpec(s1.shape, lambda n: (0, 0)),
            pl.BlockSpec(b1.shape, lambda n: (0, 0)),
            pl.BlockSpec(w3ab.shape, lambda n: (0, 0, 0, 0)),       # fused 3x3 (96->64)
            pl.BlockSpec(s3ab.shape, lambda n: (0, 0)),
            pl.BlockSpec(b3ab.shape, lambda n: (0, 0)),
            pl.BlockSpec(w3c.shape, lambda n: (0, 0, 0, 0)),        # 3x3 (64->32)
            pl.BlockSpec(s3c.shape, lambda n: (0, 0)),
            pl.BlockSpec(b3c.shape, lambda n: (0, 0)),
            pl.BlockSpec(wf0.shape, lambda n: (0, 0)),              # final 1x1 pieces
            pl.BlockSpec(wf1.shape, lambda n: (0, 0)),
            pl.BlockSpec(wf2.shape, lambda n: (0, 0)),
            pl.BlockSpec(bfin.shape, lambda n: (0, 0)),
        ],
        out_specs=pl.BlockSpec((None, HW, C), lambda n: (n, 0, 0)),
        scratch_shapes=[
            pltpu.VMEM((H + 2, W + 2, 96), jnp.float32),   # padded merged 1x1 output
            pltpu.VMEM((H + 2, W + 2, 64), jnp.float32),   # padded fused-3x3 output
        ],
        compiler_params=pltpu.CompilerParams(dimension_semantics=("parallel",)),
        cost_estimate=pl.CostEstimate(flops=flops, transcendentals=0,
                                      bytes_accessed=bytes_accessed),
    )(x3, w1, s1, b1, w3ab, s3ab, b3ab, w3c, s3c, b3c, wf0, wf1, wf2, bfin)

    return jnp.transpose(out.reshape(N, H, W, C), (0, 3, 1, 2))    # NHWC -> NCHW


# ----------------------------------------------------------------------------
# Parameter initialization (deterministic, synthetic) + kernel-side packing
# ----------------------------------------------------------------------------
def init_basic_conv(key, kh, kw, cin, cout):
    kw_, kg, kb, km, kv = jax.random.split(key, 5)
    w = jax.random.normal(kw_, (kh, kw, cin, cout), jnp.float32) * 0.05
    gamma = 1.0 + 0.1 * jax.random.normal(kg, (cout,), jnp.float32)
    beta = 0.1 * jax.random.normal(kb, (cout,), jnp.float32)
    r_mean = 0.1 * jax.random.normal(km, (cout,), jnp.float32)
    r_var = 0.9 + 0.1 * jnp.abs(jax.random.normal(kv, (cout,), jnp.float32))
    s = gamma / jnp.sqrt(r_var + BN_EPS)            # folded BN scale (inference)
    b = beta - r_mean * s                           # folded BN bias
    if kh == 1 and kw == 1:
        w = w.reshape(cin, cout)
    return w, s.reshape(1, cout), b.reshape(1, cout)


def init_block35(key):
    keys = jax.random.split(key, 8)
    params = {
        "b0":   init_basic_conv(keys[0], 1, 1, 256, 32),
        "b1_0": init_basic_conv(keys[1], 1, 1, 256, 32),
        "b1_1": init_basic_conv(keys[2], 3, 3, 32, 32),
        "b2_0": init_basic_conv(keys[3], 1, 1, 256, 32),
        "b2_1": init_basic_conv(keys[4], 3, 3, 32, 32),
        "b2_2": init_basic_conv(keys[5], 3, 3, 32, 32),
    }
    wf = jax.random.normal(keys[6], (96, 256), jnp.float32) * 0.05
    bf = 0.1 * jax.random.normal(keys[7], (256,), jnp.float32)
    params["conv2d"] = (wf, bf.reshape(1, 256))
    return params


def pack_block35_params(params, compute_dtype=jnp.float32):
    """Merge / zero-expand the per-branch parameters into the fused-kernel operands."""
    cd = compute_dtype
    f32 = jnp.float32
    z32 = jnp.zeros((3, 3, 32, 32), f32)

    w0, s0, b0 = params["b0"]
    wa, sa, ba = params["b1_0"]
    wb, sb, bb = params["b2_0"]
    w1 = jnp.concatenate([w0, wa, wb], axis=1).astype(cd)          # (256, 96)
    s1 = jnp.concatenate([s0, sa, sb], axis=1)                     # (1, 96)
    b1 = jnp.concatenate([b0, ba, bb], axis=1)

    w11, s11, b11 = params["b1_1"]                                 # branch1 3x3
    w21, s21, b21 = params["b2_1"]                                 # branch2 first 3x3
    # zero-expand Cin so both convs read the full 96-wide merged 1x1 activation
    w3ab = jnp.concatenate(
        [jnp.concatenate([z32, w11, z32], axis=2),                 # -> out ch 0:32 (x1)
         jnp.concatenate([z32, z32, w21], axis=2)],                # -> out ch 32:64
        axis=3).astype(cd)                                         # (3, 3, 96, 64)
    s3ab = jnp.concatenate([s11, s21], axis=1)                     # (1, 64)
    b3ab = jnp.concatenate([b11, b21], axis=1)

    w22, s22, b22 = params["b2_2"]                                 # branch2 second 3x3
    w3c = jnp.concatenate([z32, w22], axis=2).astype(cd)           # (3, 3, 64, 32)

    wf, bfin = params["conv2d"]                                    # (96, 256), (1, 256)
    wf0 = jnp.concatenate([wf[0:32], jnp.zeros((64, 256), f32)], axis=0).astype(cd)  # vs y
    wf1 = jnp.concatenate([wf[32:64], jnp.zeros((32, 256), f32)], axis=0).astype(cd) # vs v
    wf2 = wf[64:96].astype(cd)                                                       # vs x2

    return (w1, s1, b1, w3ab, s3ab, b3ab, w3c, s22, b22, wf0, wf1, wf2, bfin)


# ----------------------------------------------------------------------------
# Pure-JAX reference (full f32 precision, for correctness check)
# ----------------------------------------------------------------------------
def ref_block35(x_nchw, params, scale=1.0):
    hi = jax.lax.Precision.HIGHEST
    x = jnp.transpose(x_nchw, (0, 2, 3, 1)).astype(jnp.float32)

    def bconv1(x, p):
        w, s, b = p
        y = jnp.einsum("nhwc,co->nhwo", x, w, precision=hi)
        y = y * s.reshape(1, 1, 1, -1) + b.reshape(1, 1, 1, -1)
        return jnp.maximum(y, 0.0)

    def bconv3(x, p):
        w, s, b = p
        y = jax.lax.conv_general_dilated(
            x, w, (1, 1), "SAME",
            dimension_numbers=("NHWC", "HWIO", "NHWC"), precision=hi)
        y = y * s.reshape(1, 1, 1, -1) + b.reshape(1, 1, 1, -1)
        return jnp.maximum(y, 0.0)

    x0 = bconv1(x, params["b0"])
    x1 = bconv3(bconv1(x, params["b1_0"]), params["b1_1"])
    x2 = bconv3(bconv3(bconv1(x, params["b2_0"]), params["b2_1"]), params["b2_2"])
    cat = jnp.concatenate([x0, x1, x2], axis=-1)
    wf, bf = params["conv2d"]
    y = jnp.einsum("nhwc,co->nhwo", cat, wf, precision=hi) + bf.reshape(1, 1, 1, -1)
    out = jnp.maximum(y * scale + x, 0.0)
    return jnp.transpose(out, (0, 3, 1, 2))


# ----------------------------------------------------------------------------
if __name__ == "__main__":
    key = jax.random.PRNGKey(0)
    kx, kp = jax.random.split(key)

    N, C, H, W = 2, 256, 8, 8              # module requires 256 input channels
    x = jax.random.normal(kx, (N, C, H, W), jnp.float32)
    params = init_block35(kp)
    scale = 0.17

    ref = jax.block_until_ready(ref_block35(x, params, scale=scale))

    # f32 MXU operands (matches the PyTorch module's numerics)
    packed_f32 = pack_block35_params(params, jnp.float32)
    out_f32 = jax.block_until_ready(block35_forward(x, packed_f32, scale=scale))
    assert out_f32.shape == (N, C, H, W)
    err = float(jnp.max(jnp.abs(out_f32 - ref)))
    assert jnp.allclose(out_f32, ref, atol=2e-3, rtol=2e-3), err

    # bf16 MXU operands (v6e/v7x fast path), f32 accumulation + f32 epilogue
    packed_bf16 = pack_block35_params(params, jnp.bfloat16)
    out_bf16 = jax.block_until_ready(block35_forward(x, packed_bf16, scale=scale))
    err_bf = float(jnp.max(jnp.abs(out_bf16 - ref)))
    assert jnp.allclose(out_bf16, ref, atol=5e-2, rtol=5e-2), err_bf

    print("KERNEL_OK")
</pallas_src>

<mosaic_0001>
module attributes {stable_mosaic.version = 11 : i64} {
  func.func @block35_kernel(%arg0: i32, %arg1: memref<1x64x256xf32, #tpu.memory_space<vmem>>, %arg2: memref<256x96xf32, #tpu.memory_space<vmem>>, %arg3: memref<1x96xf32, #tpu.memory_space<vmem>>, %arg4: memref<1x96xf32, #tpu.memory_space<vmem>>, %arg5: memref<3x3x96x64xf32, #tpu.memory_space<vmem>>, %arg6: memref<1x64xf32, #tpu.memory_space<vmem>>, %arg7: memref<1x64xf32, #tpu.memory_space<vmem>>, %arg8: memref<3x3x64x32xf32, #tpu.memory_space<vmem>>, %arg9: memref<1x32xf32, #tpu.memory_space<vmem>>, %arg10: memref<1x32xf32, #tpu.memory_space<vmem>>, %arg11: memref<96x256xf32, #tpu.memory_space<vmem>>, %arg12: memref<64x256xf32, #tpu.memory_space<vmem>>, %arg13: memref<32x256xf32, #tpu.memory_space<vmem>>, %arg14: memref<1x256xf32, #tpu.memory_space<vmem>>, %arg15: memref<1x64x256xf32, #tpu.memory_space<vmem>>, %arg16: memref<10x10x96xf32, #tpu.memory_space<vmem>>, %arg17: memref<10x10x64xf32, #tpu.memory_space<vmem>>) attributes {dimension_semantics = [#tpu.dimension_semantics<parallel>], iteration_bounds = array<i64: 2>, scalar_prefetch = 0 : i64, scratch_operands = 2 : i64, tpu.core_type = #tpu.core_type<tc>, window_params = [{transform_indices = @transform_0, window_bounds = array<i64: 1, 64, 256>}, {pipeline_mode = #tpu.pipeline_mode<synchronous>, transform_indices = @transform_1, window_bounds = array<i64: 256, 96>}, {pipeline_mode = #tpu.pipeline_mode<synchronous>, transform_indices = @transform_2, window_bounds = array<i64: 1, 96>}, {pipeline_mode = #tpu.pipeline_mode<synchronous>, transform_indices = @transform_3, window_bounds = array<i64: 1, 96>}, {pipeline_mode = #tpu.pipeline_mode<synchronous>, transform_indices = @transform_4, window_bounds = array<i64: 3, 3, 96, 64>}, {pipeline_mode = #tpu.pipeline_mode<synchronous>, transform_indices = @transform_5, window_bounds = array<i64: 1, 64>}, {pipeline_mode = #tpu.pipeline_mode<synchronous>, transform_indices = @transform_6, window_bounds = array<i64: 1, 64>}, {pipeline_mode = #tpu.pipeline_mode<synchronous>, transform_indices = @transform_7, window_bounds = array<i64: 3, 3, 64, 32>}, {pipeline_mode = #tpu.pipeline_mode<synchronous>, transform_indices = @transform_8, window_bounds = array<i64: 1, 32>}, {pipeline_mode = #tpu.pipeline_mode<synchronous>, transform_indices = @transform_9, window_bounds = array<i64: 1, 32>}, {pipeline_mode = #tpu.pipeline_mode<synchronous>, transform_indices = @transform_10, window_bounds = array<i64: 96, 256>}, {pipeline_mode = #tpu.pipeline_mode<synchronous>, transform_indices = @transform_11, window_bounds = array<i64: 64, 256>}, {pipeline_mode = #tpu.pipeline_mode<synchronous>, transform_indices = @transform_12, window_bounds = array<i64: 32, 256>}, {pipeline_mode = #tpu.pipeline_mode<synchronous>, transform_indices = @transform_13, window_bounds = array<i64: 1, 256>}, {transform_indices = @transform_14, window_bounds = array<i64: 1, 64, 256>}]} {
    %c0 = arith.constant 0 : index
    %c0_0 = arith.constant 0 : index
    %c0_1 = arith.constant 0 : index
    %0 = vector.load %arg1[%c0, %c0_0, %c0_1] : memref<1x64x256xf32, #tpu.memory_space<vmem>>, vector<1x64x256xf32>
    %1 = vector.shape_cast %0 : vector<1x64x256xf32> to vector<64x256xf32>
    %c0_2 = arith.constant 0 : index
    %c0_3 = arith.constant 0 : index
    %2 = vector.load %arg2[%c0_2, %c0_3] : memref<256x96xf32, #tpu.memory_space<vmem>>, vector<256x96xf32>
    %cst = arith.constant dense<0.000000e+00> : vector<64x96xf32>
    %3 = tpu.matmul %1, %2, %cst {dimension_numbers = #tpu.dot_dimension_numbers<[1], [0], [0], [1], [0, 0, 1, 1], [], []>} : vector<64x256xf32>, vector<256x96xf32>, vector<64x96xf32> -> vector<64x96xf32>
    %c0_4 = arith.constant 0 : index
    %c0_5 = arith.constant 0 : index
    %4 = vector.load %arg3[%c0_4, %c0_5] : memref<1x96xf32, #tpu.memory_space<vmem>>, vector<1x96xf32>
    %5 = vector.broadcast %4 : vector<1x96xf32> to vector<64x96xf32>
    %6 = arith.mulf %3, %5 : vector<64x96xf32>
    %c0_6 = arith.constant 0 : index
    %c0_7 = arith.constant 0 : index
    %7 = vector.load %arg4[%c0_6, %c0_7] : memref<1x96xf32, #tpu.memory_space<vmem>>, vector<1x96xf32>
    %8 = vector.broadcast %7 : vector<1x96xf32> to vector<64x96xf32>
    %9 = arith.addf %6, %8 : vector<64x96xf32>
    %cst_8 = arith.constant 0.000000e+00 : f32
    %10 = vector.broadcast %cst_8 : f32 to vector<64x96xf32>
    %11 = arith.maximumf %9, %10 : vector<64x96xf32>
    %cst_9 = arith.constant 0.000000e+00 : f32
    %12 = vector.broadcast %cst_9 : f32 to vector<10x10x96xf32>
    %c0_10 = arith.constant 0 : index
    %c0_11 = arith.constant 0 : index
    %c0_12 = arith.constant 0 : index
    %13 = vector.load %arg16[%c0_10, %c0_11, %c0_12] : memref<10x10x96xf32, #tpu.memory_space<vmem>>, vector<10x10x96xf32>
    tpu.vector_store %arg16[%c0_10, %c0_11, %c0_12], %12 {strides = array<i32>} : memref<10x10x96xf32, #tpu.memory_space<vmem>>, vector<10x10x96xf32>,
    %14 = vector.shape_cast %11 : vector<64x96xf32> to vector<8x8x96xf32>
    %c1 = arith.constant 1 : index
    %c1_13 = arith.constant 1 : index
    %c0_14 = arith.constant 0 : index
    %15 = vector.load %arg16[%c1, %c1_13, %c0_14] : memref<10x10x96xf32, #tpu.memory_space<vmem>>, vector<8x8x96xf32>
    tpu.vector_store %arg16[%c1, %c1_13, %c0_14], %14 {strides = array<i32>} : memref<10x10x96xf32, #tpu.memory_space<vmem>>, vector<8x8x96xf32>,
    %cst_15 = arith.constant 0.000000e+00 : f32
    %16 = vector.broadcast %cst_15 : f32 to vector<64x64xf32>
    %c0_16 = arith.constant 0 : index
    %c0_17 = arith.constant 0 : index
    %c0_18 = arith.constant 0 : index
    %17 = vector.load %arg16[%c0_16, %c0_17, %c0_18] : memref<10x10x96xf32, #tpu.memory_space<vmem>>, vector<8x8x96xf32>
    %18 = vector.shape_cast %17 : vector<8x8x96xf32> to vector<64x96xf32>
    %c0_19 = arith.constant 0 : index
    %c0_20 = arith.constant 0 : index
    %c0_21 = arith.constant 0 : index
    %c0_22 = arith.constant 0 : index
    %19 = vector.load %arg5[%c0_19, %c0_20, %c0_21, %c0_22] : memref<3x3x96x64xf32, #tpu.memory_space<vmem>>, vector<1x1x96x64xf32>
    %20 = vector.shape_cast %19 : vector<1x1x96x64xf32> to vector<96x64xf32>
    %cst_23 = arith.constant dense<0.000000e+00> : vector<64x64xf32>
    %21 = tpu.matmul %18, %20, %cst_23 {dimension_numbers = #tpu.dot_dimension_numbers<[1], [0], [0], [1], [0, 0, 1, 1], [], []>} : vector<64x96xf32>, vector<96x64xf32>, vector<64x64xf32> -> vector<64x64xf32>
    %22 = arith.addf %16, %21 : vector<64x64xf32>
    %c0_24 = arith.constant 0 : index
    %c1_25 = arith.constant 1 : index
    %c0_26 = arith.constant 0 : index
    %23 = vector.load %arg16[%c0_24, %c1_25, %c0_26] : memref<10x10x96xf32, #tpu.memory_space<vmem>>, vector<8x8x96xf32>
    %24 = vector.shape_cast %23 : vector<8x8x96xf32> to vector<64x96xf32>
    %c0_27 = arith.constant 0 : index
    %c1_28 = arith.constant 1 : index
    %c0_29 = arith.constant 0 : index
    %c0_30 = arith.constant 0 : index
    %25 = vector.load %arg5[%c0_27, %c1_28, %c0_29, %c0_30] : memref<3x3x96x64xf32, #tpu.memory_space<vmem>>, vector<1x1x96x64xf32>
    %26 = vector.shape_cast %25 : vector<1x1x96x64xf32> to vector<96x64xf32>
    %cst_31 = arith.constant dense<0.000000e+00> : vector<64x64xf32>
    %27 = tpu.matmul %24, %26, %cst_31 {dimension_numbers = #tpu.dot_dimension_numbers<[1], [0], [0], [1], [0, 0, 1, 1], [], []>} : vector<64x96xf32>, vector<96x64xf32>, vector<64x64xf32> -> vector<64x64xf32>
    %28 = arith.addf %22, %27 : vector<64x64xf32>
    %c0_32 = arith.constant 0 : index
    %c2 = arith.constant 2 : index
    %c0_33 = arith.constant 0 : index
    %29 = vector.load %arg16[%c0_32, %c2, %c0_33] : memref<10x10x96xf32, #tpu.memory_space<vmem>>, vector<8x8x96xf32>
    %30 = vector.shape_cast %29 : vector<8x8x96xf32> to vector<64x96xf32>
    %c0_34 = arith.constant 0 : index
    %c2_35 = arith.constant 2 : index
    %c0_36 = arith.constant 0 : index
    %c0_37 = arith.constant 0 : index
    %31 = vector.load %arg5[%c0_34, %c2_35, %c0_36, %c0_37] : memref<3x3x96x64xf32, #tpu.memory_space<vmem>>, vector<1x1x96x64xf32>
    %32 = vector.shape_cast %31 : vector<1x1x96x64xf32> to vector<96x64xf32>
    %cst_38 = arith.constant dense<0.000000e+00> : vector<64x64xf32>
    %33 = tpu.matmul %30, %32, %cst_38 {dimension_numbers = #tpu.dot_dimension_numbers<[1], [0], [0], [1], [0, 0, 1, 1], [], []>} : vector<64x96xf32>, vector<96x64xf32>, vector<64x64xf32> -> vector<64x64xf32>
    %34 = arith.addf %28, %33 : vector<64x64xf32>
    %c1_39 = arith.constant 1 : index
    %c0_40 = arith.constant 0 : index
    %c0_41 = arith.constant 0 : index
    %35 = vector.load %arg16[%c1_39, %c0_40, %c0_41] : memref<10x10x96xf32, #tpu.memory_space<vmem>>, vector<8x8x96xf32>
    %36 = vector.shape_cast %35 : vector<8x8x96xf32> to vector<64x96xf32>
    %c1_42 = arith.constant 1 : index
    %c0_43 = arith.constant 0 : index
    %c0_44 = arith.constant 0 : index
    %c0_45 = arith.constant 0 : index
    %37 = vector.load %arg5[%c1_42, %c0_43, %c0_44, %c0_45] : memref<3x3x96x64xf32, #tpu.memory_space<vmem>>, vector<1x1x96x64xf32>
    %38 = vector.shape_cast %37 : vector<1x1x96x64xf32> to vector<96x64xf32>
    %cst_46 = arith.constant dense<0.000000e+00> : vector<64x64xf32>
    %39 = tpu.matmul %36, %38, %cst_46 {dimension_numbers = #tpu.dot_dimension_numbers<[1], [0], [0], [1], [0, 0, 1, 1], [], []>} : vector<64x96xf32>, vector<96x64xf32>, vector<64x64xf32> -> vector<64x64xf32>
    %40 = arith.addf %34, %39 : vector<64x64xf32>
    %c1_47 = arith.constant 1 : index
    %c1_48 = arith.constant 1 : index
    %c0_49 = arith.constant 0 : index
    %41 = vector.load %arg16[%c1_47, %c1_48, %c0_49] : memref<10x10x96xf32, #tpu.memory_space<vmem>>, vector<8x8x96xf32>
    %42 = vector.shape_cast %41 : vector<8x8x96xf32> to vector<64x96xf32>
    %c1_50 = arith.constant 1 : index
    %c1_51 = arith.constant 1 : index
    %c0_52 = arith.constant 0 : index
    %c0_53 = arith.constant 0 : index
    %43 = vector.load %arg5[%c1_50, %c1_51, %c0_52, %c0_53] : memref<3x3x96x64xf32, #tpu.memory_space<vmem>>, vector<1x1x96x64xf32>
    %44 = vector.shape_cast %43 : vector<1x1x96x64xf32> to vector<96x64xf32>
    %cst_54 = arith.constant dense<0.000000e+00> : vector<64x64xf32>
    %45 = tpu.matmul %42, %44, %cst_54 {dimension_numbers = #tpu.dot_dimension_numbers<[1], [0], [0], [1], [0, 0, 1, 1], [], []>} : vector<64x96xf32>, vector<96x64xf32>, vector<64x64xf32> -> vector<64x64xf32>
    %46 = arith.addf %40, %45 : vector<64x64xf32>
    %c1_55 = arith.constant 1 : index
    %c2_56 = arith.constant 2 : index
    %c0_57 = arith.constant 0 : index
    %47 = vector.load %arg16[%c1_55, %c2_56, %c0_57] : memref<10x10x96xf32, #tpu.memory_space<vmem>>, vector<8x8x96xf32>
    %48 = vector.shape_cast %47 : vector<8x8x96xf32> to vector<64x96xf32>
    %c1_58 = arith.constant 1 : index
    %c2_59 = arith.constant 2 : index
    %c0_60 = arith.constant 0 : index
    %c0_61 = arith.constant 0 : index
    %49 = vector.load %arg5[%c1_58, %c2_59, %c0_60, %c0_61] : memref<3x3x96x64xf32, #tpu.memory_space<vmem>>, vector<1x1x96x64xf32>
    %50 = vector.shape_cast %49 : vector<1x1x96x64xf32> to vector<96x64xf32>
    %cst_62 = arith.constant dense<0.000000e+00> : vector<64x64xf32>
    %51 = tpu.matmul %48, %50, %cst_62 {dimension_numbers = #tpu.dot_dimension_numbers<[1], [0], [0], [1], [0, 0, 1, 1], [], []>} : vector<64x96xf32>, vector<96x64xf32>, vector<64x64xf32> -> vector<64x64xf32>
    %52 = arith.addf %46, %51 : vector<64x64xf32>
    %c2_63 = arith.constant 2 : index
    %c0_64 = arith.constant 0 : index
    %c0_65 = arith.constant 0 : index
    %53 = vector.load %arg16[%c2_63, %c0_64, %c0_65] : memref<10x10x96xf32, #tpu.memory_space<vmem>>, vector<8x8x96xf32>
    %54 = vector.shape_cast %53 : vector<8x8x96xf32> to vector<64x96xf32>
    %c2_66 = arith.constant 2 : index
    %c0_67 = arith.constant 0 : index
    %c0_68 = arith.constant 0 : index
    %c0_69 = arith.constant 0 : index
    %55 = vector.load %arg5[%c2_66, %c0_67, %c0_68, %c0_69] : memref<3x3x96x64xf32, #tpu.memory_space<vmem>>, vector<1x1x96x64xf32>
    %56 = vector.shape_cast %55 : vector<1x1x96x64xf32> to vector<96x64xf32>
    %cst_70 = arith.constant dense<0.000000e+00> : vector<64x64xf32>
    %57 = tpu.matmul %54, %56, %cst_70 {dimension_numbers = #tpu.dot_dimension_numbers<[1], [0], [0], [1], [0, 0, 1, 1], [], []>} : vector<64x96xf32>, vector<96x64xf32>, vector<64x64xf32> -> vector<64x64xf32>
    %58 = arith.addf %52, %57 : vector<64x64xf32>
    %c2_71 = arith.constant 2 : index
    %c1_72 = arith.constant 1 : index
    %c0_73 = arith.constant 0 : index
    %59 = vector.load %arg16[%c2_71, %c1_72, %c0_73] : memref<10x10x96xf32, #tpu.memory_space<vmem>>, vector<8x8x96xf32>
    %60 = vector.shape_cast %59 : vector<8x8x96xf32> to vector<64x96xf32>
    %c2_74 = arith.constant 2 : index
    %c1_75 = arith.constant 1 : index
    %c0_76 = arith.constant 0 : index
    %c0_77 = arith.constant 0 : index
    %61 = vector.load %arg5[%c2_74, %c1_75, %c0_76, %c0_77] : memref<3x3x96x64xf32, #tpu.memory_space<vmem>>, vector<1x1x96x64xf32>
    %62 = vector.shape_cast %61 : vector<1x1x96x64xf32> to vector<96x64xf32>
    %cst_78 = arith.constant dense<0.000000e+00> : vector<64x64xf32>
    %63 = tpu.matmul %60, %62, %cst_78 {dimension_numbers = #tpu.dot_dimension_numbers<[1], [0], [0], [1], [0, 0, 1, 1], [], []>} : vector<64x96xf32>, vector<96x64xf32>, vector<64x64xf32> -> vector<64x64xf32>
    %64 = arith.addf %58, %63 : vector<64x64xf32>
    %c2_79 = arith.constant 2 : index
    %c2_80 = arith.constant 2 : index
    %c0_81 = arith.constant 0 : index
    %65 = vector.load %arg16[%c2_79, %c2_80, %c0_81] : memref<10x10x96xf32, #tpu.memory_space<vmem>>, vector<8x8x96xf32>
    %66 = vector.shape_cast %65 : vector<8x8x96xf32> to vector<64x96xf32>
    %c2_82 = arith.constant 2 : index
    %c2_83 = arith.constant 2 : index
    %c0_84 = arith.constant 0 : index
    %c0_85 = arith.constant 0 : index
    %67 = vector.load %arg5[%c2_82, %c2_83, %c0_84, %c0_85] : memref<3x3x96x64xf32, #tpu.memory_space<vmem>>, vector<1x1x96x64xf32>
    %68 = vector.shape_cast %67 : vector<1x1x96x64xf32> to vector<96x64xf32>
    %cst_86 = arith.constant dense<0.000000e+00> : vector<64x64xf32>
    %69 = tpu.matmul %66, %68, %cst_86 {dimension_numbers = #tpu.dot_dimension_numbers<[1], [0], [0], [1], [0, 0, 1, 1], [], []>} : vector<64x96xf32>, vector<96x64xf32>, vector<64x64xf32> -> vector<64x64xf32>
    %70 = arith.addf %64, %69 : vector<64x64xf32>
    %c0_87 = arith.constant 0 : index
    %c0_88 = arith.constant 0 : index
    %71 = vector.load %arg6[%c0_87, %c0_88] : memref<1x64xf32, #tpu.memory_space<vmem>>, vector<1x64xf32>
    %72 = vector.broadcast %71 : vector<1x64xf32> to vector<64x64xf32>
    %73 = arith.mulf %70, %72 : vector<64x64xf32>
    %c0_89 = arith.constant 0 : index
    %c0_90 = arith.constant 0 : index
    %74 = vector.load %arg7[%c0_89, %c0_90] : memref<1x64xf32, #tpu.memory_space<vmem>>, vector<1x64xf32>
    %75 = vector.broadcast %74 : vector<1x64xf32> to vector<64x64xf32>
    %76 = arith.addf %73, %75 : vector<64x64xf32>
    %cst_91 = arith.constant 0.000000e+00 : f32
    %77 = vector.broadcast %cst_91 : f32 to vector<64x64xf32>
    %78 = arith.maximumf %76, %77 : vector<64x64xf32>
    %cst_92 = arith.constant 0.000000e+00 : f32
    %79 = vector.broadcast %cst_92 : f32 to vector<10x10x64xf32>
    %c0_93 = arith.constant 0 : index
    %c0_94 = arith.constant 0 : index
    %c0_95 = arith.constant 0 : index
    %80 = vector.load %arg17[%c0_93, %c0_94, %c0_95] : memref<10x10x64xf32, #tpu.memory_space<vmem>>, vector<10x10x64xf32>
    tpu.vector_store %arg17[%c0_93, %c0_94, %c0_95], %79 {strides = array<i32>} : memref<10x10x64xf32, #tpu.memory_space<vmem>>, vector<10x10x64xf32>,
    %81 = vector.shape_cast %78 : vector<64x64xf32> to vector<8x8x64xf32>
    %c1_96 = arith.constant 1 : index
    %c1_97 = arith.constant 1 : index
    %c0_98 = arith.constant 0 : index
    %82 = vector.load %arg17[%c1_96, %c1_97, %c0_98] : memref<10x10x64xf32, #tpu.memory_space<vmem>>, vector<8x8x64xf32>
    tpu.vector_store %arg17[%c1_96, %c1_97, %c0_98], %81 {strides = array<i32>} : memref<10x10x64xf32, #tpu.memory_space<vmem>>, vector<8x8x64xf32>,
    %cst_99 = arith.constant 0.000000e+00 : f32
    %83 = vector.broadcast %cst_99 : f32 to vector<64x32xf32>
    %c0_100 = arith.constant 0 : index
    %c0_101 = arith.constant 0 : index
    %c0_102 = arith.constant 0 : index
    %84 = vector.load %arg17[%c0_100, %c0_101, %c0_102] : memref<10x10x64xf32, #tpu.memory_space<vmem>>, vector<8x8x64xf32>
    %85 = vector.shape_cast %84 : vector<8x8x64xf32> to vector<64x64xf32>
    %c0_103 = arith.constant 0 : index
    %c0_104 = arith.constant 0 : index
    %c0_105 = arith.constant 0 : index
    %c0_106 = arith.constant 0 : index
    %86 = vector.load %arg8[%c0_103, %c0_104, %c0_105, %c0_106] : memref<3x3x64x32xf32, #tpu.memory_space<vmem>>, vector<1x1x64x32xf32>
    %87 = vector.shape_cast %86 : vector<1x1x64x32xf32> to vector<64x32xf32>
    %cst_107 = arith.constant dense<0.000000e+00> : vector<64x32xf32>
    %88 = tpu.matmul %85, %87, %cst_107 {dimension_numbers = #tpu.dot_dimension_numbers<[1], [0], [0], [1], [0, 0, 1, 1], [], []>} : vector<64x64xf32>, vector<64x32xf32>, vector<64x32xf32> -> vector<64x32xf32>
    %89 = arith.addf %83, %88 : vector<64x32xf32>
    %c0_108 = arith.constant 0 : index
    %c1_109 = arith.constant 1 : index
    %c0_110 = arith.constant 0 : index
    %90 = vector.load %arg17[%c0_108, %c1_109, %c0_110] : memref<10x10x64xf32, #tpu.memory_space<vmem>>, vector<8x8x64xf32>
    %91 = vector.shape_cast %90 : vector<8x8x64xf32> to vector<64x64xf32>
    %c0_111 = arith.constant 0 : index
    %c1_112 = arith.constant 1 : index
    %c0_113 = arith.constant 0 : index
    %c0_114 = arith.constant 0 : index
    %92 = vector.load %arg8[%c0_111, %c1_112, %c0_113, %c0_114] : memref<3x3x64x32xf32, #tpu.memory_space<vmem>>, vector<1x1x64x32xf32>
    %93 = vector.shape_cast %92 : vector<1x1x64x32xf32> to vector<64x32xf32>
    %cst_115 = arith.constant dense<0.000000e+00> : vector<64x32xf32>
    %94 = tpu.matmul %91, %93, %cst_115 {dimension_numbers = #tpu.dot_dimension_numbers<[1], [0], [0], [1], [0, 0, 1, 1], [], []>} : vector<64x64xf32>, vector<64x32xf32>, vector<64x32xf32> -> vector<64x32xf32>
    %95 = arith.addf %89, %94 : vector<64x32xf32>
    %c0_116 = arith.constant 0 : index
    %c2_117 = arith.constant 2 : index
    %c0_118 = arith.constant 0 : index
    %96 = vector.load %arg17[%c0_116, %c2_117, %c0_118] : memref<10x10x64xf32, #tpu.memory_space<vmem>>, vector<8x8x64xf32>
    %97 = vector.shape_cast %96 : vector<8x8x64xf32> to vector<64x64xf32>
    %c0_119 = arith.constant 0 : index
    %c2_120 = arith.constant 2 : index
    %c0_121 = arith.constant 0 : index
    %c0_122 = arith.constant 0 : index
    %98 = vector.load %arg8[%c0_119, %c2_120, %c0_121, %c0_122] : memref<3x3x64x32xf32, #tpu.memory_space<vmem>>, vector<1x1x64x32xf32>
    %99 = vector.shape_cast %98 : vector<1x1x64x32xf32> to vector<64x32xf32>
    %cst_123 = arith.constant dense<0.000000e+00> : vector<64x32xf32>
    %100 = tpu.matmul %97, %99, %cst_123 {dimension_numbers = #tpu.dot_dimension_numbers<[1], [0], [0], [1], [0, 0, 1, 1], [], []>} : vector<64x64xf32>, vector<64x32xf32>, vector<64x32xf32> -> vector<64x32xf32>
    %101 = arith.addf %95, %100 : vector<64x32xf32>
    %c1_124 = arith.constant 1 : index
    %c0_125 = arith.constant 0 : index
    %c0_126 = arith.constant 0 : index
    %102 = vector.load %arg17[%c1_124, %c0_125, %c0_126] : memref<10x10x64xf32, #tpu.memory_space<vmem>>, vector<8x8x64xf32>
    %103 = vector.shape_cast %102 : vector<8x8x64xf32> to vector<64x64xf32>
    %c1_127 = arith.constant 1 : index
    %c0_128 = arith.constant 0 : index
    %c0_129 = arith.constant 0 : index
    %c0_130 = arith.constant 0 : index
    %104 = vector.load %arg8[%c1_127, %c0_128, %c0_129, %c0_130] : memref<3x3x64x32xf32, #tpu.memory_space<vmem>>, vector<1x1x64x32xf32>
    %105 = vector.shape_cast %104 : vector<1x1x64x32xf32> to vector<64x32xf32>
    %cst_131 = arith.constant dense<0.000000e+00> : vector<64x32xf32>
    %106 = tpu.matmul %103, %105, %cst_131 {dimension_numbers = #tpu.dot_dimension_numbers<[1], [0], [0], [1], [0, 0, 1, 1], [], []>} : vector<64x64xf32>, vector<64x32xf32>, vector<64x32xf32> -> vector<64x32xf32>
    %107 = arith.addf %101, %106 : vector<64x32xf32>
    %c1_132 = arith.constant 1 : index
    %c1_133 = arith.constant 1 : index
    %c0_134 = arith.constant 0 : index
    %108 = vector.load %arg17[%c1_132, %c1_133, %c0_134] : memref<10x10x64xf32, #tpu.memory_space<vmem>>, vector<8x8x64xf32>
    %109 = vector.shape_cast %108 : vector<8x8x64xf32> to vector<64x64xf32>
    %c1_135 = arith.constant 1 : index
    %c1_136 = arith.constant 1 : index
    %c0_137 = arith.constant 0 : index
    %c0_138 = arith.constant 0 : index
    %110 = vector.load %arg8[%c1_135, %c1_136, %c0_137, %c0_138] : memref<3x3x64x32xf32, #tpu.memory_space<vmem>>, vector<1x1x64x32xf32>
    %111 = vector.shape_cast %110 : vector<1x1x64x32xf32> to vector<64x32xf32>
    %cst_139 = arith.constant dense<0.000000e+00> : vector<64x32xf32>
    %112 = tpu.matmul %109, %111, %cst_139 {dimension_numbers = #tpu.dot_dimension_numbers<[1], [0], [0], [1], [0, 0, 1, 1], [], []>} : vector<64x64xf32>, vector<64x32xf32>, vector<64x32xf32> -> vector<64x32xf32>
    %113 = arith.addf %107, %112 : vector<64x32xf32>
    %c1_140 = arith.constant 1 : index
    %c2_141 = arith.constant 2 : index
    %c0_142 = arith.constant 0 : index
    %114 = vector.load %arg17[%c1_140, %c2_141, %c0_142] : memref<10x10x64xf32, #tpu.memory_space<vmem>>, vector<8x8x64xf32>
    %115 = vector.shape_cast %114 : vector<8x8x64xf32> to vector<64x64xf32>
    %c1_143 = arith.constant 1 : index
    %c2_144 = arith.constant 2 : index
    %c0_145 = arith.constant 0 : index
    %c0_146 = arith.constant 0 : index
    %116 = vector.load %arg8[%c1_143, %c2_144, %c0_145, %c0_146] : memref<3x3x64x32xf32, #tpu.memory_space<vmem>>, vector<1x1x64x32xf32>
    %117 = vector.shape_cast %116 : vector<1x1x64x32xf32> to vector<64x32xf32>
    %cst_147 = arith.constant dense<0.000000e+00> : vector<64x32xf32>
    %118 = tpu.matmul %115, %117, %cst_147 {dimension_numbers = #tpu.dot_dimension_numbers<[1], [0], [0], [1], [0, 0, 1, 1], [], []>} : vector<64x64xf32>, vector<64x32xf32>, vector<64x32xf32> -> vector<64x32xf32>
    %119 = arith.addf %113, %118 : vector<64x32xf32>
    %c2_148 = arith.constant 2 : index
    %c0_149 = arith.constant 0 : index
    %c0_150 = arith.constant 0 : index
    %120 = vector.load %arg17[%c2_148, %c0_149, %c0_150] : memref<10x10x64xf32, #tpu.memory_space<vmem>>, vector<8x8x64xf32>
    %121 = vector.shape_cast %120 : vector<8x8x64xf32> to vector<64x64xf32>
    %c2_151 = arith.constant 2 : index
    %c0_152 = arith.constant 0 : index
    %c0_153 = arith.constant 0 : index
    %c0_154 = arith.constant 0 : index
    %122 = vector.load %arg8[%c2_151, %c0_152, %c0_153, %c0_154] : memref<3x3x64x32xf32, #tpu.memory_space<vmem>>, vector<1x1x64x32xf32>
    %123 = vector.shape_cast %122 : vector<1x1x64x32xf32> to vector<64x32xf32>
    %cst_155 = arith.constant dense<0.000000e+00> : vector<64x32xf32>
    %124 = tpu.matmul %121, %123, %cst_155 {dimension_numbers = #tpu.dot_dimension_numbers<[1], [0], [0], [1], [0, 0, 1, 1], [], []>} : vector<64x64xf32>, vector<64x32xf32>, vector<64x32xf32> -> vector<64x32xf32>
    %125 = arith.addf %119, %124 : vector<64x32xf32>
    %c2_156 = arith.constant 2 : index
    %c1_157 = arith.constant 1 : index
    %c0_158 = arith.constant 0 : index
    %126 = vector.load %arg17[%c2_156, %c1_157, %c0_158] : memref<10x10x64xf32, #tpu.memory_space<vmem>>, vector<8x8x64xf32>
    %127 = vector.shape_cast %126 : vector<8x8x64xf32> to vector<64x64xf32>
    %c2_159 = arith.constant 2 : index
    %c1_160 = arith.constant 1 : index
    %c0_161 = arith.constant 0 : index
    %c0_162 = arith.constant 0 : index
    %128 = vector.load %arg8[%c2_159, %c1_160, %c0_161, %c0_162] : memref<3x3x64x32xf32, #tpu.memory_space<vmem>>, vector<1x1x64x32xf32>
    %129 = vector.shape_cast %128 : vector<1x1x64x32xf32> to vector<64x32xf32>
    %cst_163 = arith.constant dense<0.000000e+00> : vector<64x32xf32>
    %130 = tpu.matmul %127, %129, %cst_163 {dimension_numbers = #tpu.dot_dimension_numbers<[1], [0], [0], [1], [0, 0, 1, 1], [], []>} : vector<64x64xf32>, vector<64x32xf32>, vector<64x32xf32> -> vector<64x32xf32>
    %131 = arith.addf %125, %130 : vector<64x32xf32>
    %c2_164 = arith.constant 2 : index
    %c2_165 = arith.constant 2 : index
    %c0_166 = arith.constant 0 : index
    %132 = vector.load %arg17[%c2_164, %c2_165, %c0_166] : memref<10x10x64xf32, #tpu.memory_space<vmem>>, vector<8x8x64xf32>
    %133 = vector.shape_cast %132 : vector<8x8x64xf32> to vector<64x64xf32>
    %c2_167 = arith.constant 2 : index
    %c2_168 = arith.constant 2 : index
    %c0_169 = arith.constant 0 : index
    %c0_170 = arith.constant 0 : index
    %134 = vector.load %arg8[%c2_167, %c2_168, %c0_169, %c0_170] : memref<3x3x64x32xf32, #tpu.memory_space<vmem>>, vector<1x1x64x32xf32>
    %135 = vector.shape_cast %134 : vector<1x1x64x32xf32> to vector<64x32xf32>
    %cst_171 = arith.constant dense<0.000000e+00> : vector<64x32xf32>
    %136 = tpu.matmul %133, %135, %cst_171 {dimension_numbers = #tpu.dot_dimension_numbers<[1], [0], [0], [1], [0, 0, 1, 1], [], []>} : vector<64x64xf32>, vector<64x32xf32>, vector<64x32xf32> -> vector<64x32xf32>
    %137 = arith.addf %131, %136 : vector<64x32xf32>
    %c0_172 = arith.constant 0 : index
    %c0_173 = arith.constant 0 : index
    %138 = vector.load %arg9[%c0_172, %c0_173] : memref<1x32xf32, #tpu.memory_space<vmem>>, vector<1x32xf32>
    %139 = vector.broadcast %138 : vector<1x32xf32> to vector<64x32xf32>
    %140 = arith.mulf %137, %139 : vector<64x32xf32>
    %c0_174 = arith.constant 0 : index
    %c0_175 = arith.constant 0 : index
    %141 = vector.load %arg10[%c0_174, %c0_175] : memref<1x32xf32, #tpu.memory_space<vmem>>, vector<1x32xf32>
    %142 = vector.broadcast %141 : vector<1x32xf32> to vector<64x32xf32>
    %143 = arith.addf %140, %142 : vector<64x32xf32>
    %cst_176 = arith.constant 0.000000e+00 : f32
    %144 = vector.broadcast %cst_176 : f32 to vector<64x32xf32>
    %145 = arith.maximumf %143, %144 : vector<64x32xf32>
    %c0_177 = arith.constant 0 : index
    %c0_178 = arith.constant 0 : index
    %146 = vector.load %arg11[%c0_177, %c0_178] : memref<96x256xf32, #tpu.memory_space<vmem>>, vector<96x256xf32>
    %cst_179 = arith.constant dense<0.000000e+00> : vector<64x256xf32>
    %147 = tpu.matmul %11, %146, %cst_179 {dimension_numbers = #tpu.dot_dimension_numbers<[1], [0], [0], [1], [0, 0, 1, 1], [], []>} : vector<64x96xf32>, vector<96x256xf32>, vector<64x256xf32> -> vector<64x256xf32>
    %c0_180 = arith.constant 0 : index
    %c0_181 = arith.constant 0 : index
    %148 = vector.load %arg12[%c0_180, %c0_181] : memref<64x256xf32, #tpu.memory_space<vmem>>, vector<64x256xf32>
    %cst_182 = arith.constant dense<0.000000e+00> : vector<64x256xf32>
    %149 = tpu.matmul %78, %148, %cst_182 {dimension_numbers = #tpu.dot_dimension_numbers<[1], [0], [0], [1], [0, 0, 1, 1], [], []>} : vector<64x64xf32>, vector<64x256xf32>, vector<64x256xf32> -> vector<64x256xf32>
    %150 = arith.addf %147, %149 : vector<64x256xf32>
    %c0_183 = arith.constant 0 : index
    %c0_184 = arith.constant 0 : index
    %151 = vector.load %arg13[%c0_183, %c0_184] : memref<32x256xf32, #tpu.memory_space<vmem>>, vector<32x256xf32>
    %cst_185 = arith.constant dense<0.000000e+00> : vector<64x256xf32>
    %152 = tpu.matmul %145, %151, %cst_185 {dimension_numbers = #tpu.dot_dimension_numbers<[1], [0], [0], [1], [0, 0, 1, 1], [], []>} : vector<64x32xf32>, vector<32x256xf32>, vector<64x256xf32> -> vector<64x256xf32>
    %153 = arith.addf %150, %152 : vector<64x256xf32>
    %c0_186 = arith.constant 0 : index
    %c0_187 = arith.constant 0 : index
    %154 = vector.load %arg14[%c0_186, %c0_187] : memref<1x256xf32, #tpu.memory_space<vmem>>, vector<1x256xf32>
    %155 = vector.broadcast %154 : vector<1x256xf32> to vector<64x256xf32>
    %156 = arith.addf %153, %155 : vector<64x256xf32>
    %cst_188 = arith.constant 1.700000e-01 : f32
    %157 = vector.broadcast %cst_188 : f32 to vector<64x256xf32>
    %158 = arith.mulf %156, %157 : vector<64x256xf32>
    %159 = arith.addf %158, %1 : vector<64x256xf32>
    %cst_189 = arith.constant 0.000000e+00 : f32
    %160 = vector.broadcast %cst_189 : f32 to vector<64x256xf32>
    %161 = arith.maximumf %159, %160 : vector<64x256xf32>
    %c0_190 = arith.constant 0 : index
    %c0_191 = arith.constant 0 : index
    %c0_192 = arith.constant 0 : index
    %162 = vector.load %arg15[%c0_190, %c0_191, %c0_192] : memref<1x64x256xf32, #tpu.memory_space<vmem>>, vector<1x64x256xf32>
    %163 = vector.shape_cast %162 : vector<1x64x256xf32> to vector<64x256xf32>
    %164 = vector.shape_cast %161 : vector<64x256xf32> to vector<1x64x256xf32>
    tpu.vector_store %arg15[%c0_190, %c0_191, %c0_192], %164 {strides = array<i32>} : memref<1x64x256xf32, #tpu.memory_space<vmem>>, vector<1x64x256xf32>,
    return
  }
  func.func @transform_0(%arg0: i32) -> (i32, i32, i32) {
    %c0_i32 = arith.constant 0 : i32
    %c0_i32_0 = arith.constant 0 : i32
    %c0_i32_1 = arith.constant 0 : i32
    return %arg0, %c0_i32, %c0_i32_0 : i32, i32, i32
  }
  func.func @transform_1(%arg0: i32) -> (i32, i32) {
    %c0_i32 = arith.constant 0 : i32
    %c0_i32_0 = arith.constant 0 : i32
    %c0_i32_1 = arith.constant 0 : i32
    return %c0_i32, %c0_i32_0 : i32, i32
  }
  func.func @transform_2(%arg0: i32) -> (i32, i32) {
    %c0_i32 = arith.constant 0 : i32
    %c0_i32_0 = arith.constant 0 : i32
    %c0_i32_1 = arith.constant 0 : i32
    return %c0_i32, %c0_i32_0 : i32, i32
  }
  func.func @transform_3(%arg0: i32) -> (i32, i32) {
    %c0_i32 = arith.constant 0 : i32
    %c0_i32_0 = arith.constant 0 : i32
    %c0_i32_1 = arith.constant 0 : i32
    return %c0_i32, %c0_i32_0 : i32, i32
  }
  func.func @transform_4(%arg0: i32) -> (i32, i32, i32, i32) {
    %c0_i32 = arith.constant 0 : i32
    %c0_i32_0 = arith.constant 0 : i32
    %c0_i32_1 = arith.constant 0 : i32
    %c0_i32_2 = arith.constant 0 : i32
    %c0_i32_3 = arith.constant 0 : i32
    return %c0_i32, %c0_i32_0, %c0_i32_1, %c0_i32_2 : i32, i32, i32, i32
  }
  func.func @transform_5(%arg0: i32) -> (i32, i32) {
    %c0_i32 = arith.constant 0 : i32
    %c0_i32_0 = arith.constant 0 : i32
    %c0_i32_1 = arith.constant 0 : i32
    return %c0_i32, %c0_i32_0 : i32, i32
  }
  func.func @transform_6(%arg0: i32) -> (i32, i32) {
    %c0_i32 = arith.constant 0 : i32
    %c0_i32_0 = arith.constant 0 : i32
    %c0_i32_1 = arith.constant 0 : i32
    return %c0_i32, %c0_i32_0 : i32, i32
  }
  func.func @transform_7(%arg0: i32) -> (i32, i32, i32, i32) {
    %c0_i32 = arith.constant 0 : i32
    %c0_i32_0 = arith.constant 0 : i32
    %c0_i32_1 = arith.constant 0 : i32
    %c0_i32_2 = arith.constant 0 : i32
    %c0_i32_3 = arith.constant 0 : i32
    return %c0_i32, %c0_i32_0, %c0_i32_1, %c0_i32_2 : i32, i32, i32, i32
  }
  func.func @transform_8(%arg0: i32) -> (i32, i32) {
    %c0_i32 = arith.constant 0 : i32
    %c0_i32_0 = arith.constant 0 : i32
    %c0_i32_1 = arith.constant 0 : i32
    return %c0_i32, %c0_i32_0 : i32, i32
  }
  func.func @transform_9(%arg0: i32) -> (i32, i32) {
    %c0_i32 = arith.constant 0 : i32
    %c0_i32_0 = arith.constant 0 : i32
    %c0_i32_1 = arith.constant 0 : i32
    return %c0_i32, %c0_i32_0 : i32, i32
  }
  func.func @transform_10(%arg0: i32) -> (i32, i32) {
    %c0_i32 = arith.constant 0 : i32
    %c0_i32_0 = arith.constant 0 : i32
    %c0_i32_1 = arith.constant 0 : i32
    return %c0_i32, %c0_i32_0 : i32, i32
  }
  func.func @transform_11(%arg0: i32) -> (i32, i32) {
    %c0_i32 = arith.constant 0 : i32
    %c0_i32_0 = arith.constant 0 : i32
    %c0_i32_1 = arith.constant 0 : i32
    return %c0_i32, %c0_i32_0 : i32, i32
  }
  func.func @transform_12(%arg0: i32) -> (i32, i32) {
    %c0_i32 = arith.constant 0 : i32
    %c0_i32_0 = arith.constant 0 : i32
    %c0_i32_1 = arith.constant 0 : i32
    return %c0_i32, %c0_i32_0 : i32, i32
  }
  func.func @transform_13(%arg0: i32) -> (i32, i32) {
    %c0_i32 = arith.constant 0 : i32
    %c0_i32_0 = arith.constant 0 : i32
    %c0_i32_1 = arith.constant 0 : i32
    return %c0_i32, %c0_i32_0 : i32, i32
  }
  func.func @transform_14(%arg0: i32) -> (i32, i32, i32) {
    %c0_i32 = arith.constant 0 : i32
    %c0_i32_0 = arith.constant 0 : i32
    %c0_i32_1 = arith.constant 0 : i32
    return %arg0, %c0_i32, %c0_i32_0 : i32, i32, i32
  }
}

</mosaic_0001>

<bundles_post_ra>
// kernel: block35_forward.1
= control target key start
LH: loop header
LB: loop body
LE: loop exit
PB: predicated region body
PF: predicated region fallthrough
CT: control target
= control target key end

     0   :  { %s5367_s0 = inlined_call_operand.vmem [shape: f32[2,64,256], index: 0, kind: input, shape index: {}]   ;;  %s5368_s1 = inlined_call_operand.vmem [shape: f32[256,96], index: 1, kind: input, shape index: {}]   ;;  %s5369_s2 = inlined_call_operand.vmem [shape: f32[1,96], index: 2, kind: input, shape index: {}]   ;;  %s5370_s3 = inlined_call_operand.vmem [shape: f32[1,96], index: 3, kind: input, shape index: {}]   ;;  %s5371_s4 = inlined_call_operand.vmem [shape: f32[3,3,96,64], index: 4, kind: input, shape index: {}]   ;;  %s5372_s5 = inlined_call_operand.vmem [shape: f32[1,64], index: 5, kind: input, shape index: {}]   ;;  %s5373_s6 = inlined_call_operand.vmem [shape: f32[1,64], index: 6, kind: input, shape index: {}]   ;;  %s5374_s7 = inlined_call_operand.vmem [shape: f32[3,3,64,32], index: 7, kind: input, shape index: {}]   ;;  %s5375_s8 = inlined_call_operand.vmem [shape: f32[1,32], index: 8, kind: input, shape index: {}]   ;;  %s5376_s9 = inlined_call_operand.vmem [shape: f32[1,32], index: 9, kind: input, shape index: {}]   ;;  %s5377_s10 = inlined_call_operand.vmem [shape: f32[96,256], index: 10, kind: input, shape index: {}]   ;;  %s5378_s11 = inlined_call_operand.vmem [shape: f32[64,256], index: 11, kind: input, shape index: {}]   ;;  %s5379_s12 = inlined_call_operand.vmem [shape: f32[32,256], index: 12, kind: input, shape index: {}]   ;;  %s5380_s13 = inlined_call_operand.vmem [shape: f32[1,256], index: 13, kind: input, shape index: {}]   ;;  %s5381_s14 = inlined_call_operand.hbm [shape: f32[2,64,256], index: 14, kind: output, shape index: {}]  }
   0x1   :  { %5387 = sst [smem:[#allocation12_spill]] %s5367_s0 }
   0x2   :  { %19 = vsyncpa [#allocation5], 0 }
   0x3   :  { %21 = vsyncpa [#allocation5 + $0x1], 0  ;;  %s3521_s29 = smov 0   ;;  %s3523_s30 = smov 0  }
   0x4   :  { %s3525_s15 = smov 0   ;;  %s3527_s16 = smov 0  }
   0x5 LB: > { %5388 = sst [smem:[#allocation7_spill]] %s3429_s29  ;;  %s3542_s17 = sadd.s32 4294967295, %s3441_s16   ;;  %s3441_s16 = sphi %s3527_s16, %s5398_s16   ;;  %s3437_s15 = sphi %s3525_s15, %s5400_s15   ;;  %s3433_s30 = sphi %s3523_s30, %s5402_s30   ;;  %s3429_s29 = sphi %s3521_s29, %s5401_s29  }
   0x6   : > { %5389 = sst [smem:[#allocation8_spill]] %s3437_s15  ;;  %s2925_s18 = sadd.s32 4294967294, %s3441_s16  }
   0x7   : > { %s3546_s19 = sadd.s32 1, %s3441_s16   ;;  %s333_s20 = sadd.s32 1, %s3437_s15 }
   0x8   : > { %5390 = sst [smem:[#allocation9_spill]] %s3546_s19  ;;  %s330_s21 = ssub.s32 %s3441_s16, %s3546_s19 }
   0x9   : > { %p343_p0 = scmp.ne.s32.totalorder %s3437_s15, %s3433_s30  ;;  %p331_p1 = scmp.eq.s32.totalorder %s330_s21, 0 }
   0xa   : > { %p344_p2 = scmp.eq.s32.totalorder %s3542_s17, 1  ;;  %p349_p3 = scmp.ne.s32.totalorder %s3433_s30, %s3429_s29 }
   0xb   : > { %p350_p4 = scmp.eq.s32.totalorder %s2925_s18, 1  ;;  %p2928_p7 = scmp.ge.s32.totalorder %s3441_s16, 1 }
   0xc   : > { %s3557_s22 = scalar_select %p331_p1, %s3437_s15, %s333_s20  }
   0xd   : > { %p3559_p5 = por %p344_p2, %p343_p0  ;;  %p3563_p6 = por %p350_p4, %p349_p3 }
   0xe   : > { %5391 = sst [smem:[#allocation10_spill]] %s3557_s22  ;;  %p415_p8 = scmp.lt.s32.totalorder %s3441_s16, 3 }
   0xf   : > { %s5393_s24 = scalar_select %p3563_p6, 1, 0 }
  0x10   : > { %p416_p9 = pnand %p2928_p7, %p415_p8 }
  0x11   : > { %5394 = sst [smem:[#allocation11_spill]] %s5393_s24  ;;  %p461_p10 = scmp.lt.s32.totalorder (!%p416_p9), %s3542_s17, 1 }
  0x12   : > { %419 = sbr.rel (%p416_p9) target bundleno = 927 (0x39f), region = 76  ;;  %s5395_s0 = sld [smem:[#allocation12_spill]] (!%p416_p9) }
  0x13   : > { %s458_s20 = sand.u32 (!%p416_p9), 1, %s3433_s30  }
  0x14   : > { %s2929_s22 = sshll.u32 (!%p416_p9), %s458_s20, 7  ;;  %s2848_s27 = scalar_lea.sflag (!%p416_p9), [#allocation5], %s458_s20 }
  0x15   : > { %s5277_s21 = scalar_lea.vmem (!%p416_p9), [#allocation4], %s2929_s22 }
  0x17   : > { %v497_v0 = vld [vmem:[%s5368_s1 + $0x78] sm:$0xff]  ;;  %v496_v2 = vld [vmem:[%s5368_s1 + $0x70] sm:$0xff]  ;;  %v495_v4 = vld [vmem:[%s5368_s1 + $0x68] sm:$0xff]  ;;  %s462_s18 = scalar_select %p461_p10, %s3542_s17, 1  ;;  %vm628_vm0 = vcmask 785408   ;;  %vm630_vm1 = vcmask 779264  }
  0x18   : > { %v513_v1 = vld [vmem:[%s5368_s1 + $0xf8] sm:$0xff]  ;;  %514 = vmatpush.msra.mxu0 %v497_v0  ;;  %v512_v3 = vld [vmem:[%s5368_s1 + $0xf0] sm:$0xff]  ;;  %v511_v5 = vld [vmem:[%s5368_s1 + $0xe8] sm:$0xff]  ;;  %v3443_v0 = vmov 0.0   ;;  %vm1521_vm2 = vcmask 523264   ;;  %vm1523_vm3 = vcmask 517120  }
  0x19   : > { %555 = vmatpush.msra.mxu1 %v513_v1  ;;  %v494_v6 = vld [vmem:[%s5368_s1 + $0x60] sm:$0xff]  ;;  %v493_v8 = vld [vmem:[%s5368_s1 + $0x58] sm:$0xff]  ;;  %v492_v10 = vld [vmem:[%s5368_s1 + $0x50] sm:$0xff]  ;;  %s3289_s28 = sshll.u32 %s462_s18, 7  ;;  %632 = vst.msk [vmem:[#allocation2 + $0x10] sm:$0xff] %vm628_vm0, %v3443_v0  ;;  %vm2638_vm4 = vcmask 261120  }
  0x1a   : > { %515 = vmatpush.msra.mxu0 %v496_v2  ;;  %v510_v7 = vld [vmem:[%s5368_s1 + $0xe0] sm:$0xff]  ;;  %v509_v9 = vld [vmem:[%s5368_s1 + $0xd8] sm:$0xff]  ;;  %v508_v11 = vld [vmem:[%s5368_s1 + $0xd0] sm:$0xff]  ;;  %s3664_s29 = scalar_lea.vmem %s5395_s0, %s3289_s28  ;;  %633 = vst.msk [vmem:[#allocation2 + $0x18] sm:$0x3] %vm630_vm1, %v3443_v0  ;;  %s3290_s28 = sshll.u32 %s3542_s17, 7 }
  0x1b   : > { %556 = vmatpush.msra.mxu1 %v512_v3  ;;  %v491_v12 = vld [vmem:[%s5368_s1 + $0x48] sm:$0xff]  ;;  %v490_v14 = vld [vmem:[%s5368_s1 + $0x40] sm:$0xff]  ;;  %v489_v16 = vld [vmem:[%s5368_s1 + $0x38] sm:$0xff]  ;;  %629 = vst.msk [vmem:[#allocation2] sm:$0xff] %vm628_vm0, %v3443_v0  ;;  %s2859_s25 = scalar_lea.hbm %s5381_s14, %s3290_s28  ;;  %s2860_s17 = sshll.u32 %s5277_s21, 4  ;;  %s2861_s17 = int_to_ptr.vmem [resolvable:$true] %s2860_s17 }
  0x1c   : > { %516 = vmatpush.msra.mxu0 %v495_v4  ;;  %v507_v13 = vld [vmem:[%s5368_s1 + $0xc8] sm:$0xff]  ;;  %v506_v15 = vld [vmem:[%s5368_s1 + $0xc0] sm:$0xff]  ;;  %v505_v17 = vld [vmem:[%s5368_s1 + $0xb8] sm:$0xff]  ;;  %631 = vst.msk [vmem:[#allocation2 + $0x8] sm:$0x3] %vm630_vm1, %v3443_v0  ;;  %s2862_s26 = sshll.u32 %s2859_s25, 4  ;;  %s2863_s26 = int_to_ptr.hbm [resolvable:$true] %s2862_s26 }
  0x1d   : > { %557 = vmatpush.msra.mxu1 %v511_v5  ;;  %v488_v18 = vld [vmem:[%s5368_s1 + $0x30] sm:$0xff]  ;;  %v487_v20 = vld [vmem:[%s5368_s1 + $0x28] sm:$0xff]  ;;  %v486_v22 = vld [vmem:[%s5368_s1 + $0x20] sm:$0xff]  ;;  %634 = vst.msk [vmem:[#allocation2 + $0x20] sm:$0xff] %vm628_vm0, %v3443_v0  ;;  %s3393_s18 = sshra.s32 %s2863_s26, 4  ;;  %s3394_s18 = int_to_ptr.hbm [resolvable:$true] %s3393_s18 }
  0x1e   : > { %517 = vmatpush.msra.mxu0 %v494_v6  ;;  %v504_v19 = vld [vmem:[%s5368_s1 + $0xb0] sm:$0xff]  ;;  %v503_v21 = vld [vmem:[%s5368_s1 + $0xa8] sm:$0xff]  ;;  %v502_v23 = vld [vmem:[%s5368_s1 + $0xa0] sm:$0xff]  ;;  %635 = vst.msk [vmem:[#allocation2 + $0x28] sm:$0x3] %vm630_vm1, %v3443_v0  ;;  %s3395_s24 = scalar_lea.hbm %s3394_s18, 128  ;;  %p3400_p0 = scmp.lt.s32.totalorder %s3394_s18, %s5381_s14 }
  0x1f   : > { %558 = vmatpush.msra.mxu1 %v510_v7  ;;  %v485_v24 = vld [vmem:[%s5368_s1 + $0x18] sm:$0xff]  ;;  %v484_v26 = vld [vmem:[%s5368_s1 + $0x10] sm:$0xff]  ;;  %v483_v28 = vld [vmem:[%s5368_s1 + $0x8] sm:$0xff]  ;;  %636 = vst.msk [vmem:[#allocation2 + $0x30] sm:$0xff] %vm628_vm0, %v3443_v0  ;;  %p3396_p11 = scmp.ne.s32.totalorder %s3394_s18, %s3395_s24 }
  0x20   : > { %518 = vmatpush.msra.mxu0 %v493_v8  ;;  %v501_v25 = vld [vmem:[%s5368_s1 + $0x98] sm:$0xff]  ;;  %v500_v27 = vld [vmem:[%s5368_s1 + $0x90] sm:$0xff]  ;;  %v499_v29 = vld [vmem:[%s5368_s1 + $0x88] sm:$0xff]  ;;  %637 = vst.msk [vmem:[#allocation2 + $0x38] sm:$0x3] %vm630_vm1, %v3443_v0 }
  0x21   : > { %559 = vmatpush.msra.mxu1 %v509_v9  ;;  %v482_v30 = vld [vmem:[%s5368_s1] sm:$0xff]  ;;  %v467_v33 = vld [vmem:[%s3664_s29 + $0x8] sm:$0xff]  ;;  %v468_v34 = vld [vmem:[%s3664_s29 + $0x10] sm:$0xff]  ;;  %638 = vst.msk [vmem:[#allocation2 + $0x40] sm:$0xff] %vm628_vm0, %v3443_v0  ;;  %p3397_p12 = pnand %p3396_p11, %p3559_p5 }
  0x22   : > { %519 = vmatpush.msra.mxu0 %v492_v10  ;;  %v498_v31 = vld [vmem:[%s5368_s1 + $0x80] sm:$0xff]  ;;  %v469_v35 = vld [vmem:[%s3664_s29 + $0x18] sm:$0xff]  ;;  %v471_v37 = vld [vmem:[%s3664_s29 + $0x28] sm:$0xff]  ;;  %639 = vst.msk [vmem:[#allocation2 + $0x48] sm:$0x3] %vm630_vm1, %v3443_v0 }
  0x23   : > { %560 = vmatpush.msra.mxu1 %v508_v11  ;;  %v466_v32 = vld [vmem:[%s3664_s29] sm:$0xff]  ;;  %v472_v38 = vld [vmem:[%s3664_s29 + $0x30] sm:$0xff]  ;;  %v473_v39 = vld [vmem:[%s3664_s29 + $0x38] sm:$0xff]  ;;  %640 = vst.msk [vmem:[#allocation2 + $0x50] sm:$0xff] %vm628_vm0, %v3443_v0  ;;  %p3398_p13 = pneg %p3397_p12 }
  0x24   : > { %520 = vmatpush.msra.mxu0 %v491_v12  ;;  %v470_v36 = vld [vmem:[%s3664_s29 + $0x20] sm:$0xff]  ;;  %v2943_v40 = vld [vmem:[%s5371_s4 + $0xb8] sm:$0xff]  ;;  %v2942_v42 = vld [vmem:[%s5371_s4 + $0xb0] sm:$0xff]  ;;  %641 = vst.msk [vmem:[#allocation2 + $0x58] sm:$0x3] %vm630_vm1, %v3443_v0 }
  0x25   : > { %561 = vmatpush.msra.mxu1 %v507_v13  ;;  %v678_v41 = vld [vmem:[%s5371_s4 + $0x58] sm:$0xff]  ;;  %v677_v43 = vld [vmem:[%s5371_s4 + $0x50] sm:$0xff]  ;;  %v2941_v44 = vld [vmem:[%s5371_s4 + $0xa8] sm:$0xff]  ;;  %3291 = vmatpush.msra.mxu2 %v2943_v40  ;;  %642 = vst.msk [vmem:[#allocation2 + $0x60] sm:$0xff] %vm628_vm0, %v3443_v0 }
  0x26   : > { %521 = vmatpush.msra.mxu0 %v490_v14  ;;  %v676_v45 = vld [vmem:[%s5371_s4 + $0x48] sm:$0xff]  ;;  %3303 = vmatpush.msra.mxu3 %v678_v41  ;;  %v2940_v46 = vld [vmem:[%s5371_s4 + $0xa0] sm:$0xff]  ;;  %v2939_v50 = vld [vmem:[%s5371_s4 + $0x98] sm:$0xff]  ;;  %643 = vst.msk [vmem:[#allocation2 + $0x68] sm:$0x3] %vm630_vm1, %v3443_v0 }
  0x27   : > { %562 = vmatpush.msra.mxu1 %v506_v15  ;;  %v675_v47 = vld [vmem:[%s5371_s4 + $0x40] sm:$0xff]  ;;  %3292 = vmatpush.msra.mxu2 %v2942_v42  ;;  %v475_v49 = vld [vmem:[%s3664_s29 + $0x48] sm:$0xff]  ;;  %v674_v51 = vld [vmem:[%s5371_s4 + $0x38] sm:$0xff]  ;;  %644 = vst.msk [vmem:[#allocation2 + $0x70] sm:$0xff] %vm628_vm0, %v3443_v0 }
  0x28   : > { %522 = vmatpush.msra.mxu0 %v489_v16  ;;  %3304 = vmatpush.msra.mxu3 %v677_v43  ;;  %v474_v48 = vld [vmem:[%s3664_s29 + $0x40] sm:$0xff]  ;;  %v2938_v52 = vld [vmem:[%s5371_s4 + $0x90] sm:$0xff]  ;;  %v2937_v54 = vld [vmem:[%s5371_s4 + $0x88] sm:$0xff]  ;;  %645 = vst.msk [vmem:[#allocation2 + $0x78] sm:$0x3] %vm630_vm1, %v3443_v0 }
  0x29   : > { %563 = vmatpush.msra.mxu1 %v505_v17  ;;  %3293 = vmatpush.msra.mxu2 %v2941_v44  ;;  %v673_v53 = vld [vmem:[%s5371_s4 + $0x30] sm:$0xff]  ;;  %v672_v55 = vld [vmem:[%s5371_s4 + $0x28] sm:$0xff]  ;;  %v477_v57 = vld [vmem:[%s3664_s29 + $0x58] sm:$0xff]  ;;  %646 = vst.msk [vmem:[#allocation2 + $0x80] sm:$0xff] %vm628_vm0, %v3443_v0 }
  0x2a   : > { %523 = vmatpush.msra.mxu0 %v488_v18  ;;  %3305 = vmatpush.msra.mxu3 %v676_v45  ;;  %v476_v56 = vld [vmem:[%s3664_s29 + $0x50] sm:$0xff]  ;;  %v478_v58 = vld [vmem:[%s3664_s29 + $0x60] sm:$0xff]  ;;  %v479_v59 = vld [vmem:[%s3664_s29 + $0x68] sm:$0xff]  ;;  %647 = vst.msk [vmem:[#allocation2 + $0x88] sm:$0x3] %vm630_vm1, %v3443_v0 }
  0x2b   : > { %564 = vmatpush.msra.mxu1 %v504_v19  ;;  %3294 = vmatpush.msra.mxu2 %v2940_v46  ;;  %v480_v60 = vld [vmem:[%s3664_s29 + $0x70] sm:$0xff]  ;;  %v481_v61 = vld [vmem:[%s3664_s29 + $0x78] sm:$0xff]  ;;  %v2936_v62 = vld [vmem:[%s5371_s4 + $0x80] sm:$0xff]  ;;  %648 = vst.msk [vmem:[#allocation2 + $0x90] sm:$0xff] %vm628_vm0, %v3443_v0 }
  0x2c   : > { %524 = vmatpush.msra.mxu0 %v487_v20  ;;  %3306 = vmatpush.msra.mxu3 %v675_v47  ;;  %v671_v63 = vld [vmem:[%s5371_s4 + $0x20] sm:$0xff]  ;;  %v2935_v1 = vld [vmem:[%s5371_s4 + $0x78] sm:$0xff]  ;;  %v2934_v3 = vld [vmem:[%s5371_s4 + $0x70] sm:$0xff]  ;;  %649 = vst.msk [vmem:[#allocation2 + $0x98] sm:$0x3] %vm630_vm1, %v3443_v0 }
  0x2d   : > { %565 = vmatpush.msra.mxu1 %v503_v21  ;;  %3295 = vmatpush.msra.mxu2 %v2939_v50  ;;  %v670_v2 = vld [vmem:[%s5371_s4 + $0x18] sm:$0xff]  ;;  %v669_v4 = vld [vmem:[%s5371_s4 + $0x10] sm:$0xff]  ;;  %v2933_v5 = vld [vmem:[%s5371_s4 + $0x68] sm:$0xff]  ;;  %1525 = vst.msk [vmem:[#allocation3 + $0x10] sm:$0xff] %vm1521_vm2, %v3443_v0 }
  0x2e   : > { %525 = vmatpush.msra.mxu0 %v486_v22  ;;  %3307 = vmatpush.msra.mxu3 %v674_v51  ;;  %v668_v6 = vld [vmem:[%s5371_s4 + $0x8] sm:$0xff]  ;;  %v2932_v7 = vld [vmem:[%s5371_s4 + $0x60] sm:$0xff]  ;;  %v3011_v9 = vld [vmem:[%s5371_s4 + $0x1d8] sm:$0xff]  ;;  %1522 = vst.msk [vmem:[#allocation3] sm:$0xff] %vm1521_vm2, %v3443_v0 }
  0x2f   : > { %566 = vmatpush.msra.mxu1 %v502_v23  ;;  %3296 = vmatpush.msra.mxu2 %v2938_v52  ;;  %v667_v8 = vld [vmem:[%s5371_s4] sm:$0xff]  ;;  %v3031_v10 = vld [vmem:[%s5371_s4 + $0x238] sm:$0xff]  ;;  %v3010_v13 = vld [vmem:[%s5371_s4 + $0x1d0] sm:$0xff]  ;;  %1526 = vst.msk [vmem:[#allocation3 + $0x18] sm:$0x3] %vm1523_vm3, %v3443_v0 }
  0x30   : > { %526 = vmatpush.msra.mxu0 %v485_v24  ;;  %3308 = vmatpush.msra.mxu3 %v673_v53  ;;  %v659_v11 = vld [vmem:[#allocation2] sm:$0xff]  ;;  %v3030_v14 = vld [vmem:[%s5371_s4 + $0x230] sm:$0xff]  ;;  %v3009_v15 = vld [vmem:[%s5371_s4 + $0x1c8] sm:$0xff]  ;;  %1524 = vst.msk [vmem:[#allocation3 + $0x8] sm:$0x3] %vm1523_vm3, %v3443_v0 }
  0x31   : > { %567 = vmatpush.msra.mxu1 %v501_v25  ;;  %3297 = vmatpush.msra.mxu2 %v2937_v54  ;;  %v679_v12 = vld [vmem:[#allocation2 + $0x1] sm:$0xff]  ;;  %v3007_v19 = vld [vmem:[%s5371_s4 + $0x1b8] sm:$0xff]  ;;  %v3006_v21 = vld [vmem:[%s5371_s4 + $0x1b0] sm:$0xff]  ;;  %1527 = vst.msk [vmem:[#allocation3 + $0x20] sm:$0xff] %vm1521_vm2, %v3443_v0 }
  0x32   : > { %527 = vmatpush.msra.mxu0 %v484_v26  ;;  %3309 = vmatpush.msra.mxu3 %v672_v55  ;;  %v3029_v16 = vld [vmem:[%s5371_s4 + $0x228] sm:$0xff]  ;;  %v3008_v17 = vld [vmem:[%s5371_s4 + $0x1c0] sm:$0xff]  ;;  %v3027_v20 = vld [vmem:[%s5371_s4 + $0x218] sm:$0xff]  ;;  %1528 = vst.msk [vmem:[#allocation3 + $0x28] sm:$0x3] %vm1523_vm3, %v3443_v0 }
  0x33   : > { %568 = vmatpush.msra.mxu1 %v500_v27  ;;  %3298 = vmatpush.msra.mxu2 %v2936_v62  ;;  %v3028_v18 = vld [vmem:[%s5371_s4 + $0x220] sm:$0xff]  ;;  %v3026_v22 = vld [vmem:[%s5371_s4 + $0x210] sm:$0xff]  ;;  %v3005_v23 = vld [vmem:[%s5371_s4 + $0x1a8] sm:$0xff]  ;;  %1529 = vst.msk [vmem:[#allocation3 + $0x30] sm:$0xff] %vm1521_vm2, %v3443_v0 }
  0x34   : > { %528 = vmatpush.msra.mxu0 %v483_v28  ;;  %3310 = vmatpush.msra.mxu3 %v671_v63  ;;  %v3025_v24 = vld [vmem:[%s5371_s4 + $0x208] sm:$0xff]  ;;  %v3004_v25 = vld [vmem:[%s5371_s4 + $0x1a0] sm:$0xff]  ;;  %v3003_v27 = vld [vmem:[%s5371_s4 + $0x198] sm:$0xff]  ;;  %1530 = vst.msk [vmem:[#allocation3 + $0x38] sm:$0x3] %vm1523_vm3, %v3443_v0 }
  0x35   : > { %569 = vmatpush.msra.mxu1 %v499_v29  ;;  %3299 = vmatpush.msra.mxu2 %v2935_v1  ;;  %v3024_v26 = vld [vmem:[%s5371_s4 + $0x200] sm:$0xff]  ;;  %v3023_v28 = vld [vmem:[%s5371_s4 + $0x1f8] sm:$0xff]  ;;  %v3002_v29 = vld [vmem:[%s5371_s4 + $0x190] sm:$0xff]  ;;  %1531 = vst.msk [vmem:[#allocation3 + $0x40] sm:$0xff] %vm1521_vm2, %v3443_v0 }
  0x36   : > { %529 = vmatpush.msra.mxu0 %v482_v30  ;;  %3311 = vmatpush.msra.mxu3 %v670_v2  ;;  %v3022_v30 = vld [vmem:[%s5371_s4 + $0x1f0] sm:$0xff]  ;;  %1532 = vst.msk [vmem:[#allocation3 + $0x48] sm:$0x3] %vm1523_vm3, %v3443_v0 }
  0x37   : > { %570 = vmatpush.msra.mxu1 %v498_v31  ;;  %530 = vmatmul.f32.vlgmr.msra.gmra.mxu0 %v466_v32  ;;  %v3001_v31 = vld [vmem:[%s5371_s4 + $0x188] sm:$0xff]  ;;  %1533 = vst.msk [vmem:[#allocation3 + $0x50] sm:$0xff] %vm1521_vm2, %v3443_v0 }
  0x38   : > { %571 = vmatmul.f32.vlgmr.msra.gmra.mxu1 %v467_v33  ;;  %728 = vmatpush.msrb.mxu0 %v2943_v40  ;;  %v3021_v32 = vld [vmem:[%s5371_s4 + $0x1e8] sm:$0xff]  ;;  %v3871_v33 = vld [vmem:[%s5369_s2] ss:$0 sm:$0xff]  ;;  %1534 = vst.msk [vmem:[#allocation3 + $0x58] sm:$0x3] %vm1523_vm3, %v3443_v0 }
  0x39   : > { %793 = vmatpush.msrb.mxu1 %v678_v41  ;;  %3300 = vmatpush.msra.mxu2 %v2934_v3  ;;  %1535 = vst.msk [vmem:[#allocation3 + $0x60] sm:$0xff] %vm1521_vm2, %v3443_v0 }
  0x3a   : > { %729 = vmatpush.msrb.mxu0 %v2942_v42  ;;  %3312 = vmatpush.msra.mxu3 %v669_v4  ;;  %1536 = vst.msk [vmem:[#allocation3 + $0x68] sm:$0x3] %vm1523_vm3, %v3443_v0 }
  0x3b   : > { %794 = vmatpush.msrb.mxu1 %v677_v43  ;;  %3301 = vmatpush.msra.mxu2 %v2933_v5  ;;  %1537 = vst.msk [vmem:[#allocation3 + $0x70] sm:$0xff] %vm1521_vm2, %v3443_v0 }
  0x3c   : > { %730 = vmatpush.msrb.mxu0 %v2941_v44  ;;  %3313 = vmatpush.msra.mxu3 %v668_v6  ;;  %1538 = vst.msk [vmem:[#allocation3 + $0x78] sm:$0x3] %vm1523_vm3, %v3443_v0 }
  0x3d   : > { %795 = vmatpush.msrb.mxu1 %v676_v45  ;;  %3302 = vmatpush.msra.mxu2 %v2932_v7  ;;  %1539 = vst.msk [vmem:[#allocation3 + $0x80] sm:$0xff] %vm1521_vm2, %v3443_v0 }
  0x3e   : > { %731 = vmatpush.msrb.mxu0 %v2940_v46  ;;  %3314 = vmatpush.msra.mxu3 %v667_v8  ;;  %v2971_v46 = vld [vmem:[%s5371_s4 + $0x118] sm:$0xff]  ;;  %1540 = vst.msk [vmem:[#allocation3 + $0x88] sm:$0x3] %vm1523_vm3, %v3443_v0 }
  0x3f   : > { %533 = vmatmul.f32.gmra.mxu0 %v468_v34  ;;  %796 = vmatpush.msrb.mxu1 %v675_v47  ;;  %v3000_v34 = vld [vmem:[%s5371_s4 + $0x180] sm:$0xff]  ;;  %v2991_v47 = vld [vmem:[%s5371_s4 + $0x178] sm:$0xff]  ;;  %1541 = vst.msk [vmem:[#allocation3 + $0x90] sm:$0xff] %vm1521_vm2, %v3443_v0 }
  0x40   : > { %574 = vmatmul.f32.gmra.mxu1 %v469_v35  ;;  %732 = vmatpush.msrb.mxu0 %v2939_v50  ;;  %v3020_v35 = vld [vmem:[%s5371_s4 + $0x1e0] sm:$0xff]  ;;  %1542 = vst.msk [vmem:[#allocation3 + $0x98] sm:$0x3] %vm1523_vm3, %v3443_v0 }
  0x41   : > { %797 = vmatpush.msrb.mxu1 %v674_v51  ;;  %879 = vmatpush.msrb.mxu2 %v2971_v46  ;;  %v3071_v46 = vld [vmem:[%s5371_s4 + $0x2f8] sm:$0xff] }
  0x42   : > { %733 = vmatpush.msrb.mxu0 %v2938_v52  ;;  %973 = vmatpush.msrb.mxu3 %v2991_v47 }
  0x43   : > { %798 = vmatpush.msrb.mxu1 %v673_v53 }
  0x44   : > { %734 = vmatpush.msrb.mxu0 %v2937_v54 }
  0x45   : > { %799 = vmatpush.msrb.mxu1 %v672_v55 }
  0x46   : > { %735 = vmatpush.msrb.mxu0 %v2936_v62 }
  0x47   : > { %536 = vmatmul.f32.gmra.mxu0 %v470_v36  ;;  %800 = vmatpush.msrb.mxu1 %v671_v63  ;;  %v2967_v63 = vld [vmem:[%s5371_s4 + $0xf8] sm:$0xff] }
  0x48   : > { %577 = vmatmul.f32.gmra.mxu1 %v471_v37  ;;  %736 = vmatpush.msrb.mxu0 %v2935_v1 }
  0x49   : > { %801 = vmatpush.msrb.mxu1 %v670_v2 }
  0x4a   : > { %737 = vmatpush.msrb.mxu0 %v2934_v3 }
  0x4b   : > { %802 = vmatpush.msrb.mxu1 %v669_v4 }
  0x4c   : > { %738 = vmatpush.msrb.mxu0 %v2933_v5 }
  0x4d   : > { %803 = vmatpush.msrb.mxu1 %v668_v6 }
  0x4e   : > { %739 = vmatpush.msrb.mxu0 %v2932_v7 }
  0x4f   : > { %539 = vmatmul.f32.gmra.mxu0 %v472_v38  ;;  %804 = vmatpush.msrb.mxu1 %v667_v8  ;;  %v2987_v8 = vld [vmem:[%s5371_s4 + $0x158] sm:$0xff] }
  0x50   : > { %580 = vmatmul.f32.gmra.mxu1 %v473_v39  ;;  %1067 = vmatpush.msra.mxu0 %v3011_v9  ;;  %v3882_v39 = vld [vmem:[%s5370_s3] ss:$0 sm:$0xff]  ;;  %v2966_v9 = vld [vmem:[%s5371_s4 + $0xf0] sm:$0xff] }
  0x51   : > { %1161 = vmatpush.msra.mxu1 %v3031_v10  ;;  %v2986_v10 = vld [vmem:[%s5371_s4 + $0x150] sm:$0xff] }
  0x52   : > { %1068 = vmatpush.msra.mxu0 %v3010_v13  ;;  %v2985_v13 = vld [vmem:[%s5371_s4 + $0x148] sm:$0xff] }
  0x53   : > { %1162 = vmatpush.msra.mxu1 %v3030_v14  ;;  %v2964_v14 = vld [vmem:[%s5371_s4 + $0xe0] sm:$0xff] }
  0x54   : > { %1069 = vmatpush.msra.mxu0 %v3009_v15 }
  0x55   : > { %1163 = vmatpush.msra.mxu1 %v3029_v16  ;;  %v2984_v16 = vld [vmem:[%s5371_s4 + $0x140] sm:$0xff] }
  0x56   : > { %1070 = vmatpush.msra.mxu0 %v3008_v17  ;;  %v2963_v17 = vld [vmem:[%s5371_s4 + $0xd8] sm:$0xff] }
  0x57   : > { %542 = vmatmul.f32.gmra.mxu0 %v474_v48  ;;  %1164 = vmatpush.msra.mxu1 %v3028_v18  ;;  %v2970_v48 = vld [vmem:[%s5371_s4 + $0x110] sm:$0xff] }
  0x58   : > { %583 = vmatmul.f32.gmra.mxu1 %v475_v49  ;;  %1071 = vmatpush.msra.mxu0 %v3007_v19  ;;  %v2990_v49 = vld [vmem:[%s5371_s4 + $0x170] sm:$0xff]  ;;  %v2983_v19 = vld [vmem:[%s5371_s4 + $0x138] sm:$0xff] }
  0x59   : > { %1165 = vmatpush.msra.mxu1 %v3027_v20  ;;  %880 = vmatpush.msrb.mxu2 %v2970_v48  ;;  %v3090_v48 = vld [vmem:[%s5371_s4 + $0x350] sm:$0xff] }
  0x5a   : > { %1072 = vmatpush.msra.mxu0 %v3006_v21  ;;  %974 = vmatpush.msrb.mxu3 %v2990_v49  ;;  %v3050_v49 = vld [vmem:[%s5371_s4 + $0x290] sm:$0xff] }
  0x5b   : > { %1166 = vmatpush.msra.mxu1 %v3026_v22 }
  0x5c   : > { %1073 = vmatpush.msra.mxu0 %v3005_v23 }
  0x5d   : > { %1167 = vmatpush.msra.mxu1 %v3025_v24  ;;  %v2962_v24 = vld [vmem:[%s5371_s4 + $0xd0] sm:$0xff] }
  0x5e   : > { %1074 = vmatpush.msra.mxu0 %v3004_v25 }
  0x5f   : > { %545 = vmatmul.f32.gmra.mxu0 %v476_v56  ;;  %1168 = vmatpush.msra.mxu1 %v3024_v26 }
  0x60   : > { %586 = vmatmul.f32.gmra.mxu1 %v477_v57  ;;  %1075 = vmatpush.msra.mxu0 %v3003_v27  ;;  %v2982_v27 = vld [vmem:[%s5371_s4 + $0x130] sm:$0xff] }
  0x61   : > { %1169 = vmatpush.msra.mxu1 %v3023_v28  ;;  %v2961_v28 = vld [vmem:[%s5371_s4 + $0xc8] sm:$0xff] }
  0x62   : > { %1076 = vmatpush.msra.mxu0 %v3002_v29 }
  0x63   : > { %1170 = vmatpush.msra.mxu1 %v3022_v30  ;;  %v2981_v30 = vld [vmem:[%s5371_s4 + $0x128] sm:$0xff] }
  0x64   : > { %1077 = vmatpush.msra.mxu0 %v3001_v31  ;;  %v2960_v31 = vld [vmem:[%s5371_s4 + $0xc0] sm:$0xff] }
  0x65   : > { %1171 = vmatpush.msra.mxu1 %v3021_v32 }
  0x66   : > { %1078 = vmatpush.msra.mxu0 %v3000_v34 }
  0x67   : > { %548 = vmatmul.f32.gmra.mxu0 %v478_v58  ;;  %1172 = vmatpush.msra.mxu1 %v3020_v35  ;;  %v2969_v58 = vld [vmem:[%s5371_s4 + $0x108] sm:$0xff] }
  0x68   : > { %589 = vmatmul.f32.gmra.mxu1 %v479_v59  ;;  %v2989_v59 = vld [vmem:[%s5371_s4 + $0x168] sm:$0xff]  ;;  %881 = vmatpush.msrb.mxu2 %v2969_v58 }
  0x69   : > { %975 = vmatpush.msrb.mxu3 %v2989_v59  ;;  %v3088_v59 = vld [vmem:[%s5371_s4 + $0x340] sm:$0xff] }
  0x6f   : > { %551 = vmatmul.f32.gmra.mxu0 %v480_v60  ;;  %v2968_v60 = vld [vmem:[%s5371_s4 + $0x100] sm:$0xff] }
  0x70   : > { %592 = vmatmul.f32.gmra.mxu1 %v481_v61  ;;  %v2988_v61 = vld [vmem:[%s5371_s4 + $0x160] sm:$0xff]  ;;  %882 = vmatpush.msrb.mxu2 %v2968_v60 }
  0x71   : > { %976 = vmatpush.msrb.mxu3 %v2988_v61 }
  0x72   : > { %883 = vmatpush.msrb.mxu2 %v2967_v63  ;;  %v3087_v63 = vld [vmem:[%s5371_s4 + $0x338] sm:$0xff] }
  0x73   : > { %977 = vmatpush.msrb.mxu3 %v2987_v8 }
  0x74   : > { %884 = vmatpush.msrb.mxu2 %v2966_v9 }
  0x75   : > { %978 = vmatpush.msrb.mxu3 %v2986_v10 }
  0x77   : > { %2944 = vmatmul.msk.f32.vlgmr.msrb.gmra.mxu0 %vm628_vm0, %v679_v12  ;;  %979 = vmatpush.msrb.mxu3 %v2985_v13 }
  0x78   : > { %2952 = vmatmul.msk.f32.vlgmr.msrb.gmra.mxu1 %vm628_vm0, %v659_v11  ;;  %v2965_v11 = vld [vmem:[%s5371_s4 + $0xe8] sm:$0xff] }
  0x79   : > { %885 = vmatpush.msrb.mxu2 %v2965_v11  ;;  %980 = vmatpush.msrb.mxu3 %v2984_v16 }
  0x7b   : > { %886 = vmatpush.msrb.mxu2 %v2964_v14  ;;  %981 = vmatpush.msrb.mxu3 %v2983_v19  ;;  %v3085_v14 = vld [vmem:[%s5371_s4 + $0x328] sm:$0xff]  ;;  %v3048_v19 = vld [vmem:[%s5371_s4 + $0x280] sm:$0xff] }
  0x7d   : > { %887 = vmatpush.msrb.mxu2 %v2963_v17  ;;  %982 = vmatpush.msrb.mxu3 %v2982_v27  ;;  %v3084_v17 = vld [vmem:[%s5371_s4 + $0x320] sm:$0xff] }
  0x7f   : > { %888 = vmatpush.msrb.mxu2 %v2962_v24  ;;  %983 = vmatpush.msrb.mxu3 %v2981_v30  ;;  %v3047_v24 = vld [vmem:[%s5371_s4 + $0x278] sm:$0xff]  ;;  %v3082_v30 = vld [vmem:[%s5371_s4 + $0x310] sm:$0xff] }
  0x81   : > { %889 = vmatpush.msrb.mxu2 %v2961_v28 }
  0x83   : > { %890 = vmatpush.msrb.mxu2 %v2960_v31  ;;  %v3067_v31 = vld [vmem:[%s5371_s4 + $0x2d8] sm:$0xff] }
  0xb4   : > { %v531_v36 = vpop.f32.mrf.mxu0 }
  0xb5   : > { %v572_v37 = vpop.f32.mrf.mxu1 }
  0xb6   : > { %v573_v38 = vadd.f32 %v572_v37, %v531_v36 }
  0xb8   : > { %v600_v40 = vmul.f32 %v3871_v33, %v573_v38 }
  0xba   : > { %v612_v41 = vadd.f32 %v3882_v39, %v600_v40  ;;  %v2980_v40 = vld [vmem:[%s5371_s4 + $0x120] sm:$0xff] }
  0xbb   : > { %984 = vmatpush.msrb.mxu3 %v2980_v40  ;;  %v3080_v40 = vld [vmem:[%s5371_s4 + $0x300] sm:$0xff] }
  0xbc   : > { %v3886_v42 = vmax.f32 %v612_v41, 0.0  ;;  %v534_v43 = vpop.f32.mrf.mxu0 }
  0xbd   : > { %v575_v44 = vpop.f32.mrf.mxu1 }
  0xbe   : > { %651 = vst.msk [vmem:[#allocation2 + $0x11] sm:$0xff] %vm628_vm0, %v3886_v42  ;;  %v576_v45 = vadd.f32 %v575_v44, %v534_v43  ;;  %v3051_v44 = vld [vmem:[%s5371_s4 + $0x298] sm:$0xff] }
  0xc0   : > { %v601_v50 = vmul.f32 %v3871_v33, %v576_v45  ;;  %v3091_v45 = vld [vmem:[%s5371_s4 + $0x358] sm:$0xff] }
  0xc1   : > { %1444 = vmatpush.msrb.mxu0 %v3091_v45  ;;  %v3045_v45 = vld [vmem:[%s5371_s4 + $0x268] sm:$0xff] }
  0xc2   : > { %v613_v51 = vadd.f32 %v3882_v39, %v601_v50 }
  0xc3   : > { %1445 = vmatpush.msrb.mxu0 %v3090_v48  ;;  %v3064_v48 = vld [vmem:[%s5371_s4 + $0x2c0] sm:$0xff] }
  0xc4   : > { %v3904_v52 = vmax.f32 %v613_v51, 0.0  ;;  %v537_v53 = vpop.f32.mrf.mxu0  ;;  %v3089_v51 = vld [vmem:[%s5371_s4 + $0x348] sm:$0xff] }
  0xc5   : > { %v578_v54 = vpop.f32.mrf.mxu1  ;;  %v680_v55 = vld [vmem:[#allocation2 + $0x11] sm:$0xff]  ;;  %1446 = vmatpush.msrb.mxu0 %v3089_v51 }
  0xc6   : > { %v3906_v56 = vld [vmem:[#allocation2 + $0x10] sm:$0xff]  ;;  %652 = vst.msk [vmem:[#allocation2 + $0x21] sm:$0xff] %vm628_vm0, %v3904_v52  ;;  %v579_v57 = vadd.f32 %v578_v54, %v537_v53  ;;  %2945 = vmatmul.msk.f32.gmra.mxu0 %vm628_vm0, %v680_v55 }
  0xc7   : > { %2953 = vmatmul.msk.f32.gmra.mxu1 %vm628_vm0, %v3906_v56  ;;  %v3986_v26 = vld [vmem:[#allocation2 + $0x12] sm:$0xff]  ;;  %1447 = vmatpush.msrb.mxu0 %v3088_v59  ;;  %v3061_v59 = vld [vmem:[%s5371_s4 + $0x2a8] sm:$0xff] }
  0xc8   : > { %v602_v62 = vmul.f32 %v3871_v33, %v579_v57  ;;  %v3042_v51 = vld [vmem:[%s5371_s4 + $0x250] sm:$0xff] }
  0xc9   : > { %1448 = vmatpush.msrb.mxu0 %v3087_v63  ;;  %v3060_v63 = vld [vmem:[%s5371_s4 + $0x2a0] sm:$0xff] }
  0xca   : > { %v614_v1 = vadd.f32 %v3882_v39, %v602_v62  ;;  %v3070_v62 = vld [vmem:[%s5371_s4 + $0x2f0] sm:$0xff] }
  0xcc   : > { %v3930_v2 = vmax.f32 %v614_v1, 0.0  ;;  %v540_v3 = vpop.f32.mrf.mxu0  ;;  %v3049_v1 = vld [vmem:[%s5371_s4 + $0x288] sm:$0xff] }
  0xcd   : > { %v581_v4 = vpop.f32.mrf.mxu1  ;;  %v3932_v5 = vld [vmem:[#allocation2 + $0x21] sm:$0xff] }
  0xce   : > { %v3934_v6 = vld [vmem:[#allocation2 + $0x20] sm:$0xff]  ;;  %653 = vst.msk [vmem:[#allocation2 + $0x31] sm:$0xff] %vm628_vm0, %v3930_v2  ;;  %v582_v7 = vadd.f32 %v581_v4, %v540_v3  ;;  %2946 = vmatmul.msk.f32.gmra.mxu0 %vm628_vm0, %v3932_v5  ;;  %v3069_v4 = vld [vmem:[%s5371_s4 + $0x2e8] sm:$0xff] }
  0xcf   : > { %2954 = vmatmul.msk.f32.gmra.mxu1 %vm628_vm0, %v3934_v6  ;;  %v4020_v43 = vld [vmem:[#allocation2 + $0x22] sm:$0xff] }
  0xd0   : > { %v603_v12 = vmul.f32 %v3871_v33, %v582_v7  ;;  %v3086_v7 = vld [vmem:[%s5371_s4 + $0x330] sm:$0xff] }
  0xd1   : > { %1449 = vmatpush.msrb.mxu0 %v3086_v7 }
  0xd2   : > { %v615_v15 = vadd.f32 %v3882_v39, %v603_v12 }
  0xd3   : > { %1450 = vmatpush.msrb.mxu0 %v3085_v14 }
  0xd4   : > { %v3968_v18 = vmax.f32 %v615_v15, 0.0  ;;  %v543_v20 = vpop.f32.mrf.mxu0 }
  0xd5   : > { %v584_v21 = vpop.f32.mrf.mxu1  ;;  %v3973_v22 = vld [vmem:[#allocation2 + $0x31] sm:$0xff]  ;;  %1451 = vmatpush.msrb.mxu0 %v3084_v17  ;;  %v3105_v17 = vld [vmem:[%s5374_s7 + $0x68] sm:$0xff] }
  0xd6   : > { %v3975_v23 = vld [vmem:[#allocation2 + $0x30] sm:$0xff]  ;;  %654 = vst.msk [vmem:[#allocation2 + $0x41] sm:$0xff] %vm628_vm0, %v3968_v18  ;;  %v585_v25 = vadd.f32 %v584_v21, %v543_v20  ;;  %2947 = vmatmul.msk.f32.vlgmr.msra.gmra.mxu2 %vm628_vm0, %v3973_v22  ;;  %3012 = vmatmul.msk.f32.vlgmr.msra.gmra.mxu0 %vm628_vm0, %v680_v55  ;;  %v3068_v20 = vld [vmem:[%s5371_s4 + $0x2e0] sm:$0xff] }
  0xd7   : > { %2955 = vmatmul.msk.f32.vlgmr.msra.gmra.mxu3 %vm628_vm0, %v3975_v23  ;;  %3032 = vmatmul.msk.f32.vlgmr.msra.gmra.mxu1 %vm628_vm0, %v3986_v26  ;;  %v4061_v61 = vld [vmem:[#allocation2 + $0x32] sm:$0xff] }
  0xd8   : > { %v604_v29 = vmul.f32 %v3871_v33, %v585_v25  ;;  %1256 = vmatpush.msra.mxu2 %v3051_v44  ;;  %1350 = vmatpush.msra.mxu3 %v3071_v46  ;;  %v3083_v25 = vld [vmem:[%s5371_s4 + $0x318] sm:$0xff]  ;;  %v3065_v46 = vld [vmem:[%s5371_s4 + $0x2c8] sm:$0xff] }
  0xd9   : > { %1452 = vmatpush.msrb.mxu0 %v3083_v25 }
  0xda   : > { %v616_v32 = vadd.f32 %v3882_v39, %v604_v29  ;;  %1257 = vmatpush.msra.mxu2 %v3050_v49  ;;  %1351 = vmatpush.msra.mxu3 %v3070_v62  ;;  %v3043_v49 = vld [vmem:[%s5371_s4 + $0x258] sm:$0xff]  ;;  %v3040_v62 = vld [vmem:[%s5371_s4 + $0x240] sm:$0xff] }
  0xdb   : > { %1453 = vmatpush.msrb.mxu0 %v3082_v30 }
  0xdc   : > { %v4005_v34 = vmax.f32 %v616_v32, 0.0  ;;  %v546_v35 = vpop.f32.mrf.mxu0  ;;  %1258 = vmatpush.msra.mxu2 %v3049_v1  ;;  %1352 = vmatpush.msra.mxu3 %v3069_v4  ;;  %v3081_v32 = vld [vmem:[%s5371_s4 + $0x308] sm:$0xff]  ;;  %v1402_v1 = vld [vmem:[#allocation2 + $0x92] sm:$0xff] }
  0xdd   : > { %v587_v36 = vpop.f32.mrf.mxu1  ;;  %v4007_v37 = vld [vmem:[#allocation2 + $0x41] sm:$0xff]  ;;  %1454 = vmatpush.msrb.mxu0 %v3081_v32  ;;  %v3107_v4 = vld [vmem:[%s5374_s7 + $0x78] sm:$0xff]  ;;  %v3102_v32 = vld [vmem:[%s5374_s7 + $0x50] sm:$0xff] }
  0xde   : > { %v4009_v38 = vld [vmem:[#allocation2 + $0x40] sm:$0xff]  ;;  %655 = vst.msk [vmem:[#allocation2 + $0x51] sm:$0xff] %vm628_vm0, %v4005_v34  ;;  %v588_v41 = vadd.f32 %v587_v36, %v546_v35  ;;  %2948 = vmatmul.msk.f32.gmra.mxu2 %vm628_vm0, %v4007_v37  ;;  %3013 = vmatmul.msk.f32.gmra.mxu0 %vm628_vm0, %v3932_v5  ;;  %v3046_v35 = vld [vmem:[%s5371_s4 + $0x270] sm:$0xff] }
  0xdf   : > { %2956 = vmatmul.msk.f32.gmra.mxu3 %vm628_vm0, %v4009_v38  ;;  %3033 = vmatmul.msk.f32.gmra.mxu1 %vm628_vm0, %v4020_v43  ;;  %v4099_v15 = vld [vmem:[#allocation2 + $0x42] sm:$0xff]  ;;  %v3066_v36 = vld [vmem:[%s5371_s4 + $0x2d0] sm:$0xff] }
  0xe0   : > { %v605_v47 = vmul.f32 %v3871_v33, %v588_v41  ;;  %1259 = vmatpush.msra.mxu2 %v3048_v19  ;;  %1353 = vmatpush.msra.mxu3 %v3068_v20  ;;  %v830_v41 = vld [vmem:[#allocation2 + $0x2] sm:$0xff] }
  0xe1   : > { %1455 = vmatpush.msrb.mxu0 %v3080_v40  ;;  %1617 = vmatpush.msrb.mxu1 %v3107_v4  ;;  %v3125_v4 = vld [vmem:[%s5374_s7 + $0x88] sm:$0xff] }
  0xe2   : > { %v617_v50 = vadd.f32 %v3882_v39, %v605_v47  ;;  %1260 = vmatpush.msra.mxu2 %v3047_v24  ;;  %1354 = vmatpush.msra.mxu3 %v3067_v31  ;;  %v3044_v47 = vld [vmem:[%s5371_s4 + $0x260] sm:$0xff] }
  0xe3   : > { %v3104_v24 = vld [vmem:[%s5374_s7 + $0x60] sm:$0xff] }
  0xe4   : > { %v4046_v53 = vmax.f32 %v617_v50, 0.0  ;;  %v549_v54 = vpop.f32.mrf.mxu0  ;;  %1261 = vmatpush.msra.mxu2 %v3046_v35  ;;  %1355 = vmatpush.msra.mxu3 %v3066_v36 }
  0xe5   : > { %v590_v55 = vpop.f32.mrf.mxu1  ;;  %v4048_v57 = vld [vmem:[#allocation2 + $0x51] sm:$0xff] }
  0xe6   : > { %v4050_v58 = vld [vmem:[#allocation2 + $0x50] sm:$0xff]  ;;  %656 = vst.msk [vmem:[#allocation2 + $0x61] sm:$0xff] %vm628_vm0, %v4046_v53  ;;  %v591_v60 = vadd.f32 %v590_v55, %v549_v54  ;;  %2949 = vmatmul.msk.f32.gmra.mxu2 %vm628_vm0, %v4048_v57  ;;  %3014 = vmatmul.msk.f32.gmra.mxu0 %vm628_vm0, %v3973_v22  ;;  %v3041_v55 = vld [vmem:[%s5371_s4 + $0x248] sm:$0xff] }
  0xe7   : > { %2957 = vmatmul.msk.f32.gmra.mxu3 %vm628_vm0, %v4050_v58  ;;  %3034 = vmatmul.msk.f32.gmra.mxu1 %vm628_vm0, %v4061_v61  ;;  %v3062_v54 = vld [vmem:[%s5371_s4 + $0x2b0] sm:$0xff] }
  0xe8   : > { %v606_v3 = vmul.f32 %v3871_v33, %v591_v60  ;;  %1262 = vmatpush.msra.mxu2 %v3045_v45  ;;  %1356 = vmatpush.msra.mxu3 %v3065_v46  ;;  %v3131_v45 = vld [vmem:[%s5374_s7 + $0xb8] sm:$0xff]  ;;  %v1565_v46 = vld [vmem:[%s5374_s7 + $0x28] sm:$0xff] }
  0xea   : > { %v618_v8 = vadd.f32 %v3882_v39, %v606_v3  ;;  %1263 = vmatpush.msra.mxu2 %v3044_v47  ;;  %1357 = vmatpush.msra.mxu3 %v3064_v48  ;;  %v3130_v47 = vld [vmem:[%s5374_s7 + $0xb0] sm:$0xff]  ;;  %v3101_v48 = vld [vmem:[%s5374_s7 + $0x48] sm:$0xff] }
  0xec   : > { %v4084_v9 = vmax.f32 %v618_v8, 0.0  ;;  %v552_v12 = vpop.f32.mrf.mxu0  ;;  %1264 = vmatpush.msra.mxu2 %v3043_v49  ;;  %v1564_v49 = vld [vmem:[%s5374_s7 + $0x20] sm:$0xff] }
  0xed   : > { %v4086_v10 = vld [vmem:[#allocation2 + $0x61] sm:$0xff]  ;;  %v593_v13 = vpop.f32.mrf.mxu1 }
  0xee   : > { %v4088_v11 = vld [vmem:[#allocation2 + $0x60] sm:$0xff]  ;;  %657 = vst.msk [vmem:[#allocation2 + $0x71] sm:$0xff] %vm628_vm0, %v4084_v9  ;;  %2950 = vmatmul.msk.f32.gmra.mxu2 %vm628_vm0, %v4086_v10  ;;  %v594_v16 = vadd.f32 %v593_v13, %v552_v12  ;;  %3015 = vmatmul.msk.f32.gmra.mxu0 %vm628_vm0, %v4007_v37  ;;  %v1308_v12 = vld [vmem:[#allocation2 + $0x91] sm:$0xff] }
  0xef   : > { %2958 = vmatmul.msk.f32.gmra.mxu3 %vm628_vm0, %v4088_v11  ;;  %3035 = vmatmul.msk.f32.gmra.mxu1 %vm628_vm0, %v4099_v15  ;;  %v1117_v44 = vld [vmem:[#allocation2 + $0x62] sm:$0xff]  ;;  %v3106_v13 = vld [vmem:[%s5374_s7 + $0x70] sm:$0xff] }
  0xf0   : > { %v607_v21 = vmul.f32 %v3871_v33, %v594_v16  ;;  %1265 = vmatpush.msra.mxu2 %v3042_v51  ;;  %1618 = vmatpush.msrb.mxu1 %v3106_v13 }
  0xf2   : > { %v619_v27 = vadd.f32 %v3882_v39, %v607_v21  ;;  %v4135_v39 = vld [vmem:[#allocation2 + $0x52] sm:$0xff]  ;;  %1266 = vmatpush.msra.mxu2 %v3041_v55  ;;  %1619 = vmatpush.msrb.mxu1 %v3105_v17  ;;  %v3128_v55 = vld [vmem:[%s5374_s7 + $0xa0] sm:$0xff] }
  0xf4   : > { %v4122_v28 = vmax.f32 %v619_v27, 0.0  ;;  %1267 = vmatpush.msra.mxu2 %v3040_v62  ;;  %1620 = vmatpush.msrb.mxu1 %v3104_v24  ;;  %v3127_v62 = vld [vmem:[%s5374_s7 + $0x98] sm:$0xff]  ;;  %v1552_v24 = vld [vmem:[#allocation3] sm:$0xff] }
  0xf5   : > { %v4124_v29 = vld [vmem:[#allocation2 + $0x71] sm:$0xff]  ;;  %v4333_v31 = vpop.f32.mrf.mxu1 }
  0xf6   : > { %v4126_v33 = vld [vmem:[#allocation2 + $0x70] sm:$0xff]  ;;  %2951 = vmatmul.msk.f32.gmra.mxu2 %vm628_vm0, %v4124_v29  ;;  %658 = vst.msk [vmem:[#allocation2 + $0x81] sm:$0xff] %vm628_vm0, %v4122_v28  ;;  %3016 = vmatmul.msk.f32.gmra.mxu0 %vm628_vm0, %v4048_v57 }
  0xf7   : > { %2959 = vmatmul.msk.f32.gmra.mxu3 %vm628_vm0, %v4126_v33  ;;  %3036 = vmatmul.msk.f32.gmra.mxu1 %vm628_vm0, %v4135_v39 }
  0xfd   : > { %v1025_v50 = vld [vmem:[#allocation2 + $0x81] sm:$0xff] }
  0xfe   : > { %2972 = vmatmul.msk.f32.vlgmr.msrb.gmra.mxu2 %vm628_vm0, %v830_v41  ;;  %3017 = vmatmul.msk.f32.gmra.mxu0 %vm628_vm0, %v4086_v10  ;;  %v1119_v60 = vld [vmem:[#allocation2 + $0x82] sm:$0xff]  ;;  %v1567_v41 = vld [vmem:[%s5374_s7 + $0x38] sm:$0xff] }
  0xff   : > { %2992 = vmatmul.msk.f32.vlgmr.msrb.gmra.mxu3 %vm628_vm0, %v3906_v56  ;;  %3037 = vmatmul.msk.f32.gmra.mxu1 %vm628_vm0, %v1117_v44  ;;  %v1118_v56 = vld [vmem:[#allocation2 + $0x72] sm:$0xff] }
 0x100   : > { %1682 = vmatpush.msrb.mxu2 %v1567_v41  ;;  %v1715_v41 = vld [vmem:[#allocation3 + $0x2] sm:$0xff] }
 0x106   : > { %2973 = vmatmul.msk.f32.gmra.mxu2 %vm628_vm0, %v3986_v26  ;;  %3018 = vmatmul.msk.f32.gmra.mxu0 %vm628_vm0, %v4124_v29  ;;  %v3063_v26 = vld [vmem:[%s5371_s4 + $0x2b8] sm:$0xff] }
 0x107   : > { %2993 = vmatmul.msk.f32.gmra.mxu3 %vm628_vm0, %v3934_v6  ;;  %3038 = vmatmul.msk.f32.gmra.mxu1 %vm628_vm0, %v1118_v56 }
 0x108   : > { %1358 = vmatpush.msra.mxu3 %v3063_v26  ;;  %v3129_v26 = vld [vmem:[%s5374_s7 + $0xa8] sm:$0xff] }
 0x10a   : > { %1359 = vmatpush.msra.mxu3 %v3062_v54  ;;  %v1563_v54 = vld [vmem:[%s5374_s7 + $0x18] sm:$0xff] }
 0x10c   : > { %1360 = vmatpush.msra.mxu3 %v3061_v59 }
 0x10e   : > { %2974 = vmatmul.msk.f32.gmra.mxu2 %vm628_vm0, %v4020_v43  ;;  %3019 = vmatmul.msk.f32.gmra.mxu0 %vm628_vm0, %v1025_v50 }
 0x10f   : > { %2994 = vmatmul.msk.f32.gmra.mxu3 %vm628_vm0, %v3975_v23  ;;  %3039 = vmatmul.msk.f32.gmra.mxu1 %vm628_vm0, %v1119_v60 }
 0x110   : > { %1361 = vmatpush.msra.mxu3 %v3060_v63  ;;  %v1561_v63 = vld [vmem:[%s5374_s7 + $0x8] sm:$0xff] }
 0x112   : > { %1764 = vmatpush.msrb.mxu3 %v3131_v45 }
 0x114   : > { %1765 = vmatpush.msrb.mxu3 %v3130_v47  ;;  %v3144_v47 = vld [vmem:[%s5374_s7 + $0xe0] sm:$0xff] }
 0x116   : > { %2975 = vmatmul.msk.f32.gmra.mxu2 %vm628_vm0, %v4061_v61  ;;  %3092 = vmatmul.msk.f32.vlgmr.msrb.gmra.mxu0 %vm628_vm0, %v4020_v43  ;;  %v931_v43 = vld [vmem:[#allocation2 + $0x80] sm:$0xff] }
 0x117   : > { %2995 = vmatmul.msk.f32.gmra.mxu3 %vm628_vm0, %v4009_v38 }
 0x118   : > { %1766 = vmatpush.msrb.mxu3 %v3129_v26 }
 0x11a   : > { %1767 = vmatpush.msrb.mxu3 %v3128_v55  ;;  %v3142_v55 = vld [vmem:[%s5374_s7 + $0xd0] sm:$0xff] }
 0x11c   : > { %1768 = vmatpush.msrb.mxu3 %v3127_v62 }
 0x11e   : > { %2976 = vmatmul.msk.f32.gmra.mxu2 %vm628_vm0, %v4099_v15  ;;  %3093 = vmatmul.msk.f32.gmra.mxu0 %vm628_vm0, %v4061_v61  ;;  %v4249_v61 = vpop.f32.mrf.mxu0 }
 0x11f   : > { %2996 = vmatmul.msk.f32.gmra.mxu3 %vm628_vm0, %v4050_v58 }
 0x126   : > { %2977 = vmatmul.msk.f32.gmra.mxu2 %vm628_vm0, %v4135_v39  ;;  %3094 = vmatmul.msk.f32.gmra.mxu0 %vm628_vm0, %v4099_v15 }
 0x127   : > { %2997 = vmatmul.msk.f32.gmra.mxu3 %vm628_vm0, %v4088_v11 }
 0x12e   : > { %2978 = vmatmul.msk.f32.gmra.mxu2 %vm628_vm0, %v1117_v44  ;;  %3095 = vmatmul.msk.f32.gmra.mxu0 %vm628_vm0, %v4135_v39 }
 0x12f   : > { %2998 = vmatmul.msk.f32.gmra.mxu3 %vm628_vm0, %v4126_v33 }
 0x136   : > { %2979 = vmatmul.msk.f32.gmra.mxu2 %vm628_vm0, %v1118_v56  ;;  %3096 = vmatmul.msk.f32.gmra.mxu0 %vm628_vm0, %v1117_v44  ;;  %v1566_v44 = vld [vmem:[%s5374_s7 + $0x30] sm:$0xff] }
 0x137   : > { %2999 = vmatmul.msk.f32.gmra.mxu3 %vm628_vm0, %v931_v43  ;;  %1683 = vmatpush.msrb.mxu2 %v1566_v44  ;;  %v3145_v44 = vld [vmem:[%s5374_s7 + $0xe8] sm:$0xff] }
 0x139   : > { %1684 = vmatpush.msrb.mxu2 %v1565_v46  ;;  %v3100_v46 = vld [vmem:[%s5374_s7 + $0x40] sm:$0xff] }
 0x13b   : > { %1685 = vmatpush.msrb.mxu2 %v1564_v49  ;;  %v3143_v49 = vld [vmem:[%s5374_s7 + $0xd8] sm:$0xff] }
 0x13d   : > { %1686 = vmatpush.msrb.mxu2 %v1563_v54 }
 0x13e   : > { %3052 = vmatmul.msk.f32.vlgmr.msra.gmra.mxu2 %vm628_vm0, %v3934_v6  ;;  %3097 = vmatmul.msk.f32.gmra.mxu0 %vm628_vm0, %v1118_v56 }
 0x13f   : > { %3072 = vmatmul.msk.f32.vlgmr.msra.gmra.mxu3 %vm628_vm0, %v3932_v5 }
 0x143   : > { %v4255_v6 = vpop.f32.mrf.mxu0 }
 0x144   : > { %v4359_v56 = vpop.f32.mrf.mxu1 }
 0x145   : > { %v810_v0 = vadd.f32 %v4359_v56, %v4255_v6 }
 0x146   : > { %3053 = vmatmul.msk.f32.gmra.mxu2 %vm628_vm0, %v3975_v23  ;;  %3098 = vmatmul.msk.f32.gmra.mxu0 %vm628_vm0, %v1119_v60  ;;  %v1562_v60 = vld [vmem:[%s5374_s7 + $0x10] sm:$0xff] }
 0x147   : > { %3073 = vmatmul.msk.f32.gmra.mxu3 %vm628_vm0, %v3973_v22  ;;  %1687 = vmatpush.msrb.mxu2 %v1562_v60  ;;  %v807_v60 = vadd.f32 %v4333_v31, %v4249_v61  ;;  %v3140_v61 = vld [vmem:[%s5374_s7 + $0xc0] sm:$0xff] }
 0x149   : > { %1688 = vmatpush.msrb.mxu2 %v1561_v63  ;;  %v3141_v63 = vld [vmem:[%s5374_s7 + $0xc8] sm:$0xff] }
 0x14b   : > { %v4265_v23 = vpop.f32.mrf.mxu0 }
 0x14e   : > { %3054 = vmatmul.msk.f32.gmra.mxu2 %vm628_vm0, %v4009_v38  ;;  %3099 = vmatmul.msk.f32.gmra.mxu0 %vm628_vm0, %v1402_v1  ;;  %v1560_v1 = vld [vmem:[%s5374_s7] sm:$0xff] }
 0x14f   : > { %3074 = vmatmul.msk.f32.gmra.mxu3 %vm628_vm0, %v4007_v37  ;;  %1689 = vmatpush.msrb.mxu2 %v1560_v1  ;;  %v3163_v1 = vld [vmem:[%s5374_s7 + $0x138] sm:$0xff] }
 0x156   : > { %3055 = vmatmul.msk.f32.gmra.mxu2 %vm628_vm0, %v4050_v58 }
 0x157   : > { %3075 = vmatmul.msk.f32.gmra.mxu3 %vm628_vm0, %v4048_v57  ;;  %v4276_v57 = vpop.f32.mrf.mxu0 }
 0x159   : > { %v4261_v5 = vpop.f32.mrf.mxu2 }
 0x15a   : > { %v4263_v22 = vpop.f32.mrf.mxu3 }
 0x15e   : > { %3056 = vmatmul.msk.f32.gmra.mxu2 %vm628_vm0, %v4088_v11  ;;  %v1214_v11 = vld [vmem:[#allocation2 + $0x90] sm:$0xff] }
 0x15f   : > { %3076 = vmatmul.msk.f32.gmra.mxu3 %vm628_vm0, %v4086_v10  ;;  %v4291_v7 = vpop.f32.mrf.mxu0 }
 0x161   : > { %v4272_v37 = vpop.f32.mrf.mxu2 }
 0x162   : > { %v4274_v38 = vpop.f32.mrf.mxu3 }
 0x166   : > { %3057 = vmatmul.msk.f32.gmra.mxu2 %vm628_vm0, %v4126_v33  ;;  %v3103_v33 = vld [vmem:[%s5374_s7 + $0x58] sm:$0xff] }
 0x167   : > { %3077 = vmatmul.msk.f32.gmra.mxu3 %vm628_vm0, %v4124_v29  ;;  %v4306_v16 = vpop.f32.mrf.mxu0  ;;  %1621 = vmatpush.msrb.mxu1 %v3103_v33  ;;  %v3124_v33 = vld [vmem:[%s5374_s7 + $0x80] sm:$0xff] }
 0x169   : > { %v4282_v58 = vpop.f32.mrf.mxu2  ;;  %1622 = vmatpush.msrb.mxu1 %v3102_v32  ;;  %v3146_v32 = vld [vmem:[%s5374_s7 + $0xf0] sm:$0xff] }
 0x16a   : > { %v4284_v3 = vpop.f32.mrf.mxu3 }
 0x16b   : > { %1623 = vmatpush.msrb.mxu1 %v3101_v48  ;;  %v1568_v48 = vld [vmem:[#allocation3 + $0x1] sm:$0xff] }
 0x16d   : > { %1624 = vmatpush.msrb.mxu1 %v3100_v46 }
 0x16e   : > { %3058 = vmatmul.msk.f32.gmra.mxu2 %vm628_vm0, %v931_v43  ;;  %v3126_v43 = vld [vmem:[%s5374_s7 + $0x90] sm:$0xff]  ;;  %3108 = vmatmul.msk.f32.vlgmr.msrb.gmra.mxu1 %vm1521_vm2, %v1568_v48 }
 0x16f   : > { %3078 = vmatmul.msk.f32.gmra.mxu3 %vm628_vm0, %v1025_v50  ;;  %v4315_v21 = vpop.f32.mrf.mxu0  ;;  %1944 = vmatpush.msra.mxu1 %v3163_v1 }
 0x170   : > { %1769 = vmatpush.msrb.mxu3 %v3126_v43 }
 0x171   : > { %v4293_v8 = vpop.f32.mrf.mxu2 }
 0x172   : > { %v4295_v10 = vpop.f32.mrf.mxu3  ;;  %1770 = vmatpush.msrb.mxu3 %v3125_v4 }
 0x174   : > { %1771 = vmatpush.msrb.mxu3 %v3124_v33 }
 0x176   : > { %3059 = vmatmul.msk.f32.gmra.mxu2 %vm628_vm0, %v1214_v11  ;;  %v3147_v11 = vld [vmem:[%s5374_s7 + $0xf8] sm:$0xff] }
 0x177   : > { %3079 = vmatmul.msk.f32.gmra.mxu3 %vm628_vm0, %v1308_v12  ;;  %v4324_v29 = vpop.f32.mrf.mxu0  ;;  %v4417_v12 = vpop.f32.mrf.mxu1  ;;  %1854 = vmatpush.msra.mxu0 %v3147_v11 }
 0x179   : > { %v4302_v14 = vpop.f32.mrf.mxu2  ;;  %1855 = vmatpush.msra.mxu0 %v3146_v32 }
 0x17a   : > { %v4304_v15 = vpop.f32.mrf.mxu3 }
 0x17b   : > { %1856 = vmatpush.msra.mxu0 %v3145_v44 }
 0x17d   : > { %1857 = vmatpush.msra.mxu0 %v3144_v47 }
 0x17e   : > { %3116 = vmatmul.msk.f32.vlgmr.msrb.gmra.mxu2 %vm1521_vm2, %v1552_v24 }
 0x17f   : > { %v4338_v35 = vpop.f32.mrf.mxu0  ;;  %3132 = vmatmul.msk.f32.vlgmr.msrb.gmra.mxu3 %vm1521_vm2, %v1715_v41  ;;  %1858 = vmatpush.msra.mxu0 %v3143_v49  ;;  %v1174_v62 = vpop.f32.mrf.mxu1  ;;  %v3162_v41 = vld [vmem:[%s5374_s7 + $0x130] sm:$0xff]  ;;  %v813_v49 = vadd.f32 %v4417_v12, %v4265_v23  ;;  %v3161_v23 = vld [vmem:[%s5374_s7 + $0x128] sm:$0xff] }
 0x180   : > { %1945 = vmatpush.msra.mxu1 %v3162_v41 }
 0x181   : > { %v4311_v19 = vpop.f32.mrf.mxu2  ;;  %1859 = vmatpush.msra.mxu0 %v3142_v55  ;;  %v4511_v55 = vld [vmem:[%s5372_s5] ss:$0 sm:$0xff] }
 0x182   : > { %v4313_v20 = vpop.f32.mrf.mxu3  ;;  %v916_v43 = vadd.f32 %v4311_v19, %v807_v60  ;;  %1946 = vmatpush.msra.mxu1 %v3161_v23 }
 0x183   : > { %1860 = vmatpush.msra.mxu0 %v3141_v63 }
 0x184   : > { %v1010_v4 = vadd.f32 %v4313_v20, %v916_v43 }
 0x185   : > { %1861 = vmatpush.msra.mxu0 %v3140_v61  ;;  %v816_v61 = vadd.f32 %v4263_v22, %v4261_v5 }
 0x186   : > { %v1104_v33 = vadd.f32 %v4276_v57, %v1010_v4 }
 0x187   : > { %v4382_v59 = vpop.f32.mrf.mxu0  ;;  %v1177_v24 = vpop.f32.mrf.mxu1 }
 0x188   : > { %v1198_v46 = vadd.f32 %v1174_v62, %v1104_v33  ;;  %v4516_v62 = vld [vmem:[%s5373_s6] ss:$0 sm:$0xff] }
 0x189   : > { %v4320_v25 = vpop.f32.mrf.mxu2 }
 0x18a   : > { %v4322_v27 = vpop.f32.mrf.mxu3  ;;  %v917_v32 = vadd.f32 %v4320_v25, %v810_v0 }
 0x18c   : > { %v1011_v44 = vadd.f32 %v4322_v27, %v917_v32 }
 0x18e   : > { %v1105_v56 = vadd.f32 %v4291_v7, %v1011_v44 }
 0x18f   : > { %v4441_v45 = vpop.f32.mrf.mxu0  ;;  %v1180_v60 = vpop.f32.mrf.mxu1 }
 0x190   : > { %v1199_v12 = vadd.f32 %v1177_v24, %v1105_v56  ;;  %v3160_v24 = vld [vmem:[%s5374_s7 + $0x120] sm:$0xff] }
 0x191   : > { %v4329_v30 = vpop.f32.mrf.mxu2  ;;  %1947 = vmatpush.msra.mxu1 %v3160_v24 }
 0x192   : > { %v4331_v39 = vpop.f32.mrf.mxu3  ;;  %v918_v57 = vadd.f32 %v4329_v30, %v813_v49 }
 0x194   : > { %v1012_v7 = vadd.f32 %v4331_v39, %v918_v57 }
 0x196   : > { %v1106_v0 = vadd.f32 %v4306_v16, %v1012_v7 }
 0x197   : > { %v1457_v31 = vpop.f32.mrf.mxu0  ;;  %v1183_v5 = vpop.f32.mrf.mxu1 }
 0x198   : > { %v1200_v16 = vadd.f32 %v1180_v60, %v1106_v0 }
 0x199   : > { %v4340_v36 = vpop.f32.mrf.mxu2 }
 0x19a   : > { %v4342_v40 = vpop.f32.mrf.mxu3  ;;  %v919_v33 = vadd.f32 %v4340_v36, %v816_v61 }
 0x19c   : > { %v1013_v22 = vadd.f32 %v4342_v40, %v919_v33 }
 0x19f   : > { %v1460_v20 = vpop.f32.mrf.mxu0  ;;  %v1186_v61 = vpop.f32.mrf.mxu1 }
 0x1a1   : > { %v4370_v50 = vpop.f32.mrf.mxu2 }
 0x1a2   : > { %v4372_v51 = vpop.f32.mrf.mxu3 }
 0x1a9   : > { %v4421_v13 = vpop.f32.mrf.mxu2 }
 0x1aa   : > { %v4423_v17 = vpop.f32.mrf.mxu3 }
 0x1b1   : > { %v4464_v26 = vpop.f32.mrf.mxu2 }
 0x1b2   : > { %v4466_v54 = vpop.f32.mrf.mxu3 }
 0x1b9   : > { %v4492_v11 = vpop.f32.mrf.mxu2 }
 0x1ba   : > { %v4494_v19 = vpop.f32.mrf.mxu3 }
 0x1c1   : > { %v1269_v47 = vpop.f32.mrf.mxu2 }
 0x1c2   : > { %v1363_v48 = vpop.f32.mrf.mxu3  ;;  %v1293_v6 = vadd.f32 %v1269_v47, %v1198_v46  ;;  %v819_v47 = vadd.f32 %v4274_v38, %v4272_v37  ;;  %v3159_v38 = vld [vmem:[%s5374_s7 + $0x118] sm:$0xff] }
 0x1c3   : > { %1948 = vmatpush.msra.mxu1 %v3159_v38 }
 0x1c4   : > { %v1387_v25 = vadd.f32 %v1363_v48, %v1293_v6  ;;  %v920_v6 = vadd.f32 %v4370_v50, %v819_v47  ;;  %v825_v47 = vadd.f32 %v4295_v10, %v4293_v8  ;;  %v1189_v10 = vpop.f32.mrf.mxu1 }
 0x1c6   : > { %v1481_v27 = vadd.f32 %v1457_v31, %v1387_v25  ;;  %v1463_v31 = vpop.f32.mrf.mxu0 }
 0x1c8   : > { %v1493_v30 = vmul.f32 %v4511_v55, %v1481_v27 }
 0x1c9   : > { %v1272_v63 = vpop.f32.mrf.mxu2 }
 0x1ca   : > { %v1366_v43 = vpop.f32.mrf.mxu3  ;;  %v1505_v1 = vadd.f32 %v4516_v62, %v1493_v30  ;;  %v1294_v4 = vadd.f32 %v1272_v63, %v1199_v12  ;;  %v822_v12 = vadd.f32 %v4284_v3, %v4282_v58  ;;  %v3158_v3 = vld [vmem:[%s5374_s7 + $0x110] sm:$0xff] }
 0x1cb   : > { %1949 = vmatpush.msra.mxu1 %v3158_v3 }
 0x1cc   : > { %v4528_v32 = vmax.f32 %v1505_v1, 0.0  ;;  %v1388_v41 = vadd.f32 %v1366_v43, %v1294_v4  ;;  %v921_v1 = vadd.f32 %v4421_v13, %v822_v12  ;;  %v3195_v13 = vld [vmem:[%s5374_s7 + $0x1b8] sm:$0xff] }
 0x1cd   : > { %2125 = vmatpush.msra.mxu3 %v3195_v13  ;;  %v3190_v13 = vld [vmem:[%s5374_s7 + $0x190] sm:$0xff] }
 0x1ce   : > { %1544 = vst.msk [vmem:[#allocation3 + $0x11] sm:$0xff] %vm1521_vm2, %v4528_v32  ;;  %v1482_v39 = vadd.f32 %v1460_v20, %v1388_v41  ;;  %v1107_v20 = vadd.f32 %v4315_v21, %v1013_v22  ;;  %v1466_v56 = vpop.f32.mrf.mxu0  ;;  %v1014_v21 = vadd.f32 %v4372_v51, %v920_v6  ;;  %v1015_v24 = vadd.f32 %v4423_v17, %v921_v1 }
 0x1d0   : > { %v1494_v44 = vmul.f32 %v4511_v55, %v1482_v39  ;;  %v1201_v23 = vadd.f32 %v1183_v5, %v1107_v20  ;;  %v3193_v20 = vld [vmem:[%s5374_s7 + $0x1a8] sm:$0xff]  ;;  %v1109_v6 = vadd.f32 %v4338_v35, %v1015_v24 }
 0x1d1   : > { %v1275_v46 = vpop.f32.mrf.mxu2  ;;  %v3157_v35 = vld [vmem:[%s5374_s7 + $0x108] sm:$0xff] }
 0x1d2   : > { %v1369_v36 = vpop.f32.mrf.mxu3  ;;  %v1506_v48 = vadd.f32 %v4516_v62, %v1494_v44  ;;  %v1295_v49 = vadd.f32 %v1275_v46, %v1200_v16  ;;  %v3178_v46 = vld [vmem:[%s5374_s7 + $0x170] sm:$0xff]  ;;  %1950 = vmatpush.msra.mxu1 %v3157_v35  ;;  %v3209_v24 = vld [vmem:[%s5374_s7 + $0x1e8] sm:$0xff] }
 0x1d4   : > { %v4542_v57 = vmax.f32 %v1506_v48, 0.0  ;;  %v1389_v25 = vadd.f32 %v1369_v36, %v1295_v49  ;;  %v3194_v36 = vld [vmem:[%s5374_s7 + $0x1b0] sm:$0xff]  ;;  %v3177_v49 = vld [vmem:[%s5374_s7 + $0x168] sm:$0xff] }
 0x1d5   : > { %v4544_v40 = vld [vmem:[#allocation3 + $0x11] sm:$0xff]  ;;  %2126 = vmatpush.msra.mxu3 %v3194_v36 }
 0x1d6   : > { %v1553_v27 = vld [vmem:[#allocation3 + $0x10] sm:$0xff]  ;;  %1545 = vst.msk [vmem:[#allocation3 + $0x21] sm:$0xff] %vm1521_vm2, %v4542_v57  ;;  %v1483_v37 = vadd.f32 %v1463_v31, %v1389_v25  ;;  %3109 = vmatmul.msk.f32.gmra.mxu1 %vm1521_vm2, %v4544_v40  ;;  %v1108_v31 = vadd.f32 %v4324_v29, %v1014_v21  ;;  %v1469_v39 = vpop.f32.mrf.mxu0  ;;  %v3179_v29 = vld [vmem:[%s5374_s7 + $0x178] sm:$0xff] }
 0x1d7   : > { %v4546_v60 = vld [vmem:[#allocation3 + $0x12] sm:$0xff]  ;;  %3117 = vmatmul.msk.f32.gmra.mxu2 %vm1521_vm2, %v1553_v27  ;;  %3148 = vmatmul.msk.f32.vlgmr.msra.gmra.mxu0 %vm1521_vm2, %v1553_v27 }
 0x1d8   : > { %3133 = vmatmul.msk.f32.gmra.mxu3 %vm1521_vm2, %v4546_v60  ;;  %v1495_v50 = vmul.f32 %v4511_v55, %v1483_v37  ;;  %v1202_v22 = vadd.f32 %v1186_v61, %v1108_v31  ;;  %2034 = vmatpush.msra.mxu2 %v3179_v29  ;;  %v3191_v61 = vld [vmem:[%s5374_s7 + $0x198] sm:$0xff] }
 0x1d9   : > { %v1278_v7 = vpop.f32.mrf.mxu2  ;;  %2127 = vmatpush.msra.mxu3 %v3193_v20  ;;  %v3211_v31 = vld [vmem:[%s5374_s7 + $0x1f8] sm:$0xff] }
 0x1da   : > { %v1372_v30 = vpop.f32.mrf.mxu3  ;;  %v1507_v63 = vadd.f32 %v4516_v62, %v1495_v50  ;;  %v1296_v43 = vadd.f32 %v1278_v7, %v1201_v23  ;;  %2035 = vmatpush.msra.mxu2 %v3178_v46  ;;  %v3192_v50 = vld [vmem:[%s5374_s7 + $0x1a0] sm:$0xff]  ;;  %v3175_v7 = vld [vmem:[%s5374_s7 + $0x158] sm:$0xff]  ;;  %2215 = vmatpush.msrb.mxu0 %v3211_v31 }
 0x1db   : > { %v3156_v23 = vld [vmem:[%s5374_s7 + $0x100] sm:$0xff]  ;;  %2128 = vmatpush.msra.mxu3 %v3192_v50  ;;  %v3227_v20 = vld [vmem:[%s5374_s7 + $0x238] sm:$0xff] }
 0x1dc   : > { %v4566_v4 = vmax.f32 %v1507_v63, 0.0  ;;  %v1390_v51 = vadd.f32 %v1372_v30, %v1296_v43  ;;  %2036 = vmatpush.msra.mxu2 %v3177_v49  ;;  %v1203_v43 = vadd.f32 %v1189_v10, %v1109_v6  ;;  %1951 = vmatpush.msra.mxu1 %v3156_v23  ;;  %v3188_v49 = vld [vmem:[%s5374_s7 + $0x180] sm:$0xff]  ;;  %v3207_v10 = vld [vmem:[%s5374_s7 + $0x1d8] sm:$0xff] }
 0x1dd   : > { %v4568_v0 = vld [vmem:[#allocation3 + $0x21] sm:$0xff]  ;;  %2129 = vmatpush.msra.mxu3 %v3191_v61 }
 0x1de   : > { %v4570_v33 = vld [vmem:[#allocation3 + $0x20] sm:$0xff]  ;;  %1546 = vst.msk [vmem:[#allocation3 + $0x31] sm:$0xff] %vm1521_vm2, %v4566_v4  ;;  %v1484_v58 = vadd.f32 %v1466_v56, %v1390_v51  ;;  %3110 = vmatmul.msk.f32.gmra.mxu1 %vm1521_vm2, %v4568_v0  ;;  %v922_v56 = vadd.f32 %v4464_v26, %v825_v47  ;;  %v1472_v12 = vpop.f32.mrf.mxu0 }
 0x1df   : > { %v4572_v41 = vld [vmem:[#allocation3 + $0x22] sm:$0xff]  ;;  %3118 = vmatmul.msk.f32.gmra.mxu2 %vm1521_vm2, %v4570_v33  ;;  %3149 = vmatmul.msk.f32.gmra.mxu0 %vm1521_vm2, %v4570_v33 }
 0x1e0   : > { %3134 = vmatmul.msk.f32.gmra.mxu3 %vm1521_vm2, %v4572_v41  ;;  %v1496_v5 = vmul.f32 %v4511_v55, %v1484_v58  ;;  %v3176_v26 = vld [vmem:[%s5374_s7 + $0x160] sm:$0xff]  ;;  %v1016_v30 = vadd.f32 %v4466_v54, %v922_v56  ;;  %v3174_v54 = vld [vmem:[%s5374_s7 + $0x150] sm:$0xff]  ;;  %v828_v58 = vadd.f32 %v4304_v15, %v4302_v14  ;;  %2305 = vmatpush.msrb.mxu1 %v3227_v20 }
 0x1e1   : > { %v1281_v44 = vpop.f32.mrf.mxu2  ;;  %2037 = vmatpush.msra.mxu2 %v3176_v26  ;;  %2130 = vmatpush.msra.mxu3 %v3190_v13 }
 0x1e2   : > { %v1375_v16 = vpop.f32.mrf.mxu3  ;;  %v1508_v17 = vadd.f32 %v4516_v62, %v1496_v5  ;;  %v1297_v48 = vadd.f32 %v1281_v44, %v1202_v22  ;;  %v1110_v5 = vadd.f32 %v4382_v59, %v1016_v30  ;;  %v923_v22 = vadd.f32 %v4492_v11, %v828_v58  ;;  %v3173_v44 = vld [vmem:[%s5374_s7 + $0x148] sm:$0xff]  ;;  %v3208_v11 = vld [vmem:[%s5374_s7 + $0x1e0] sm:$0xff] }
 0x1e3   : > { %2038 = vmatpush.msra.mxu2 %v3175_v7 }
 0x1e4   : > { %v4612_v25 = vmax.f32 %v1508_v17, 0.0  ;;  %v1391_v8 = vadd.f32 %v1375_v16, %v1297_v48  ;;  %v3189_v16 = vld [vmem:[%s5374_s7 + $0x188] sm:$0xff]  ;;  %v1192_v17 = vpop.f32.mrf.mxu1  ;;  %v3172_v48 = vld [vmem:[%s5374_s7 + $0x140] sm:$0xff]  ;;  %v1017_v6 = vadd.f32 %v4494_v19, %v923_v22  ;;  %v3206_v19 = vld [vmem:[%s5374_s7 + $0x1d0] sm:$0xff] }
 0x1e5   : > { %v4614_v27 = vld [vmem:[#allocation3 + $0x31] sm:$0xff]  ;;  %2039 = vmatpush.msra.mxu2 %v3174_v54  ;;  %2131 = vmatpush.msra.mxu3 %v3189_v16 }
 0x1e6   : > { %v4616_v37 = vld [vmem:[#allocation3 + $0x30] sm:$0xff]  ;;  %1547 = vst.msk [vmem:[#allocation3 + $0x41] sm:$0xff] %vm1521_vm2, %v4612_v25  ;;  %v1485_v21 = vadd.f32 %v1469_v39, %v1391_v8  ;;  %3111 = vmatmul.msk.f32.gmra.mxu1 %vm1521_vm2, %v4614_v27  ;;  %v1204_v8 = vadd.f32 %v1192_v17, %v1110_v5  ;;  %v1475_v23 = vpop.f32.mrf.mxu0  ;;  %v1111_v7 = vadd.f32 %v4441_v45, %v1017_v6  ;;  %v3225_v17 = vld [vmem:[%s5374_s7 + $0x228] sm:$0xff] }
 0x1e7   : > { %v4618_v38 = vld [vmem:[#allocation3 + $0x32] sm:$0xff]  ;;  %3119 = vmatmul.msk.f32.gmra.mxu2 %vm1521_vm2, %v4616_v37  ;;  %3150 = vmatmul.msk.f32.gmra.mxu0 %vm1521_vm2, %v4616_v37 }
 0x1e8   : > { %3135 = vmatmul.msk.f32.gmra.mxu3 %vm1521_vm2, %v4618_v38  ;;  %v1497_v63 = vmul.f32 %v4511_v55, %v1485_v21  ;;  %v3210_v39 = vld [vmem:[%s5374_s7 + $0x1f0] sm:$0xff]  ;;  %2040 = vmatpush.msra.mxu2 %v3173_v44 }
 0x1e9   : > { %v1284_v1 = vpop.f32.mrf.mxu2  ;;  %2216 = vmatpush.msrb.mxu0 %v3210_v39  ;;  %2132 = vmatpush.msra.mxu3 %v3188_v49  ;;  %v3226_v54 = vld [vmem:[%s5374_s7 + $0x230] sm:$0xff] }
 0x1ea   : > { %v1378_v51 = vpop.f32.mrf.mxu3  ;;  %v1509_v3 = vadd.f32 %v4516_v62, %v1497_v63  ;;  %v1298_v29 = vadd.f32 %v1284_v1, %v1203_v43  ;;  %2041 = vmatpush.msra.mxu2 %v3172_v48  ;;  %v3205_v63 = vld [vmem:[%s5374_s7 + $0x1c8] sm:$0xff]  ;;  %2306 = vmatpush.msrb.mxu1 %v3226_v54  ;;  %v2404_v54 = vld [vmem:[%s5378_s11 + $0x10] sm:$0xff] }
 0x1eb   : > { %2217 = vmatpush.msrb.mxu0 %v3209_v24 }
 0x1ec   : > { %v4670_v14 = vmax.f32 %v1509_v3, 0.0  ;;  %v1392_v15 = vadd.f32 %v1378_v51, %v1298_v29  ;;  %v1195_v45 = vpop.f32.mrf.mxu1  ;;  %v3204_v51 = vld [vmem:[%s5374_s7 + $0x1c0] sm:$0xff]  ;;  %2307 = vmatpush.msrb.mxu1 %v3225_v17 }
 0x1ed   : > { %v4678_v46 = vld [vmem:[#allocation3 + $0x41] sm:$0xff]  ;;  %2218 = vmatpush.msrb.mxu0 %v3208_v11  ;;  %v1205_v58 = vadd.f32 %v1195_v45, %v1111_v7 }
 0x1ee   : > { %v4680_v36 = vld [vmem:[#allocation3 + $0x40] sm:$0xff]  ;;  %1548 = vst.msk [vmem:[#allocation3 + $0x51] sm:$0xff] %vm1521_vm2, %v4670_v14  ;;  %v1486_v59 = vadd.f32 %v1472_v12, %v1392_v15  ;;  %3112 = vmatmul.msk.f32.gmra.mxu1 %vm1521_vm2, %v4678_v46  ;;  %v1478_v5 = vpop.f32.mrf.mxu0  ;;  %v2407_v45 = vld [vmem:[%s5378_s11 + $0x28] sm:$0xff] }
 0x1ef   : > { %v4682_v47 = vld [vmem:[#allocation3 + $0x42] sm:$0xff]  ;;  %3120 = vmatmul.msk.f32.gmra.mxu2 %vm1521_vm2, %v4680_v36  ;;  %3151 = vmatmul.msk.f32.gmra.mxu0 %vm1521_vm2, %v4680_v36 }
 0x1f0   : > { %3136 = vmatmul.msk.f32.gmra.mxu3 %vm1521_vm2, %v4682_v47  ;;  %v1498_v56 = vmul.f32 %v4511_v55, %v1486_v59  ;;  %2219 = vmatpush.msrb.mxu0 %v3207_v10  ;;  %v3223_v10 = vld [vmem:[%s5374_s7 + $0x218] sm:$0xff]  ;;  %v2394_v7 = vld [vmem:[%s5377_s10 + $0x80] sm:$0xff] }
 0x1f1   : > { %v1287_v21 = vpop.f32.mrf.mxu2 }
 0x1f2   : > { %v1381_v35 = vpop.f32.mrf.mxu3  ;;  %v1510_v26 = vadd.f32 %v4516_v62, %v1498_v56  ;;  %v1299_v50 = vadd.f32 %v1287_v21, %v1204_v8  ;;  %2220 = vmatpush.msrb.mxu0 %v3206_v19  ;;  %v2398_v21 = vld [vmem:[%s5377_s10 + $0xa0] sm:$0xff] }
 0x1f3   : > { %v2410_v19 = vld [vmem:[%s5378_s11 + $0x40] sm:$0xff] }
 0x1f4   : > { %v4716_v30 = vmax.f32 %v1510_v26, 0.0  ;;  %v1393_v12 = vadd.f32 %v1381_v35, %v1299_v50  ;;  %2221 = vmatpush.msrb.mxu0 %v3205_v63  ;;  %v2412_v35 = vld [vmem:[%s5378_s11 + $0x50] sm:$0xff]  ;;  %v2413_v26 = vld [vmem:[%s5378_s11 + $0x58] sm:$0xff]  ;;  %v4950_v17 = vpop.f32.mrf.mxu1 }
 0x1f5   : > { %v4721_v43 = vld [vmem:[#allocation3 + $0x51] sm:$0xff] }
 0x1f6   : > { %v4723_v61 = vld [vmem:[#allocation3 + $0x50] sm:$0xff]  ;;  %1549 = vst.msk [vmem:[#allocation3 + $0x61] sm:$0xff] %vm1521_vm2, %v4716_v30  ;;  %v1487_v1 = vadd.f32 %v1475_v23, %v1393_v12  ;;  %3113 = vmatmul.msk.f32.gmra.mxu1 %vm1521_vm2, %v4721_v43  ;;  %2222 = vmatpush.msrb.mxu0 %v3204_v51  ;;  %v2411_v23 = vld [vmem:[%s5378_s11 + $0x48] sm:$0xff]  ;;  %v3220_v12 = vld [vmem:[%s5374_s7 + $0x200] sm:$0xff] }
 0x1f7   : > { %v4725_v31 = vld [vmem:[#allocation3 + $0x52] sm:$0xff]  ;;  %3121 = vmatmul.msk.f32.gmra.mxu2 %vm1521_vm2, %v4723_v61  ;;  %3152 = vmatmul.msk.f32.gmra.mxu0 %vm1521_vm2, %v4723_v61  ;;  %v2390_v51 = vld [vmem:[%s5377_s10 + $0x60] sm:$0xff] }
 0x1f8   : > { %3137 = vmatmul.msk.f32.gmra.mxu3 %vm1521_vm2, %v4725_v31  ;;  %v1499_v39 = vmul.f32 %v4511_v55, %v1487_v1  ;;  %v2396_v50 = vld [vmem:[%s5377_s10 + $0x90] sm:$0xff]  ;;  %v2409_v1 = vld [vmem:[%s5378_s11 + $0x38] sm:$0xff] }
 0x1f9   : > { %v1290_v3 = vpop.f32.mrf.mxu2  ;;  %v2408_v63 = vld [vmem:[%s5378_s11 + $0x30] sm:$0xff] }
 0x1fa   : > { %v1384_v29 = vpop.f32.mrf.mxu3  ;;  %v1511_v13 = vadd.f32 %v4516_v62, %v1499_v39  ;;  %v1300_v24 = vadd.f32 %v1290_v3, %v1205_v58  ;;  %v2405_v39 = vld [vmem:[%s5378_s11 + $0x18] sm:$0xff]  ;;  %v2388_v58 = vld [vmem:[%s5377_s10 + $0x50] sm:$0xff]  ;;  %v2402_v3 = vld [vmem:[%s5378_s11] sm:$0xff] }
 0x1fc   : > { %v4745_v22 = vmax.f32 %v1511_v13, 0.0  ;;  %v1394_v15 = vadd.f32 %v1384_v29, %v1300_v24  ;;  %v2403_v29 = vld [vmem:[%s5378_s11 + $0x8] sm:$0xff]  ;;  %v2386_v13 = vld [vmem:[%s5377_s10 + $0x40] sm:$0xff] }
 0x1fd   : > { %v4747_v44 = vld [vmem:[#allocation3 + $0x61] sm:$0xff] }
 0x1fe   : > { %v4749_v16 = vld [vmem:[#allocation3 + $0x60] sm:$0xff]  ;;  %1550 = vst.msk [vmem:[#allocation3 + $0x71] sm:$0xff] %vm1521_vm2, %v4745_v22  ;;  %v1488_v11 = vadd.f32 %v1478_v5, %v1394_v15  ;;  %3114 = vmatmul.msk.f32.gmra.mxu1 %vm1521_vm2, %v4747_v44  ;;  %v2380_v5 = vld [vmem:[%s5377_s10 + $0x10] sm:$0xff] }
 0x1ff   : > { %v4751_v59 = vld [vmem:[#allocation3 + $0x62] sm:$0xff]  ;;  %3122 = vmatmul.msk.f32.gmra.mxu2 %vm1521_vm2, %v4749_v16  ;;  %3153 = vmatmul.msk.f32.gmra.mxu0 %vm1521_vm2, %v4749_v16 }
 0x200   : > { %3138 = vmatmul.msk.f32.gmra.mxu3 %vm1521_vm2, %v4751_v59  ;;  %v1500_v48 = vmul.f32 %v4511_v55, %v1488_v11  ;;  %v3224_v55 = vld [vmem:[%s5374_s7 + $0x220] sm:$0xff] }
 0x201   : > { %2308 = vmatpush.msrb.mxu1 %v3224_v55  ;;  %v2382_v24 = vld [vmem:[%s5377_s10 + $0x20] sm:$0xff]  ;;  %v2391_v55 = vld [vmem:[%s5377_s10 + $0x68] sm:$0xff] }
 0x202   : > { %v1512_v49 = vadd.f32 %v4516_v62, %v1500_v48  ;;  %v2378_v15 = vld [vmem:[%s5377_s10] sm:$0xff]  ;;  %v2173_v48 = vld [vmem:[#allocation3 + $0x91] sm:$0xff] }
 0x203   : > { %2309 = vmatpush.msrb.mxu1 %v3223_v10  ;;  %v2387_v10 = vld [vmem:[%s5377_s10 + $0x48] sm:$0xff] }
 0x204   : > { %v4768_v20 = vmax.f32 %v1512_v49, 0.0 }
 0x205   : > { %v4770_v6 = vld [vmem:[#allocation3 + $0x71] sm:$0xff] }
 0x206   : > { %v4772_v56 = vld [vmem:[#allocation3 + $0x70] sm:$0xff]  ;;  %1551 = vst.msk [vmem:[#allocation3 + $0x81] sm:$0xff] %vm1521_vm2, %v4768_v20  ;;  %3115 = vmatmul.msk.f32.gmra.mxu1 %vm1521_vm2, %v4770_v6 }
 0x207   : > { %v4774_v8 = vld [vmem:[#allocation3 + $0x72] sm:$0xff]  ;;  %3123 = vmatmul.msk.f32.gmra.mxu2 %vm1521_vm2, %v4772_v56  ;;  %3154 = vmatmul.msk.f32.gmra.mxu0 %vm1521_vm2, %v4772_v56 }
 0x208   : > { %3139 = vmatmul.msk.f32.gmra.mxu3 %vm1521_vm2, %v4774_v8 }
 0x20d   : > { %v4789_v62 = vld [vmem:[#allocation3 + $0x80] sm:$0xff] }
 0x20e   : > { %3164 = vmatmul.msk.f32.vlgmr.msra.gmra.mxu1 %vm1521_vm2, %v4544_v40  ;;  %v3222_v40 = vld [vmem:[%s5374_s7 + $0x210] sm:$0xff]  ;;  %v4943_v11 = vld [vmem:[#allocation3 + $0x82] sm:$0xff] }
 0x20f   : > { %3180 = vmatmul.msk.f32.vlgmr.msra.gmra.mxu2 %vm1521_vm2, %v4546_v60  ;;  %3155 = vmatmul.msk.f32.gmra.mxu0 %vm1521_vm2, %v4789_v62  ;;  %v3221_v60 = vld [vmem:[%s5374_s7 + $0x208] sm:$0xff] }
 0x210   : > { %3196 = vmatmul.msk.f32.vlgmr.msra.gmra.mxu3 %vm1521_vm2, %v4570_v33  ;;  %2310 = vmatpush.msrb.mxu1 %v3222_v40  ;;  %v2417_v33 = vld [vmem:[%s5378_s11 + $0x78] sm:$0xff]  ;;  %v5015_v40 = vpop.f32.mrf.mxu3 }
 0x211   : > { %2491 = vmatpush.msrb.mxu3 %v2417_v33  ;;  %v2383_v33 = vld [vmem:[%s5377_s10 + $0x28] sm:$0xff] }
 0x212   : > { %2311 = vmatpush.msrb.mxu1 %v3221_v60 }
 0x214   : > { %2312 = vmatpush.msrb.mxu1 %v3220_v12 }
 0x216   : > { %3165 = vmatmul.msk.f32.gmra.mxu1 %vm1521_vm2, %v4568_v0 }
 0x217   : > { %3181 = vmatmul.msk.f32.gmra.mxu2 %vm1521_vm2, %v4572_v41  ;;  %3212 = vmatmul.msk.f32.vlgmr.msrb.gmra.mxu0 %vm1521_vm2, %v4568_v0  ;;  %v2416_v0 = vld [vmem:[%s5378_s11 + $0x70] sm:$0xff] }
 0x218   : > { %3197 = vmatmul.msk.f32.gmra.mxu3 %vm1521_vm2, %v4616_v37  ;;  %2450 = vmatpush.msrb.mxu2 %v2416_v0  ;;  %v2400_v37 = vld [vmem:[%s5377_s10 + $0xb0] sm:$0xff] }
 0x219   : > { %2552 = vmatpush.msra.mxu0 %v2400_v37  ;;  %v2381_v37 = vld [vmem:[%s5377_s10 + $0x18] sm:$0xff] }
 0x21b   : > { %2553 = vmatpush.msra.mxu0 %v2398_v21 }
 0x21d   : > { %2554 = vmatpush.msra.mxu0 %v2396_v50 }
 0x21e   : > { %3166 = vmatmul.msk.f32.gmra.mxu1 %vm1521_vm2, %v4614_v27 }
 0x21f   : > { %3182 = vmatmul.msk.f32.gmra.mxu2 %vm1521_vm2, %v4618_v38  ;;  %3213 = vmatmul.msk.f32.gmra.mxu0 %vm1521_vm2, %v4614_v27  ;;  %v2414_v27 = vld [vmem:[%s5378_s11 + $0x60] sm:$0xff] }
 0x220   : > { %3198 = vmatmul.msk.f32.gmra.mxu3 %vm1521_vm2, %v4680_v36  ;;  %v2415_v36 = vld [vmem:[%s5378_s11 + $0x68] sm:$0xff]  ;;  %2451 = vmatpush.msrb.mxu2 %v2414_v27 }
 0x221   : > { %2492 = vmatpush.msrb.mxu3 %v2415_v36  ;;  %2555 = vmatpush.msra.mxu0 %v2394_v7  ;;  %v2263_v7 = vld [vmem:[#allocation3 + $0x92] sm:$0xff] }
 0x222   : > { %2452 = vmatpush.msrb.mxu2 %v2412_v35  ;;  %v2636_v35 = vld [vmem:[%s5379_s12 + $0x30] sm:$0xff] }
 0x223   : > { %2493 = vmatpush.msrb.mxu3 %v2413_v26  ;;  %v2637_v26 = vld [vmem:[%s5379_s12 + $0x38] sm:$0xff] }
 0x224   : > { %2453 = vmatpush.msrb.mxu2 %v2410_v19 }
 0x225   : > { %2494 = vmatpush.msrb.mxu3 %v2411_v23 }
 0x226   : > { %3167 = vmatmul.msk.f32.gmra.mxu1 %vm1521_vm2, %v4678_v46  ;;  %2454 = vmatpush.msrb.mxu2 %v2408_v63  ;;  %v2634_v63 = vld [vmem:[%s5379_s12 + $0x20] sm:$0xff] }
 0x227   : > { %3183 = vmatmul.msk.f32.gmra.mxu2 %vm1521_vm2, %v4682_v47  ;;  %3214 = vmatmul.msk.f32.gmra.mxu0 %vm1521_vm2, %v4678_v46  ;;  %v2406_v46 = vld [vmem:[%s5378_s11 + $0x20] sm:$0xff] }
 0x228   : > { %3199 = vmatmul.msk.f32.gmra.mxu3 %vm1521_vm2, %v4723_v61  ;;  %v2392_v61 = vld [vmem:[%s5377_s10 + $0x70] sm:$0xff]  ;;  %2455 = vmatpush.msrb.mxu2 %v2406_v46 }
 0x229   : > { %2495 = vmatpush.msrb.mxu3 %v2409_v1  ;;  %2556 = vmatpush.msra.mxu0 %v2392_v61 }
 0x22a   : > { %2456 = vmatpush.msrb.mxu2 %v2404_v54 }
 0x22b   : > { %2496 = vmatpush.msrb.mxu3 %v2407_v45  ;;  %2557 = vmatpush.msra.mxu0 %v2390_v51 }
 0x22c   : > { %2457 = vmatpush.msrb.mxu2 %v2402_v3 }
 0x22d   : > { %2497 = vmatpush.msrb.mxu3 %v2405_v39  ;;  %2558 = vmatpush.msra.mxu0 %v2388_v58  ;;  %v2632_v39 = vld [vmem:[%s5379_s12 + $0x10] sm:$0xff] }
 0x22e   : > { %3168 = vmatmul.msk.f32.gmra.mxu1 %vm1521_vm2, %v4721_v43  ;;  %2675 = vmatpush.msra.mxu2 %v2636_v35 }
 0x22f   : > { %3184 = vmatmul.msk.f32.gmra.mxu2 %vm1521_vm2, %v4725_v31  ;;  %3215 = vmatmul.msk.f32.gmra.mxu0 %vm1521_vm2, %v4721_v43  ;;  %v2384_v43 = vld [vmem:[%s5377_s10 + $0x30] sm:$0xff] }
 0x230   : > { %3200 = vmatmul.msk.f32.gmra.mxu3 %vm1521_vm2, %v4749_v16  ;;  %2559 = vmatpush.msra.mxu0 %v2386_v13  ;;  %v1902_v16 = vld [vmem:[#allocation3 + $0x81] sm:$0xff] }
 0x231   : > { %2498 = vmatpush.msrb.mxu3 %v2403_v29  ;;  %2676 = vmatpush.msra.mxu2 %v2634_v63 }
 0x232   : > { %2560 = vmatpush.msra.mxu0 %v2384_v43 }
 0x233   : > { %2716 = vmatpush.msra.mxu3 %v2637_v26  ;;  %2677 = vmatpush.msra.mxu2 %v2632_v39 }
 0x234   : > { %2561 = vmatpush.msra.mxu0 %v2382_v24 }
 0x236   : > { %3169 = vmatmul.msk.f32.gmra.mxu1 %vm1521_vm2, %v4747_v44  ;;  %2562 = vmatpush.msra.mxu0 %v2380_v5  ;;  %v2630_v5 = vld [vmem:[%s5379_s12] sm:$0xff] }
 0x237   : > { %3185 = vmatmul.msk.f32.gmra.mxu2 %vm1521_vm2, %v4751_v59  ;;  %3216 = vmatmul.msk.f32.gmra.mxu0 %vm1521_vm2, %v4747_v44  ;;  %v2083_v44 = vld [vmem:[#allocation3 + $0x90] sm:$0xff] }
 0x238   : > { %3201 = vmatmul.msk.f32.gmra.mxu3 %vm1521_vm2, %v4772_v56  ;;  %2563 = vmatpush.msra.mxu0 %v2378_v15  ;;  %v2393_v56 = vld [vmem:[%s5377_s10 + $0x78] sm:$0xff]  ;;  %v2631_v15 = vld [vmem:[%s5379_s12 + $0x8] sm:$0xff] }
 0x239   : > { %2678 = vmatpush.msra.mxu2 %v2630_v5 }
 0x23e   : > { %3170 = vmatmul.msk.f32.gmra.mxu1 %vm1521_vm2, %v4770_v6 }
 0x23f   : > { %3186 = vmatmul.msk.f32.gmra.mxu2 %vm1521_vm2, %v4774_v8  ;;  %3217 = vmatmul.msk.f32.gmra.mxu0 %vm1521_vm2, %v4770_v6  ;;  %v2397_v6 = vld [vmem:[%s5377_s10 + $0x98] sm:$0xff] }
 0x240   : > { %3202 = vmatmul.msk.f32.gmra.mxu3 %vm1521_vm2, %v4789_v62 }
 0x246   : > { %3171 = vmatmul.msk.f32.gmra.mxu1 %vm1521_vm2, %v1902_v16 }
 0x247   : > { %3187 = vmatmul.msk.f32.gmra.mxu2 %vm1521_vm2, %v4943_v11  ;;  %3218 = vmatmul.msk.f32.gmra.mxu0 %vm1521_vm2, %v1902_v16 }
 0x248   : > { %3203 = vmatmul.msk.f32.gmra.mxu3 %vm1521_vm2, %v2083_v44 }
 0x24e   : > { %3228 = vmatmul.msk.f32.vlgmr.msrb.gmra.mxu1 %vm1521_vm2, %v4572_v41  ;;  %v2401_v41 = vld [vmem:[%s5377_s10 + $0xb8] sm:$0xff] }
 0x24f   : > { %3236 = vmatmul.msk.f32.vlgmr.msrb.gmra.mxu2 %vm1521_vm2, %v4528_v32  ;;  %3219 = vmatmul.msk.f32.gmra.mxu0 %vm1521_vm2, %v2173_v48 }
 0x250   : > { %3244 = vmatmul.msk.f32.vlgmr.msrb.gmra.mxu3 %vm1521_vm2, %v4528_v32  ;;  %2593 = vmatpush.msra.mxu1 %v2401_v41  ;;  %v2399_v32 = vld [vmem:[%s5377_s10 + $0xa8] sm:$0xff] }
 0x252   : > { %2594 = vmatpush.msra.mxu1 %v2399_v32 }
 0x253   : > { %v4959_v49 = vpop.f32.mrf.mxu1 }
 0x254   : > { %2595 = vmatpush.msra.mxu1 %v2397_v6  ;;  %v5020_v60 = vpop.f32.mrf.mxu0 }
 0x256   : > { %3229 = vmatmul.msk.f32.gmra.mxu1 %vm1521_vm2, %v4618_v38 }
 0x257   : > { %3237 = vmatmul.msk.f32.gmra.mxu2 %vm1521_vm2, %v4542_v57  ;;  %3252 = vmatmul.msk.f32.vlgmr.msra.gmra.mxu0 %vm628_vm0, %v3886_v42 }
 0x258   : > { %3245 = vmatmul.msk.f32.gmra.mxu3 %vm1521_vm2, %v4542_v57  ;;  %v2395_v57 = vld [vmem:[%s5377_s10 + $0x88] sm:$0xff] }
 0x259   : > { %2596 = vmatpush.msra.mxu1 %v2395_v57 }
 0x25b   : > { %v4975_v38 = vpop.f32.mrf.mxu1  ;;  %2597 = vmatpush.msra.mxu1 %v2393_v56  ;;  %v5040_v27 = vpop.f32.mrf.mxu3 }
 0x25c   : > { %v5047_v21 = vpop.f32.mrf.mxu0 }
 0x25d   : > { %2598 = vmatpush.msra.mxu1 %v2391_v55 }
 0x25e   : > { %3230 = vmatmul.msk.f32.gmra.mxu1 %vm1521_vm2, %v4682_v47  ;;  %v4997_v47 = vpop.f32.mrf.mxu2 }
 0x25f   : > { %3238 = vmatmul.msk.f32.gmra.mxu2 %vm1521_vm2, %v4566_v4  ;;  %3253 = vmatmul.msk.f32.gmra.mxu0 %vm628_vm0, %v3904_v52  ;;  %v1692_v32 = vadd.f32 %v4997_v47, %v4950_v17 }
 0x260   : > { %3246 = vmatmul.msk.f32.gmra.mxu3 %vm1521_vm2, %v4566_v4  ;;  %v2389_v4 = vld [vmem:[%s5377_s10 + $0x58] sm:$0xff] }
 0x261   : > { %2599 = vmatpush.msra.mxu1 %v2389_v4  ;;  %v1797_v55 = vadd.f32 %v5015_v40, %v1692_v32 }
 0x263   : > { %v4999_v62 = vpop.f32.mrf.mxu1  ;;  %2600 = vmatpush.msra.mxu1 %v2387_v10 }
 0x264   : > { %v5069_v19 = vpop.f32.mrf.mxu0 }
 0x266   : > { %3231 = vmatmul.msk.f32.gmra.mxu1 %vm1521_vm2, %v4725_v31  ;;  %v2385_v31 = vld [vmem:[%s5377_s10 + $0x38] sm:$0xff]  ;;  %v5022_v0 = vpop.f32.mrf.mxu2 }
 0x267   : > { %3239 = vmatmul.msk.f32.gmra.mxu2 %vm1521_vm2, %v4612_v25  ;;  %3254 = vmatmul.msk.f32.gmra.mxu0 %vm628_vm0, %v3930_v2  ;;  %v1695_v4 = vadd.f32 %v5022_v0, %v4959_v49 }
 0x268   : > { %3247 = vmatmul.msk.f32.gmra.mxu3 %vm1521_vm2, %v4612_v25  ;;  %2601 = vmatpush.msra.mxu1 %v2385_v31 }
 0x269   : > { %v1798_v31 = vadd.f32 %v5040_v27, %v1695_v4  ;;  %v5178_v27 = vld [vmem:[%s5375_s8] ss:$0 sm:$0xff] }
 0x26a   : > { %2602 = vmatpush.msra.mxu1 %v2383_v33 }
 0x26b   : > { %v5024_v25 = vpop.f32.mrf.mxu1 }
 0x26c   : > { %2603 = vmatpush.msra.mxu1 %v2381_v37  ;;  %v5098_v1 = vpop.f32.mrf.mxu0 }
 0x26e   : > { %3232 = vmatmul.msk.f32.gmra.mxu1 %vm1521_vm2, %v4751_v59  ;;  %v2379_v59 = vld [vmem:[%s5377_s10 + $0x8] sm:$0xff] }
 0x26f   : > { %3240 = vmatmul.msk.f32.gmra.mxu2 %vm1521_vm2, %v4670_v14  ;;  %3255 = vmatmul.msk.f32.gmra.mxu0 %vm628_vm0, %v3968_v18 }
 0x270   : > { %3248 = vmatmul.msk.f32.gmra.mxu3 %vm1521_vm2, %v4670_v14  ;;  %2604 = vmatpush.msra.mxu1 %v2379_v59  ;;  %v5049_v14 = vpop.f32.mrf.mxu2  ;;  %v1888_v59 = vadd.f32 %v5047_v21, %v1798_v31 }
 0x271   : > { %v1698_v40 = vadd.f32 %v5049_v14, %v4975_v38  ;;  %v5183_v38 = vld [vmem:[%s5376_s9] ss:$0 sm:$0xff] }
 0x273   : > { %v5045_v36 = vpop.f32.mrf.mxu1 }
 0x274   : > { %v5108_v51 = vpop.f32.mrf.mxu0 }
 0x276   : > { %3233 = vmatmul.msk.f32.gmra.mxu1 %vm1521_vm2, %v4774_v8  ;;  %v5065_v8 = vpop.f32.mrf.mxu3 }
 0x277   : > { %3241 = vmatmul.msk.f32.gmra.mxu2 %vm1521_vm2, %v4716_v30  ;;  %3256 = vmatmul.msk.f32.gmra.mxu0 %vm628_vm0, %v4005_v34 }
 0x278   : > { %3249 = vmatmul.msk.f32.gmra.mxu3 %vm1521_vm2, %v4716_v30  ;;  %v5075_v23 = vpop.f32.mrf.mxu2 }
 0x279   : > { %v1701_v14 = vadd.f32 %v5075_v23, %v4999_v62 }
 0x27b   : > { %v5067_v50 = vpop.f32.mrf.mxu1 }
 0x27c   : > { %v5122_v29 = vpop.f32.mrf.mxu0 }
 0x27e   : > { %3234 = vmatmul.msk.f32.gmra.mxu1 %vm1521_vm2, %v4943_v11  ;;  %v5083_v12 = vpop.f32.mrf.mxu3 }
 0x27f   : > { %3242 = vmatmul.msk.f32.gmra.mxu2 %vm1521_vm2, %v4745_v22  ;;  %3257 = vmatmul.msk.f32.gmra.mxu0 %vm628_vm0, %v4046_v53 }
 0x280   : > { %3250 = vmatmul.msk.f32.gmra.mxu3 %vm1521_vm2, %v4745_v22  ;;  %v2635_v22 = vld [vmem:[%s5379_s12 + $0x28] sm:$0xff]  ;;  %v5100_v61 = vpop.f32.mrf.mxu2 }
 0x281   : > { %2717 = vmatpush.msra.mxu3 %v2635_v22  ;;  %v1704_v23 = vadd.f32 %v5100_v61, %v5024_v25 }
 0x283   : > { %v5081_v30 = vpop.f32.mrf.mxu1 }
 0x284   : > { %v5132_v24 = vpop.f32.mrf.mxu0 }
 0x286   : > { %3235 = vmatmul.msk.f32.gmra.mxu1 %vm1521_vm2, %v2263_v7  ;;  %v5104_v45 = vpop.f32.mrf.mxu3 }
 0x287   : > { %3243 = vmatmul.msk.f32.gmra.mxu2 %vm1521_vm2, %v4768_v20  ;;  %3258 = vmatmul.msk.f32.gmra.mxu0 %vm628_vm0, %v4084_v9  ;;  %v1801_v4 = vadd.f32 %v5104_v45, %v1704_v23 }
 0x288   : > { %3251 = vmatmul.msk.f32.gmra.mxu3 %vm1521_vm2, %v4768_v20  ;;  %v5110_v20 = vpop.f32.mrf.mxu2 }
 0x289   : > { %v1891_v25 = vadd.f32 %v5108_v51, %v1801_v4 }
 0x28b   : > { %v1953_v46 = vpop.f32.mrf.mxu1 }
 0x28e   : > { %3260 = vmatmul.msk.f32.vlgmr.msra.gmra.mxu1 %vm628_vm0, %v3886_v42  ;;  %v2633_v42 = vld [vmem:[%s5379_s12 + $0x18] sm:$0xff]  ;;  %v5120_v58 = vpop.f32.mrf.mxu3 }
 0x28f   : > { %3259 = vmatmul.msk.f32.gmra.mxu0 %vm628_vm0, %v4122_v28  ;;  %2718 = vmatpush.msra.mxu3 %v2633_v42  ;;  %v1800_v42 = vadd.f32 %v5083_v12, %v1701_v14 }
 0x290   : > { %v5124_v13 = vpop.f32.mrf.mxu2 }
 0x291   : > { %2719 = vmatpush.msra.mxu3 %v2631_v15 }
 0x293   : > { %v1956_v54 = vpop.f32.mrf.mxu1 }
 0x294   : > { %v1978_v49 = vadd.f32 %v1956_v54, %v1888_v59 }
 0x296   : > { %3261 = vmatmul.msk.f32.gmra.mxu1 %vm628_vm0, %v3904_v52  ;;  %v5128_v52 = vpop.f32.mrf.mxu3 }
 0x298   : > { %v5142_v44 = vpop.f32.mrf.mxu2 }
 0x29b   : > { %v1959_v3 = vpop.f32.mrf.mxu1 }
 0x29e   : > { %3262 = vmatmul.msk.f32.gmra.mxu1 %vm628_vm0, %v3930_v2  ;;  %v5146_v16 = vpop.f32.mrf.mxu3 }
 0x2a0   : > { %v2043_v11 = vpop.f32.mrf.mxu2 }
 0x2a3   : > { %v5130_v43 = vpop.f32.mrf.mxu1 }
 0x2a6   : > { %3263 = vmatmul.msk.f32.gmra.mxu1 %vm628_vm0, %v3968_v18  ;;  %v5150_v18 = vpop.f32.mrf.mxu0  ;;  %v2134_v41 = vpop.f32.mrf.mxu3 }
 0x2a8   : > { %v2046_v57 = vpop.f32.mrf.mxu2 }
 0x2a9   : > { %v2068_v35 = vadd.f32 %v2046_v57, %v1978_v49 }
 0x2ab   : > { %v5144_v2 = vpop.f32.mrf.mxu1 }
 0x2ac   : > { %v1981_v45 = vadd.f32 %v5144_v2, %v1891_v25 }
 0x2ae   : > { %3264 = vmatmul.msk.f32.gmra.mxu1 %vm628_vm0, %v4005_v34  ;;  %v2224_v6 = vpop.f32.mrf.mxu0  ;;  %v1887_v34 = vadd.f32 %v5020_v60, %v1797_v55 }
 0x2b0   : > { %v1977_v10 = vadd.f32 %v1953_v46, %v1887_v34  ;;  %v2049_v37 = vpop.f32.mrf.mxu2 }
 0x2b2   : > { %v2067_v33 = vadd.f32 %v2043_v11, %v1977_v10 }
 0x2b3   : > { %v5152_v48 = vpop.f32.mrf.mxu1 }
 0x2b4   : > { %v2158_v60 = vadd.f32 %v2134_v41, %v2067_v33 }
 0x2b6   : > { %3265 = vmatmul.msk.f32.gmra.mxu1 %vm628_vm0, %v4046_v53  ;;  %v2137_v53 = vpop.f32.mrf.mxu3  ;;  %v2227_v47 = vpop.f32.mrf.mxu0  ;;  %v2248_v0 = vadd.f32 %v2224_v6, %v2158_v60 }
 0x2b8   : > { %v2052_v46 = vpop.f32.mrf.mxu2 }
 0x2bb   : > { %v5158_v56 = vpop.f32.mrf.mxu1 }
 0x2be   : > { %3266 = vmatmul.msk.f32.gmra.mxu1 %vm628_vm0, %v4084_v9  ;;  %v1799_v9 = vadd.f32 %v5065_v8, %v1698_v40  ;;  %v2140_v26 = vpop.f32.mrf.mxu3  ;;  %v2159_v8 = vadd.f32 %v2137_v53, %v2068_v35  ;;  %v2230_v63 = vpop.f32.mrf.mxu0 }
 0x2c0   : > { %v2249_v5 = vadd.f32 %v2227_v47, %v2159_v8  ;;  %v2055_v34 = vpop.f32.mrf.mxu2 }
 0x2c1   : > { %v2071_v49 = vadd.f32 %v2055_v34, %v1981_v45 }
 0x2c3   : > { %v5167_v17 = vpop.f32.mrf.mxu1 }
 0x2c6   : > { %3267 = vmatmul.msk.f32.gmra.mxu1 %vm628_vm0, %v4122_v28  ;;  %v1889_v28 = vadd.f32 %v5069_v19, %v1799_v9  ;;  %v2143_v62 = vpop.f32.mrf.mxu3  ;;  %v1890_v19 = vadd.f32 %v5098_v1, %v1800_v42  ;;  %v2233_v57 = vpop.f32.mrf.mxu0  ;;  %v1707_v1 = vadd.f32 %v5110_v20, %v5045_v36  ;;  %v1710_v20 = vadd.f32 %v5124_v13, %v5067_v50 }
 0x2c8   : > { %v1979_v54 = vadd.f32 %v1959_v3, %v1889_v28  ;;  %v1980_v12 = vadd.f32 %v5130_v43, %v1890_v19  ;;  %v1802_v40 = vadd.f32 %v5120_v58, %v1707_v1  ;;  %v2058_v35 = vpop.f32.mrf.mxu2  ;;  %v1803_v14 = vadd.f32 %v5128_v52, %v1710_v20 }
 0x2ca   : > { %v2069_v15 = vadd.f32 %v2049_v37, %v1979_v54  ;;  %v2070_v53 = vadd.f32 %v2052_v46, %v1980_v12  ;;  %v1892_v36 = vadd.f32 %v5122_v29, %v1802_v40  ;;  %v1893_v13 = vadd.f32 %v5132_v24, %v1803_v14 }
 0x2cb   : > { %v2314_v7 = vpop.f32.mrf.mxu1 }
 0x2cc   : > { %v2338_v21 = vadd.f32 %v2314_v7, %v2248_v0  ;;  %v2160_v3 = vadd.f32 %v2140_v26, %v2069_v15  ;;  %v2161_v61 = vadd.f32 %v2143_v62, %v2070_v53  ;;  %v1982_v58 = vadd.f32 %v5152_v48, %v1892_v36 }
 0x2cd   : > { %v1713_v48 = vadd.f32 %v5142_v44, %v5081_v30  ;;  %v1983_v52 = vadd.f32 %v5158_v56, %v1893_v13 }
 0x2ce   : > { %v2350_v22 = vmul.f32 %v5178_v27, %v2338_v21  ;;  %v2250_v10 = vadd.f32 %v2230_v63, %v2160_v3  ;;  %v2146_v37 = vpop.f32.mrf.mxu3  ;;  %v2251_v60 = vadd.f32 %v2233_v57, %v2161_v61  ;;  %v2236_v9 = vpop.f32.mrf.mxu0  ;;  %v2072_v63 = vadd.f32 %v2058_v35, %v1982_v58 }
 0x2cf   : > { %v2162_v2 = vadd.f32 %v2146_v37, %v2071_v49  ;;  %v1804_v15 = vadd.f32 %v5146_v16, %v1713_v48 }
 0x2d0   : > { %v2362_v39 = vadd.f32 %v5183_v38, %v2350_v22  ;;  %v2061_v29 = vpop.f32.mrf.mxu2 }
 0x2d1   : > { %v2252_v8 = vadd.f32 %v2236_v9, %v2162_v2  ;;  %v1894_v30 = vadd.f32 %v5150_v18, %v1804_v15 }
 0x2d2   : > { %v2370_v11 = vmax.f32 %v2362_v39, 0.0 }
 0x2d3   : > { %v2317_v41 = vpop.f32.mrf.mxu1 }
 0x2d4   : > { %v2339_v32 = vadd.f32 %v2317_v41, %v2249_v5  ;;  %3268 = vmatmul.msk.f32.vlgmr.msra.gmra.mxu2 %vm2638_vm4, %v2370_v11  ;;  %3276 = vmatmul.msk.f32.vlgmr.msra.gmra.mxu3 %vm2638_vm4, %v2370_v11  ;;  %v2073_v41 = vadd.f32 %v2061_v29, %v1983_v52 }
 0x2d6   : > { %v2351_v6 = vmul.f32 %v5178_v27, %v2339_v32  ;;  %v2149_v28 = vpop.f32.mrf.mxu3  ;;  %v2239_v50 = vpop.f32.mrf.mxu0 }
 0x2d7   : > { %v2163_v39 = vadd.f32 %v2149_v28, %v2072_v63 }
 0x2d8   : > { %v2363_v55 = vadd.f32 %v5183_v38, %v2351_v6  ;;  %v2064_v3 = vpop.f32.mrf.mxu2  ;;  %v1984_v6 = vadd.f32 %v5167_v17, %v1894_v30 }
 0x2d9   : > { %v2253_v11 = vadd.f32 %v2239_v50, %v2163_v39 }
 0x2da   : > { %v2371_v31 = vmax.f32 %v2363_v55, 0.0  ;;  %v2074_v57 = vadd.f32 %v2064_v3, %v1984_v6 }
 0x2db   : > { %v2320_v33 = vpop.f32.mrf.mxu1 }
 0x2dc   : > { %v2340_v47 = vadd.f32 %v2320_v33, %v2250_v10  ;;  %3269 = vmatmul.msk.f32.gmra.mxu2 %vm2638_vm4, %v2371_v31  ;;  %3277 = vmatmul.msk.f32.gmra.mxu3 %vm2638_vm4, %v2371_v31 }
 0x2de   : > { %v2352_v43 = vmul.f32 %v5178_v27, %v2340_v47  ;;  %v2152_v62 = vpop.f32.mrf.mxu3  ;;  %v2242_v56 = vpop.f32.mrf.mxu0 }
 0x2df   : > { %v2164_v24 = vadd.f32 %v2152_v62, %v2073_v41  ;;  %v3363_v62 = vld [vmem:[%s3664_s29] sm:$0xff] }
 0x2e0   : > { %v2364_v59 = vadd.f32 %v5183_v38, %v2352_v43  ;;  %v2459_v37 = vpop.f32.mrf.mxu2 }
 0x2e1   : > { %v2254_v12 = vadd.f32 %v2242_v56, %v2164_v24 }
 0x2e2   : > { %v2372_v0 = vmax.f32 %v2364_v59, 0.0 }
 0x2e3   : > { %v2323_v26 = vpop.f32.mrf.mxu1 }
 0x2e4   : > { %v2341_v51 = vadd.f32 %v2323_v26, %v2251_v60  ;;  %3270 = vmatmul.msk.f32.gmra.mxu2 %vm2638_vm4, %v2372_v0  ;;  %3278 = vmatmul.msk.f32.gmra.mxu3 %vm2638_vm4, %v2372_v0 }
 0x2e6   : > { %v2353_v7 = vmul.f32 %v5178_v27, %v2341_v51  ;;  %v2155_v10 = vpop.f32.mrf.mxu3  ;;  %v2245_v33 = vpop.f32.mrf.mxu0 }
 0x2e7   : > { %v2165_v18 = vadd.f32 %v2155_v10, %v2074_v57 }
 0x2e8   : > { %v2365_v21 = vadd.f32 %v5183_v38, %v2353_v7  ;;  %v2462_v40 = vpop.f32.mrf.mxu2 }
 0x2e9   : > { %v2255_v47 = vadd.f32 %v2245_v33, %v2165_v18 }
 0x2ea   : > { %v2373_v22 = vmax.f32 %v2365_v21, 0.0 }
 0x2eb   : > { %v2326_v46 = vpop.f32.mrf.mxu1 }
 0x2ec   : > { %v2342_v54 = vadd.f32 %v2326_v46, %v2252_v8  ;;  %3271 = vmatmul.msk.f32.gmra.mxu2 %vm2638_vm4, %v2373_v22  ;;  %3279 = vmatmul.msk.f32.gmra.mxu3 %vm2638_vm4, %v2373_v22  ;;  %v2761_v8 = vld [vmem:[%s5380_s13] sm:$0x3] }
 0x2ed   : > { %v5266_v46 = vperm.slane %v2761_v8, 0 }
 0x2ee   : > { %v2354_v42 = vmul.f32 %v5178_v27, %v2342_v54  ;;  %v2500_v45 = vpop.f32.mrf.mxu3  ;;  %v2565_v36 = vpop.f32.mrf.mxu0  ;;  %v5268_v54 = vperm.slane %v2761_v8, 1 }
 0x2ef   : > { %v2566_v63 = vadd.f32 %v2565_v36, %v2459_v37 }
 0x2f0   : > { %v2366_v5 = vadd.f32 %v5183_v38, %v2354_v42  ;;  %v2465_v49 = vpop.f32.mrf.mxu2 }
 0x2f2   : > { %v2374_v32 = vmax.f32 %v2366_v5, 0.0 }
 0x2f3   : > { %v2329_v19 = vpop.f32.mrf.mxu1 }
 0x2f4   : > { %v2343_v23 = vadd.f32 %v2329_v19, %v2253_v11  ;;  %3272 = vmatmul.msk.f32.gmra.mxu2 %vm2638_vm4, %v2374_v32  ;;  %3280 = vmatmul.msk.f32.gmra.mxu3 %vm2638_vm4, %v2374_v32 }
 0x2f6   : > { %v2355_v44 = vmul.f32 %v5178_v27, %v2343_v23  ;;  %v2503_v60 = vpop.f32.mrf.mxu3  ;;  %v2568_v58 = vpop.f32.mrf.mxu0  ;;  %v3364_v23 = vld [vmem:[%s3664_s29 + $0x8] sm:$0xff] }
 0x2f7   : > { %v2569_v41 = vadd.f32 %v2568_v58, %v2462_v40 }
 0x2f8   : > { %v2367_v16 = vadd.f32 %v5183_v38, %v2355_v44  ;;  %v5243_v0 = vpop.f32.mrf.mxu2 }
 0x2fa   : > { %v2375_v55 = vmax.f32 %v2367_v16, 0.0 }
 0x2fb   : > { %v2332_v34 = vpop.f32.mrf.mxu1 }
 0x2fc   : > { %v2344_v4 = vadd.f32 %v2332_v34, %v2254_v12  ;;  %3273 = vmatmul.msk.f32.gmra.mxu2 %vm2638_vm4, %v2375_v55  ;;  %3281 = vmatmul.msk.f32.gmra.mxu3 %vm2638_vm4, %v2375_v55 }
 0x2fe   : > { %v2356_v53 = vmul.f32 %v5178_v27, %v2344_v4  ;;  %v2506_v9 = vpop.f32.mrf.mxu3  ;;  %v2571_v13 = vpop.f32.mrf.mxu0 }
 0x2ff   : > { %v2572_v18 = vadd.f32 %v2571_v13, %v2465_v49 }
 0x300   : > { %v2368_v31 = vadd.f32 %v5183_v38, %v2356_v53  ;;  %v5247_v26 = vpop.f32.mrf.mxu2 }
 0x302   : > { %v2376_v17 = vmax.f32 %v2368_v31, 0.0  ;;  %v3365_v31 = vld [vmem:[%s3664_s29 + $0x10] sm:$0xff] }
 0x303   : > { %v2335_v25 = vpop.f32.mrf.mxu1 }
 0x304   : > { %v2345_v1 = vadd.f32 %v2335_v25, %v2255_v47  ;;  %3274 = vmatmul.msk.f32.gmra.mxu2 %vm2638_vm4, %v2376_v17  ;;  %3282 = vmatmul.msk.f32.gmra.mxu3 %vm2638_vm4, %v2376_v17  ;;  %v3366_v47 = vld [vmem:[%s3664_s29 + $0x18] sm:$0xff] }
 0x306   : > { %v2357_v61 = vmul.f32 %v5178_v27, %v2345_v1  ;;  %v5245_v35 = vpop.f32.mrf.mxu3  ;;  %v2574_v12 = vpop.f32.mrf.mxu0 }
 0x308   : > { %v2369_v43 = vadd.f32 %v5183_v38, %v2357_v61  ;;  %v5251_v38 = vpop.f32.mrf.mxu2 }
 0x30a   : > { %v2377_v59 = vmax.f32 %v2369_v43, 0.0 }
 0x30b   : > { %v2606_v20 = vpop.f32.mrf.mxu1 }
 0x30c   : > { %3275 = vmatmul.msk.f32.gmra.mxu2 %vm2638_vm4, %v2377_v59  ;;  %3283 = vmatmul.msk.f32.gmra.mxu3 %vm2638_vm4, %v2377_v59  ;;  %v2607_v22 = vadd.f32 %v2606_v20, %v2500_v45  ;;  %v2575_v20 = vadd.f32 %v2574_v12, %v5243_v0 }
 0x30e   : > { %v5249_v27 = vpop.f32.mrf.mxu3 }
 0x310   : > { %v5255_v2 = vpop.f32.mrf.mxu2 }
 0x313   : > { %v2609_v21 = vpop.f32.mrf.mxu1 }
 0x314   : > { %v2610_v32 = vadd.f32 %v2609_v21, %v2503_v60  ;;  %v2577_v60 = vpop.f32.mrf.mxu0  ;;  %v3367_v21 = vld [vmem:[%s3664_s29 + $0x20] sm:$0xff] }
 0x316   : > { %v5253_v51 = vpop.f32.mrf.mxu3 }
 0x318   : > { %v5259_v28 = vpop.f32.mrf.mxu2 }
 0x31b   : > { %v2612_v48 = vpop.f32.mrf.mxu1 }
 0x31c   : > { %v2613_v53 = vadd.f32 %v2612_v48, %v2506_v9 }
 0x31e   : > { %v5257_v7 = vpop.f32.mrf.mxu3 }
 0x323   : > { %v2615_v57 = vpop.f32.mrf.mxu1 }
 0x324   : > { %v2616_v58 = vadd.f32 %v2615_v57, %v5245_v35 }
 0x326   : > { %v5261_v14 = vpop.f32.mrf.mxu3 }
 0x32b   : > { %v2618_v49 = vpop.f32.mrf.mxu1 }
 0x357   : > { %v2680_v50 = vpop.f32.mrf.mxu2  ;;  %v2721_v29 = vpop.f32.mrf.mxu3 }
 0x358   : > { %v2745_v39 = vadd.f32 %v2680_v50, %v2566_v63  ;;  %v2746_v42 = vadd.f32 %v2721_v29, %v2607_v22  ;;  %v3368_v63 = vld [vmem:[%s3664_s29 + $0x28] sm:$0xff] }
 0x35a   : > { %v2767_v52 = vadd.f32 %v5266_v46, %v2745_v39  ;;  %v2768_v5 = vadd.f32 %v5268_v54, %v2746_v42 }
 0x35c   : > { %v2783_v15 = vmul.f32 0.17, %v2767_v52  ;;  %v2784_v11 = vmul.f32 0.17, %v2768_v5 }
 0x35e   : > { %v2799_v19 = vadd.f32 %v3363_v62, %v2783_v15  ;;  %v2800_v30 = vadd.f32 %v3364_v23, %v2784_v11  ;;  %v2578_v15 = vadd.f32 %v2577_v60, %v5247_v26  ;;  %v2580_v11 = vpop.f32.mrf.mxu0  ;;  %v3369_v62 = vld [vmem:[%s3664_s29 + $0x30] sm:$0xff]  ;;  %v3370_v23 = vld [vmem:[%s3664_s29 + $0x38] sm:$0xff] }
 0x35f   : > { %v2683_v24 = vpop.f32.mrf.mxu2  ;;  %v2724_v44 = vpop.f32.mrf.mxu3  ;;  %v3373_v60 = vld [vmem:[%s3664_s29 + $0x50] sm:$0xff] }
 0x360   : > { %v2815_v56 = vmax.f32 %v2799_v19, 0.0  ;;  %v2816_v3 = vmax.f32 %v2800_v30, 0.0  ;;  %v2747_v6 = vadd.f32 %v2683_v24, %v2569_v41  ;;  %v2748_v16 = vadd.f32 %v2724_v44, %v2610_v32  ;;  %v2621_v32 = vpop.f32.mrf.mxu1 }
 0x361   : > { %v2619_v41 = vadd.f32 %v2618_v49, %v5249_v27 }
 0x362   : > { %2831 = vst [vmem:[%s5277_s21] sm:$0xff] %v2815_v56  ;;  %v2769_v55 = vadd.f32 %v5266_v46, %v2747_v6  ;;  %v2770_v34 = vadd.f32 %v5268_v54, %v2748_v16 }
 0x363   : > { %2832 = vst [vmem:[%s5277_s21 + $0x8] sm:$0xff] %v2816_v3 }
 0x364   : > { %v2785_v4 = vmul.f32 0.17, %v2769_v55  ;;  %v2786_v10 = vmul.f32 0.17, %v2770_v34  ;;  %v2581_v55 = vadd.f32 %v2580_v11, %v5251_v38  ;;  %v2622_v34 = vadd.f32 %v2621_v32, %v5253_v51 }
 0x366   : > { %v2801_v33 = vadd.f32 %v3365_v31, %v2785_v4  ;;  %v2802_v17 = vadd.f32 %v3366_v47, %v2786_v10  ;;  %v3371_v4 = vld [vmem:[%s3664_s29 + $0x40] sm:$0xff] }
 0x367   : > { %v2686_v25 = vpop.f32.mrf.mxu2  ;;  %v2727_v1 = vpop.f32.mrf.mxu3 }
 0x368   : > { %v2817_v61 = vmax.f32 %v2801_v33, 0.0  ;;  %v2818_v43 = vmax.f32 %v2802_v17, 0.0  ;;  %v2749_v37 = vadd.f32 %v2686_v25, %v2572_v18  ;;  %v2750_v45 = vadd.f32 %v2727_v1, %v2613_v53  ;;  %v3372_v18 = vld [vmem:[%s3664_s29 + $0x48] sm:$0xff] }
 0x36a   : > { %2833 = vst [vmem:[%s5277_s21 + $0x10] sm:$0xff] %v2817_v61  ;;  %v2771_v59 = vadd.f32 %v5266_v46, %v2749_v37  ;;  %v2772_v40 = vadd.f32 %v5268_v54, %v2750_v45  ;;  %v2583_v61 = vpop.f32.mrf.mxu0 }
 0x36b   : > { %2834 = vst [vmem:[%s5277_s21 + $0x18] sm:$0xff] %v2818_v43  ;;  %v2624_v43 = vpop.f32.mrf.mxu1 }
 0x36c   : > { %v2787_v9 = vmul.f32 0.17, %v2771_v59  ;;  %v2788_v36 = vmul.f32 0.17, %v2772_v40  ;;  %v2584_v59 = vadd.f32 %v2583_v61, %v5255_v2  ;;  %v2625_v40 = vadd.f32 %v2624_v43, %v5257_v7 }
 0x36e   : > { %v2803_v8 = vadd.f32 %v3367_v21, %v2787_v9  ;;  %v2804_v22 = vadd.f32 %v3368_v63, %v2788_v36  ;;  %v3374_v9 = vld [vmem:[%s3664_s29 + $0x58] sm:$0xff] }
 0x36f   : > { %v2689_v50 = vpop.f32.mrf.mxu2  ;;  %v2730_v29 = vpop.f32.mrf.mxu3 }
 0x370   : > { %v2819_v13 = vmax.f32 %v2803_v8, 0.0  ;;  %v2820_v48 = vmax.f32 %v2804_v22, 0.0  ;;  %v2751_v39 = vadd.f32 %v2689_v50, %v2575_v20  ;;  %v2752_v42 = vadd.f32 %v2730_v29, %v2616_v58 }
 0x372   : > { %2835 = vst [vmem:[%s5277_s21 + $0x20] sm:$0xff] %v2819_v13  ;;  %v2773_v52 = vadd.f32 %v5266_v46, %v2751_v39  ;;  %v2774_v5 = vadd.f32 %v5268_v54, %v2752_v42  ;;  %v2586_v7 = vpop.f32.mrf.mxu0 }
 0x373   : > { %2836 = vst [vmem:[%s5277_s21 + $0x28] sm:$0xff] %v2820_v48  ;;  %v2627_v29 = vpop.f32.mrf.mxu1  ;;  %v2587_v39 = vadd.f32 %v2586_v7, %v5259_v28 }
 0x374   : > { %v2789_v0 = vmul.f32 0.17, %v2773_v52  ;;  %v2790_v35 = vmul.f32 0.17, %v2774_v5  ;;  %v2628_v42 = vadd.f32 %v2627_v29, %v5261_v14  ;;  %v3375_v52 = vld [vmem:[%s3664_s29 + $0x60] sm:$0xff] }
 0x376   : > { %v2805_v19 = vadd.f32 %v3369_v62, %v2789_v0  ;;  %v2806_v30 = vadd.f32 %v3370_v23, %v2790_v35  ;;  %v3376_v0 = vld [vmem:[%s3664_s29 + $0x68] sm:$0xff] }
 0x377   : > { %v2692_v24 = vpop.f32.mrf.mxu2  ;;  %v2733_v44 = vpop.f32.mrf.mxu3 }
 0x378   : > { %v2821_v56 = vmax.f32 %v2805_v19, 0.0  ;;  %v2822_v3 = vmax.f32 %v2806_v30, 0.0  ;;  %v2753_v6 = vadd.f32 %v2692_v24, %v2578_v15  ;;  %v2754_v16 = vadd.f32 %v2733_v44, %v2619_v41  ;;  %v3377_v24 = vld [vmem:[%s3664_s29 + $0x70] sm:$0xff] }
 0x37a   : > { %2837 = vst [vmem:[%s5277_s21 + $0x30] sm:$0xff] %v2821_v56  ;;  %v2775_v26 = vadd.f32 %v5266_v46, %v2753_v6  ;;  %v2776_v12 = vadd.f32 %v5268_v54, %v2754_v16  ;;  %v3378_v56 = vld [vmem:[%s3664_s29 + $0x78] sm:$0xff]  ;;  %s3399_s29 = scalar_lea.hbm %s5381_s14, 256 }
 0x37b   : > { %2838 = vst [vmem:[%s5277_s21 + $0x38] sm:$0xff] %v2822_v3  ;;  %p3401_p1 = scmp.lt.s32.totalorder %s3399_s29, %s3395_s24 }
 0x37c   : > { %v2791_v27 = vmul.f32 0.17, %v2775_v26  ;;  %v2792_v57 = vmul.f32 0.17, %v2776_v12 }
 0x37d   : > { %p3402_p2 = por %p3401_p1, %p3400_p0 }
 0x37e   : > { %v2807_v10 = vadd.f32 %v3371_v4, %v2791_v27  ;;  %v2808_v53 = vadd.f32 %v3372_v18, %v2792_v57 }
 0x37f   : > { %v2695_v31 = vpop.f32.mrf.mxu2  ;;  %v2736_v33 = vpop.f32.mrf.mxu3  ;;  %p3403_p3 = pnand %p3402_p2, %p3398_p13 }
 0x380   : > { %v2823_v47 = vmax.f32 %v2807_v10, 0.0  ;;  %v2824_v17 = vmax.f32 %v2808_v53, 0.0  ;;  %v2755_v25 = vadd.f32 %v2695_v31, %v2581_v55  ;;  %v2756_v1 = vadd.f32 %v2736_v33, %v2622_v34 }
 0x382   : > { %2839 = vst [vmem:[%s5277_s21 + $0x40] sm:$0xff] %v2823_v47  ;;  %v2777_v38 = vadd.f32 %v5266_v46, %v2755_v25  ;;  %v2778_v51 = vadd.f32 %v5268_v54, %v2756_v1 }
 0x383   : > { %2840 = vst [vmem:[%s5277_s21 + $0x48] sm:$0xff] %v2824_v17 }
 0x384   : > { %v2793_v37 = vmul.f32 0.17, %v2777_v38  ;;  %v2794_v45 = vmul.f32 0.17, %v2778_v51 }
 0x386   : > { %v2809_v49 = vadd.f32 %v3373_v60, %v2793_v37  ;;  %v2810_v36 = vadd.f32 %v3374_v9, %v2794_v45 }
 0x387   : > { %v2698_v20 = vpop.f32.mrf.mxu2  ;;  %v2739_v58 = vpop.f32.mrf.mxu3 }
 0x388   : > { %v2825_v21 = vmax.f32 %v2809_v49, 0.0  ;;  %v2826_v8 = vmax.f32 %v2810_v36, 0.0  ;;  %v2757_v63 = vadd.f32 %v2698_v20, %v2584_v59  ;;  %v2758_v22 = vadd.f32 %v2739_v58, %v2625_v40 }
 0x38a   : > { %2841 = vst [vmem:[%s5277_s21 + $0x50] sm:$0xff] %v2825_v21  ;;  %v2779_v50 = vadd.f32 %v5266_v46, %v2757_v63  ;;  %v2780_v2 = vadd.f32 %v5268_v54, %v2758_v22 }
 0x38b   : > { %2842 = vst [vmem:[%s5277_s21 + $0x58] sm:$0xff] %v2826_v8 }
 0x38c   : > { %v2795_v13 = vmul.f32 0.17, %v2779_v50  ;;  %v2796_v48 = vmul.f32 0.17, %v2780_v2 }
 0x38e   : > { %v2811_v5 = vadd.f32 %v3375_v52, %v2795_v13  ;;  %v2812_v35 = vadd.f32 %v3376_v0, %v2796_v48 }
 0x38f   : > { %v2701_v15 = vpop.f32.mrf.mxu2  ;;  %v2742_v11 = vpop.f32.mrf.mxu3 }
 0x390   : > { %v2827_v41 = vmax.f32 %v2811_v5, 0.0  ;;  %v2828_v32 = vmax.f32 %v2812_v35, 0.0  ;;  %v2759_v62 = vadd.f32 %v2701_v15, %v2587_v39  ;;  %v2760_v19 = vadd.f32 %v2742_v11, %v2628_v42 }
 0x392   : > { %2843 = vst [vmem:[%s5277_s21 + $0x60] sm:$0xff] %v2827_v41  ;;  %v2781_v28 = vadd.f32 %v5266_v46, %v2759_v62  ;;  %v2782_v14 = vadd.f32 %v5268_v54, %v2760_v19 }
 0x393   : > { %2844 = vst [vmem:[%s5277_s21 + $0x68] sm:$0xff] %v2828_v32 }
 0x394   : > { %v2797_v23 = vmul.f32 0.17, %v2781_v28  ;;  %v2798_v30 = vmul.f32 0.17, %v2782_v14 }
 0x396   : > { %v2813_v44 = vadd.f32 %v3377_v24, %v2797_v23  ;;  %v2814_v3 = vadd.f32 %v3378_v56, %v2798_v30 }
 0x398   : > { %v2829_v46 = vmax.f32 %v2813_v44, 0.0  ;;  %v2830_v6 = vmax.f32 %v2814_v3, 0.0 }
 0x39a   : > { %2845 = vst [vmem:[%s5277_s21 + $0x70] sm:$0xff] %v2829_v46 }
 0x39b   : > { %2846 = vst [vmem:[%s5277_s21 + $0x78] sm:$0xff] %v2830_v6 }
 0x39c   : > { %3406 = shalt.err (!%p3403_p3)
}
 0x39d   : > { %s3444_s20 = smov 256   ;;  %s3445_s21 = smov 16  }
 0x39e   : > { %3315 = dma.vmem_to_hbm [thread:$0]  (%p3559_p5), %s2861_s17, 2048, %s2863_s26, %s2848_s27, %s3444_s20, %s3444_s20, %s3445_s21  }
 0x39f PF: > { %s5396_s25 = sld [smem:[#allocation7_spill]]  ;;  %p3321_p4 = scmp.ge.s32.totalorder %s3441_s16, 2 }
 0x3a1   : > { %p3318_p7 = pnand %p3321_p4, %p3563_p6 }
 0x3a3   : > { %p3319_p8 = pneg %p3318_p7 }
 0x3a5   : > { %s2877_s22 = sand.u32 1, %s5396_s25  }
 0x3a6   : > { %s2878_s28 = scalar_lea.sflag [#allocation5], %s2877_s22 }
 0x3a7   : > { %3424 = dma.done.wait (%p3319_p8), %s2878_s28, 2048  }
 0x3a8   : > { %3426 = vsyncadd (%p3319_p8), %s2878_s28, 4294965248  ;;  %s5398_s16 = sld [smem:[#allocation9_spill]]  ;;  %s5401_s29 = smov %s3433_s30 }
 0x3a9   : > { %s5399_s18 = sld [smem:[#allocation8_spill]] }
 0x3aa   : > { %s5400_s15 = sld [smem:[#allocation10_spill]] }
 0x3ae   : > { %p24_p9 = scmp.ge.s32.totalorder %s5398_s16, 4  }
 0x3af   : > { %s5402_s30 = smov %s5399_s18 }
 0x3b0   :  { %26 = sbr.rel (!%p24_p9) target bundleno = 5 (0x5), region = 131 }
 0x3b5   :  { %2884 = vsyncpa [#allocation5], 1 }
 0x3b6   :  { %2886 = vsyncpa [#allocation5 + $0x1], 1 }

</bundles_post_ra>
